<compile_context>
chip_gen: v7x
topology: tpu7x:2x2x1
jax: 0.10.0
libtpu: 0.0.40
codegen_flags: <defaults>
</compile_context>

<pallas_src>
import jax
import jax.numpy as jnp
from jax.experimental import pallas as pl
from jax.experimental.pallas import tpu as pltpu

# ----------------------------- model hyper-params (small) -----------------------------
BATCH = 2
CHANNELS = 3
IMG = 16
PATCH = 8
HIDDEN = 32          # ViT hidden size (1024 in real CLIP ViT-L)
TEXT_DIM = 32        # text embedding size (1024 in the original -> concat 2048)
NUM_HEADS = 4
HEAD_DIM = HIDDEN // NUM_HEADS
MLP_DIM = 64
NUM_LAYERS = 2
LN_EPS = 1e-5
NUM_PATCHES = (IMG // PATCH) ** 2     # 4
SEQ = NUM_PATCHES + 1                 # 5  (CLS + patches)
SEQ_PAD = 8                           # sublane-aligned padded sequence length
TOKENS = BATCH * SEQ_PAD              # all batch rows stacked
PATCH_DIM = CHANNELS * PATCH * PATCH  # 192


# ----------------------------------- fused Pallas kernel -----------------------------------
def _ln(x, g, b):
    x = x.astype(jnp.float32)
    mean = jnp.mean(x, axis=-1, keepdims=True)
    var = jnp.mean(jnp.square(x - mean), axis=-1, keepdims=True)
    return (x - mean) * jax.lax.rsqrt(var + LN_EPS) * g + b


def _fused_vit_kernel(patches_ref, text_ref, poscls_ref, patch_w_ref,
                      preg_ref, preb_ref,
                      ln1g_ref, ln1b_ref,
                      wq_ref, wk_ref, wv_ref, bq_ref, bk_ref, bv_ref,
                      wo_ref, bo_ref,
                      ln2g_ref, ln2b_ref, w1_ref, b1_ref, w2_ref, b2_ref,
                      scw_cls_ref, scw_txt_ref, scb_ref,
                      o_ref):
    """Whole forward pass for all batch elements; everything stays in VMEM/vregs."""
    f32, bf16 = jnp.float32, jnp.bfloat16
    B, Sp, D, dh = BATCH, SEQ_PAD, HIDDEN, HEAD_DIM

    # ---- patch embedding for all (batch x padded-token) rows at once.
    # CLS slot and pad rows are zero patch rows; cls_emb + pos_emb arrive via poscls addend.
    emb = jnp.dot(patches_ref[...], patch_w_ref[...], preferred_element_type=f32)  # (N, D)
    h = emb + poscls_ref[...]
    h = _ln(h, preg_ref[...], preb_ref[...])                                        # f32 residual

    # key-padding bias (pad key columns -> -inf before softmax), computed once
    col = jax.lax.broadcasted_iota(jnp.int32, (1, Sp), 1)
    key_bias = jnp.where(col < SEQ, 0.0, -1e30).astype(f32)                         # (1, Sp)

    # ---- transformer encoder layers (static unroll at toy scale) ----
    for l in range(NUM_LAYERS):
        # self-attention block (pre-LN); 1/sqrt(dh) already folded into wq/bq
        x = _ln(h, ln1g_ref[l], ln1b_ref[l]).astype(bf16)                           # (N, D)
        attn = jnp.zeros((TOKENS, D), f32)
        for hd in range(NUM_HEADS):
            # per-head weights via leading-axis ref views (no lane slicing of activations)
            q = jnp.dot(x, wq_ref[l, hd], preferred_element_type=f32) + bq_ref[l, hd]
            k = jnp.dot(x, wk_ref[l, hd], preferred_element_type=f32) + bk_ref[l, hd]
            v = jnp.dot(x, wv_ref[l, hd], preferred_element_type=f32) + bv_ref[l, hd]
            q3 = q.reshape(B, Sp, dh).astype(bf16)       # aligned (multiple-of-8) split
            k3 = k.reshape(B, Sp, dh).astype(bf16)
            v3 = v.reshape(B, Sp, dh).astype(bf16)
            s = jnp.einsum("bqd,bkd->bqk", q3, k3, preferred_element_type=f32) + key_bias
            m = jnp.max(s, axis=-1, keepdims=True)
            e = jnp.exp(s - m)
            p = e * pl.reciprocal(jnp.sum(e, axis=-1, keepdims=True), approx=True)
            ho = jnp.einsum("bqk,bkd->bqd", p.astype(bf16), v3, preferred_element_type=f32)
            # no head concat: accumulate through this head's row-slice of wo
            attn = attn + jnp.dot(ho.reshape(TOKENS, dh).astype(bf16), wo_ref[l, hd],
                                  preferred_element_type=f32)
        h = h + attn + bo_ref[l]

        # MLP block (pre-LN, CLIP quick_gelu); elementwise math stays f32
        x = _ln(h, ln2g_ref[l], ln2b_ref[l]).astype(bf16)
        u = jnp.dot(x, w1_ref[l], preferred_element_type=f32) + b1_ref[l]           # (N, M)
        u = u * jax.nn.sigmoid(1.702 * u)
        h = h + jnp.dot(u.astype(bf16), w2_ref[l], preferred_element_type=f32) + b2_ref[l]

    # ---- score head: concat([cls, text]) @ W + b  as two VPU row reductions ----
    cls = h.reshape(B, Sp, D)[:, 0, :]                 # (B, D)  CLS token of each batch element
    score = (jnp.sum(cls * scw_cls_ref[...], axis=-1, keepdims=True)
             + jnp.sum(text_ref[...] * scw_txt_ref[...], axis=-1, keepdims=True)
             + scb_ref[...])                           # (B, 1)
    o_ref[...] = score.astype(o_ref.dtype)


# ----------------------------------- wrapper -----------------------------------
def _stack(layers, name):
    return jnp.stack([lp[name] for lp in layers], axis=0)


@jax.jit
def pairwise_vit_infer(params, text1, x1):
    """text1: (B, 1, TEXT_DIM), x1: (B, C, H, W)  ->  (B, 1)."""
    B, C, Himg, Wimg = x1.shape
    p = PATCH
    nh, nw = Himg // p, Wimg // p
    P = nh * nw
    D, T, L, M = HIDDEN, TEXT_DIM, NUM_LAYERS, MLP_DIM
    Hn, dh, Sp = NUM_HEADS, HEAD_DIM, SEQ_PAD
    N = B * Sp
    bf = jnp.bfloat16
    scale = 1.0 / (dh ** 0.5)

    vp = params["vit"]
    ls = vp["layers"]

    # ---- layout-only prep (XLA): patch extraction + zero rows for the CLS slot & seq pad ----
    patches = x1.reshape(B, C, nh, p, nw, p).transpose(0, 2, 4, 1, 3, 5).reshape(B, P, C * p * p)
    patches_full = jnp.zeros((B, Sp, C * p * p), jnp.float32).at[:, 1:1 + P, :].set(patches)
    patches2d = patches_full.reshape(N, C * p * p).astype(bf)

    # cls_emb + pos_emb folded into one padded per-token addend (pad rows zero), tiled over batch
    poscls = jnp.zeros((Sp, D), jnp.float32)
    poscls = poscls.at[0].set(vp["cls_emb"] + vp["pos_emb"][0])
    poscls = poscls.at[1:SEQ].set(vp["pos_emb"][1:SEQ])
    poscls = jnp.tile(poscls, (B, 1))                                     # (N, D)

    # ---- per-head weight re-layout; head selection in-kernel is a leading-axis view ----
    w_qkv = _stack(ls, "w_qkv")                                           # (L, D, 3D)
    b_qkv = _stack(ls, "b_qkv")                                           # (L, 3D)
    sw = lambda w: w.reshape(L, D, Hn, dh).transpose(0, 2, 1, 3)          # -> (L, H, D, dh)
    sb = lambda b: b.reshape(L, Hn, 1, dh)                                # -> (L, H, 1, dh)
    wq = sw(w_qkv[:, :, :D]) * scale                                      # fold 1/sqrt(dh) into Q
    wk = sw(w_qkv[:, :, D:2 * D])
    wv = sw(w_qkv[:, :, 2 * D:])
    bq = sb(b_qkv[:, :D]) * scale
    bk = sb(b_qkv[:, D:2 * D])
    bv = sb(b_qkv[:, 2 * D:])
    wo = _stack(ls, "wo").reshape(L, Hn, dh, D)                           # per-head row slices
    bo = _stack(ls, "bo").reshape(L, 1, D)

    args = [
        patches2d,                                    # (N, C*p*p)  bf16
        jnp.squeeze(text1, axis=1),                   # (B, T)      f32
        poscls,                                       # (N, D)      f32
        vp["patch_w"].astype(bf),                     # (C*p*p, D)
        vp["pre_ln_g"].reshape(1, D), vp["pre_ln_b"].reshape(1, D),
        _stack(ls, "ln1_g").reshape(L, 1, D), _stack(ls, "ln1_b").reshape(L, 1, D),
        wq.astype(bf), wk.astype(bf), wv.astype(bf),
        bq, bk, bv,
        wo.astype(bf), bo,
        _stack(ls, "ln2_g").reshape(L, 1, D), _stack(ls, "ln2_b").reshape(L, 1, D),
        _stack(ls, "w1").astype(bf), _stack(ls, "b1").reshape(L, 1, M),
        _stack(ls, "w2").astype(bf), _stack(ls, "b2").reshape(L, 1, D),
        params["score_w"][:D, :].T,                   # (1, D)
        params["score_w"][D:, :].T,                   # (1, T)
        params["score_b"].reshape(1, 1),
    ]

    vmem = pl.BlockSpec(memory_space=pltpu.MemorySpace.VMEM)
    out = pl.pallas_call(
        _fused_vit_kernel,
        out_shape=jax.ShapeDtypeStruct((B, 1), jnp.float32),
        in_specs=[vmem] * len(args),
        out_specs=vmem,
    )(*args)
    return out


# ----------------------------------- pure-JAX reference -----------------------------------
def _reference_forward(params, text1, x1):
    B, C, H, W = x1.shape
    p = PATCH
    nh, nw = H // p, W // p
    P, D = nh * nw, HIDDEN
    patches = x1.reshape(B, C, nh, p, nw, p).transpose(0, 2, 4, 1, 3, 5).reshape(B, P, C * p * p)
    vp = params["vit"]
    emb = patches @ vp["patch_w"]
    cls = jnp.broadcast_to(vp["cls_emb"].reshape(1, 1, D), (B, 1, D))
    h = jnp.concatenate([cls, emb], axis=1) + vp["pos_emb"][None]

    def ln(x, g, b):
        mu = x.mean(-1, keepdims=True)
        var = ((x - mu) ** 2).mean(-1, keepdims=True)
        return (x - mu) * jax.lax.rsqrt(var + LN_EPS) * g + b

    h = ln(h, vp["pre_ln_g"], vp["pre_ln_b"])
    for lp in vp["layers"]:
        x = ln(h, lp["ln1_g"], lp["ln1_b"])
        qkv = x @ lp["w_qkv"] + lp["b_qkv"]
        q, k, v = jnp.split(qkv, 3, axis=-1)

        def sh(t):
            return t.reshape(B, SEQ, NUM_HEADS, HEAD_DIM).transpose(0, 2, 1, 3)

        q, k, v = sh(q), sh(k), sh(v)
        s = (q @ k.transpose(0, 1, 3, 2)) / (HEAD_DIM ** 0.5)
        a = jax.nn.softmax(s, axis=-1)
        o = (a @ v).transpose(0, 2, 1, 3).reshape(B, SEQ, HIDDEN)
        h = h + (o @ lp["wo"] + lp["bo"])
        x = ln(h, lp["ln2_g"], lp["ln2_b"])
        x = x @ lp["w1"] + lp["b1"]
        x = x * jax.nn.sigmoid(1.702 * x)
        h = h + (x @ lp["w2"] + lp["b2"])
    feat = jnp.concatenate([h[:, 0, :], jnp.squeeze(text1, axis=1)], axis=-1)
    return feat @ params["score_w"] + params["score_b"]


# ----------------------------------- parameter init -----------------------------------
def init_params(key):
    D, M, T = HIDDEN, MLP_DIM, TEXT_DIM
    keys = iter(jax.random.split(key, 64))

    def w(shape, scale=0.02):
        return (scale * jax.random.normal(next(keys), shape)).astype(jnp.float32)

    layers = []
    for _ in range(NUM_LAYERS):
        layers.append(dict(
            ln1_g=jnp.ones((D,), jnp.float32), ln1_b=jnp.zeros((D,), jnp.float32),
            w_qkv=w((D, 3 * D)), b_qkv=jnp.zeros((3 * D,), jnp.float32),
            wo=w((D, D)), bo=jnp.zeros((D,), jnp.float32),
            ln2_g=jnp.ones((D,), jnp.float32), ln2_b=jnp.zeros((D,), jnp.float32),
            w1=w((D, M)), b1=jnp.zeros((M,), jnp.float32),
            w2=w((M, D)), b2=jnp.zeros((D,), jnp.float32),
        ))

    vit = dict(
        patch_w=w((PATCH_DIM, D)),
        cls_emb=w((D,)),
        pos_emb=w((SEQ, D)),
        pre_ln_g=jnp.ones((D,), jnp.float32),
        pre_ln_b=jnp.zeros((D,), jnp.float32),
        layers=layers,
    )
    return dict(vit=vit,
                score_w=w((D + T, 1)),             # score_layer: Linear(2*D, 1)
                score_b=jnp.zeros((1,), jnp.float32))


# --------------------------------------- main ---------------------------------------
if __name__ == "__main__":
    key = jax.random.PRNGKey(0)
    k_param, k_img, k_txt = jax.random.split(key, 3)

    params = init_params(k_param)
    x1 = jax.random.normal(k_img, (BATCH, CHANNELS, IMG, IMG), dtype=jnp.float32)   # NCHW
    text1 = jax.random.normal(k_txt, (BATCH, 1, TEXT_DIM), dtype=jnp.float32)

    out = jax.block_until_ready(pairwise_vit_infer(params, text1, x1))
    ref = jax.block_until_ready(_reference_forward(params, text1, x1))

    assert out.shape == (BATCH, 1), out.shape
    assert bool(jnp.all(jnp.isfinite(out)))
    assert bool(jnp.allclose(out, ref, rtol=1e-2, atol=1e-2)), (out, ref)
    print("KERNEL_OK")
</pallas_src>

<mosaic_0001>
module attributes {stable_mosaic.version = 11 : i64} {
  func.func @_fused_vit_kernel(%arg0: memref<16x192xbf16, #tpu.memory_space<vmem>>, %arg1: memref<2x32xf32, #tpu.memory_space<vmem>>, %arg2: memref<16x32xf32, #tpu.memory_space<vmem>>, %arg3: memref<192x32xbf16, #tpu.memory_space<vmem>>, %arg4: memref<1x32xf32, #tpu.memory_space<vmem>>, %arg5: memref<1x32xf32, #tpu.memory_space<vmem>>, %arg6: memref<2x1x32xf32, #tpu.memory_space<vmem>>, %arg7: memref<2x1x32xf32, #tpu.memory_space<vmem>>, %arg8: memref<2x4x32x8xbf16, #tpu.memory_space<vmem>>, %arg9: memref<2x4x32x8xbf16, #tpu.memory_space<vmem>>, %arg10: memref<2x4x32x8xbf16, #tpu.memory_space<vmem>>, %arg11: memref<2x4x1x8xf32, #tpu.memory_space<vmem>>, %arg12: memref<2x4x1x8xf32, #tpu.memory_space<vmem>>, %arg13: memref<2x4x1x8xf32, #tpu.memory_space<vmem>>, %arg14: memref<2x4x8x32xbf16, #tpu.memory_space<vmem>>, %arg15: memref<2x1x32xf32, #tpu.memory_space<vmem>>, %arg16: memref<2x1x32xf32, #tpu.memory_space<vmem>>, %arg17: memref<2x1x32xf32, #tpu.memory_space<vmem>>, %arg18: memref<2x32x64xbf16, #tpu.memory_space<vmem>>, %arg19: memref<2x1x64xf32, #tpu.memory_space<vmem>>, %arg20: memref<2x64x32xbf16, #tpu.memory_space<vmem>>, %arg21: memref<2x1x32xf32, #tpu.memory_space<vmem>>, %arg22: memref<1x32xf32, #tpu.memory_space<vmem>>, %arg23: memref<1x32xf32, #tpu.memory_space<vmem>>, %arg24: memref<1x1xf32, #tpu.memory_space<vmem>>, %arg25: memref<2x1xf32, #tpu.memory_space<vmem>>) attributes {dimension_semantics = [], scalar_prefetch = 0 : i64, scratch_operands = 0 : i64, tpu.core_type = #tpu.core_type<tc>} {
    %c0 = arith.constant 0 : index
    %c0_0 = arith.constant 0 : index
    %0 = vector.load %arg0[%c0, %c0_0] : memref<16x192xbf16, #tpu.memory_space<vmem>>, vector<16x192xbf16>
    %c0_1 = arith.constant 0 : index
    %c0_2 = arith.constant 0 : index
    %1 = vector.load %arg3[%c0_1, %c0_2] : memref<192x32xbf16, #tpu.memory_space<vmem>>, vector<192x32xbf16>
    %cst = arith.constant dense<0.000000e+00> : vector<16x32xf32>
    %2 = tpu.matmul %0, %1, %cst {dimension_numbers = #tpu.dot_dimension_numbers<[1], [0], [0], [1], [0, 0, 1, 1], [], []>} : vector<16x192xbf16>, vector<192x32xbf16>, vector<16x32xf32> -> vector<16x32xf32>
    %c0_3 = arith.constant 0 : index
    %c0_4 = arith.constant 0 : index
    %3 = vector.load %arg2[%c0_3, %c0_4] : memref<16x32xf32, #tpu.memory_space<vmem>>, vector<16x32xf32>
    %4 = arith.addf %2, %3 : vector<16x32xf32>
    %c0_5 = arith.constant 0 : index
    %c0_6 = arith.constant 0 : index
    %5 = vector.load %arg4[%c0_5, %c0_6] : memref<1x32xf32, #tpu.memory_space<vmem>>, vector<1x32xf32>
    %c0_7 = arith.constant 0 : index
    %c0_8 = arith.constant 0 : index
    %6 = vector.load %arg5[%c0_7, %c0_8] : memref<1x32xf32, #tpu.memory_space<vmem>>, vector<1x32xf32>
    %cst_9 = arith.constant dense<0.000000e+00> : vector<16xf32>
    %7 = vector.multi_reduction <add>, %4, %cst_9 [1] : vector<16x32xf32> to vector<16xf32>
    %8 = vector.shape_cast %7 : vector<16xf32> to vector<16x1xf32>
    %cst_10 = arith.constant 3.200000e+01 : f32
    %9 = vector.broadcast %cst_10 : f32 to vector<16x1xf32>
    %10 = arith.divf %8, %9 : vector<16x1xf32>
    %11 = vector.broadcast %10 : vector<16x1xf32> to vector<16x32xf32>
    %12 = arith.subf %4, %11 : vector<16x32xf32>
    %13 = arith.mulf %12, %12 : vector<16x32xf32>
    %cst_11 = arith.constant dense<0.000000e+00> : vector<16xf32>
    %14 = vector.multi_reduction <add>, %13, %cst_11 [1] : vector<16x32xf32> to vector<16xf32>
    %15 = vector.shape_cast %14 : vector<16xf32> to vector<16x1xf32>
    %cst_12 = arith.constant 3.200000e+01 : f32
    %16 = vector.broadcast %cst_12 : f32 to vector<16x1xf32>
    %17 = arith.divf %15, %16 : vector<16x1xf32>
    %18 = vector.broadcast %10 : vector<16x1xf32> to vector<16x32xf32>
    %19 = arith.subf %4, %18 : vector<16x32xf32>
    %cst_13 = arith.constant 9.99999974E-6 : f32
    %20 = vector.broadcast %cst_13 : f32 to vector<16x1xf32>
    %21 = arith.addf %17, %20 : vector<16x1xf32>
    %22 = math.rsqrt %21 : vector<16x1xf32>
    %23 = vector.broadcast %22 : vector<16x1xf32> to vector<16x32xf32>
    %24 = arith.mulf %19, %23 : vector<16x32xf32>
    %25 = vector.broadcast %5 : vector<1x32xf32> to vector<16x32xf32>
    %26 = arith.mulf %24, %25 : vector<16x32xf32>
    %27 = vector.broadcast %6 : vector<1x32xf32> to vector<16x32xf32>
    %28 = arith.addf %26, %27 : vector<16x32xf32>
    %29 = tpu.iota {dimensions = array<i32: 1>} : vector<1x8xi32>
    %c5_i32 = arith.constant 5 : i32
    %30 = vector.broadcast %c5_i32 : i32 to vector<1x8xi32>
    %31 = arith.cmpi slt, %29, %30 : vector<1x8xi32>
    %cst_14 = arith.constant 0.000000e+00 : f32
    %cst_15 = arith.constant -1.000000e+30 : f32
    %32 = vector.broadcast %cst_14 : f32 to vector<1x8xf32>
    %33 = vector.broadcast %cst_15 : f32 to vector<1x8xf32>
    %34 = arith.select %31, %32, %33 : vector<1x8xi1>, vector<1x8xf32>
    %c0_16 = arith.constant 0 : index
    %c0_17 = arith.constant 0 : index
    %c0_18 = arith.constant 0 : index
    %35 = vector.load %arg6[%c0_16, %c0_17, %c0_18] : memref<2x1x32xf32, #tpu.memory_space<vmem>>, vector<1x1x32xf32>
    %36 = vector.shape_cast %35 : vector<1x1x32xf32> to vector<1x32xf32>
    %c0_19 = arith.constant 0 : index
    %c0_20 = arith.constant 0 : index
    %c0_21 = arith.constant 0 : index
    %37 = vector.load %arg7[%c0_19, %c0_20, %c0_21] : memref<2x1x32xf32, #tpu.memory_space<vmem>>, vector<1x1x32xf32>
    %38 = vector.shape_cast %37 : vector<1x1x32xf32> to vector<1x32xf32>
    %cst_22 = arith.constant dense<0.000000e+00> : vector<16xf32>
    %39 = vector.multi_reduction <add>, %28, %cst_22 [1] : vector<16x32xf32> to vector<16xf32>
    %40 = vector.shape_cast %39 : vector<16xf32> to vector<16x1xf32>
    %cst_23 = arith.constant 3.200000e+01 : f32
    %41 = vector.broadcast %cst_23 : f32 to vector<16x1xf32>
    %42 = arith.divf %40, %41 : vector<16x1xf32>
    %43 = vector.broadcast %42 : vector<16x1xf32> to vector<16x32xf32>
    %44 = arith.subf %28, %43 : vector<16x32xf32>
    %45 = arith.mulf %44, %44 : vector<16x32xf32>
    %cst_24 = arith.constant dense<0.000000e+00> : vector<16xf32>
    %46 = vector.multi_reduction <add>, %45, %cst_24 [1] : vector<16x32xf32> to vector<16xf32>
    %47 = vector.shape_cast %46 : vector<16xf32> to vector<16x1xf32>
    %cst_25 = arith.constant 3.200000e+01 : f32
    %48 = vector.broadcast %cst_25 : f32 to vector<16x1xf32>
    %49 = arith.divf %47, %48 : vector<16x1xf32>
    %50 = vector.broadcast %42 : vector<16x1xf32> to vector<16x32xf32>
    %51 = arith.subf %28, %50 : vector<16x32xf32>
    %cst_26 = arith.constant 9.99999974E-6 : f32
    %52 = vector.broadcast %cst_26 : f32 to vector<16x1xf32>
    %53 = arith.addf %49, %52 : vector<16x1xf32>
    %54 = math.rsqrt %53 : vector<16x1xf32>
    %55 = vector.broadcast %54 : vector<16x1xf32> to vector<16x32xf32>
    %56 = arith.mulf %51, %55 : vector<16x32xf32>
    %57 = vector.broadcast %36 : vector<1x32xf32> to vector<16x32xf32>
    %58 = arith.mulf %56, %57 : vector<16x32xf32>
    %59 = vector.broadcast %38 : vector<1x32xf32> to vector<16x32xf32>
    %60 = arith.addf %58, %59 : vector<16x32xf32>
    %61 = arith.truncf %60 : vector<16x32xf32> to vector<16x32xbf16>
    %cst_27 = arith.constant 0.000000e+00 : f32
    %62 = vector.broadcast %cst_27 : f32 to vector<16x32xf32>
    %c0_28 = arith.constant 0 : index
    %c0_29 = arith.constant 0 : index
    %c0_30 = arith.constant 0 : index
    %c0_31 = arith.constant 0 : index
    %63 = vector.load %arg8[%c0_28, %c0_29, %c0_30, %c0_31] : memref<2x4x32x8xbf16, #tpu.memory_space<vmem>>, vector<1x1x32x8xbf16>
    %64 = vector.shape_cast %63 : vector<1x1x32x8xbf16> to vector<32x8xbf16>
    %cst_32 = arith.constant dense<0.000000e+00> : vector<16x8xf32>
    %65 = tpu.matmul %61, %64, %cst_32 {dimension_numbers = #tpu.dot_dimension_numbers<[1], [0], [0], [1], [0, 0, 1, 1], [], []>} : vector<16x32xbf16>, vector<32x8xbf16>, vector<16x8xf32> -> vector<16x8xf32>
    %c0_33 = arith.constant 0 : index
    %c0_34 = arith.constant 0 : index
    %c0_35 = arith.constant 0 : index
    %c0_36 = arith.constant 0 : index
    %66 = vector.load %arg11[%c0_33, %c0_34, %c0_35, %c0_36] : memref<2x4x1x8xf32, #tpu.memory_space<vmem>>, vector<1x1x1x8xf32>
    %67 = vector.shape_cast %66 : vector<1x1x1x8xf32> to vector<1x8xf32>
    %68 = vector.broadcast %67 : vector<1x8xf32> to vector<16x8xf32>
    %69 = arith.addf %65, %68 : vector<16x8xf32>
    %c0_37 = arith.constant 0 : index
    %c0_38 = arith.constant 0 : index
    %c0_39 = arith.constant 0 : index
    %c0_40 = arith.constant 0 : index
    %70 = vector.load %arg9[%c0_37, %c0_38, %c0_39, %c0_40] : memref<2x4x32x8xbf16, #tpu.memory_space<vmem>>, vector<1x1x32x8xbf16>
    %71 = vector.shape_cast %70 : vector<1x1x32x8xbf16> to vector<32x8xbf16>
    %cst_41 = arith.constant dense<0.000000e+00> : vector<16x8xf32>
    %72 = tpu.matmul %61, %71, %cst_41 {dimension_numbers = #tpu.dot_dimension_numbers<[1], [0], [0], [1], [0, 0, 1, 1], [], []>} : vector<16x32xbf16>, vector<32x8xbf16>, vector<16x8xf32> -> vector<16x8xf32>
    %c0_42 = arith.constant 0 : index
    %c0_43 = arith.constant 0 : index
    %c0_44 = arith.constant 0 : index
    %c0_45 = arith.constant 0 : index
    %73 = vector.load %arg12[%c0_42, %c0_43, %c0_44, %c0_45] : memref<2x4x1x8xf32, #tpu.memory_space<vmem>>, vector<1x1x1x8xf32>
    %74 = vector.shape_cast %73 : vector<1x1x1x8xf32> to vector<1x8xf32>
    %75 = vector.broadcast %74 : vector<1x8xf32> to vector<16x8xf32>
    %76 = arith.addf %72, %75 : vector<16x8xf32>
    %c0_46 = arith.constant 0 : index
    %c0_47 = arith.constant 0 : index
    %c0_48 = arith.constant 0 : index
    %c0_49 = arith.constant 0 : index
    %77 = vector.load %arg10[%c0_46, %c0_47, %c0_48, %c0_49] : memref<2x4x32x8xbf16, #tpu.memory_space<vmem>>, vector<1x1x32x8xbf16>
    %78 = vector.shape_cast %77 : vector<1x1x32x8xbf16> to vector<32x8xbf16>
    %cst_50 = arith.constant dense<0.000000e+00> : vector<16x8xf32>
    %79 = tpu.matmul %61, %78, %cst_50 {dimension_numbers = #tpu.dot_dimension_numbers<[1], [0], [0], [1], [0, 0, 1, 1], [], []>} : vector<16x32xbf16>, vector<32x8xbf16>, vector<16x8xf32> -> vector<16x8xf32>
    %c0_51 = arith.constant 0 : index
    %c0_52 = arith.constant 0 : index
    %c0_53 = arith.constant 0 : index
    %c0_54 = arith.constant 0 : index
    %80 = vector.load %arg13[%c0_51, %c0_52, %c0_53, %c0_54] : memref<2x4x1x8xf32, #tpu.memory_space<vmem>>, vector<1x1x1x8xf32>
    %81 = vector.shape_cast %80 : vector<1x1x1x8xf32> to vector<1x8xf32>
    %82 = vector.broadcast %81 : vector<1x8xf32> to vector<16x8xf32>
    %83 = arith.addf %79, %82 : vector<16x8xf32>
    %84 = vector.shape_cast %69 : vector<16x8xf32> to vector<2x8x8xf32>
    %85 = arith.truncf %84 : vector<2x8x8xf32> to vector<2x8x8xbf16>
    %86 = vector.shape_cast %76 : vector<16x8xf32> to vector<2x8x8xf32>
    %87 = arith.truncf %86 : vector<2x8x8xf32> to vector<2x8x8xbf16>
    %88 = vector.shape_cast %83 : vector<16x8xf32> to vector<2x8x8xf32>
    %89 = arith.truncf %88 : vector<2x8x8xf32> to vector<2x8x8xbf16>
    "tpu.trace_start"() <{level = 10 : i32, message = "bqd,bkd->bqk"}> : () -> ()
    %cst_55 = arith.constant dense<0.000000e+00> : vector<2x8x8xf32>
    %90 = tpu.matmul %85, %87, %cst_55 {dimension_numbers = #tpu.dot_dimension_numbers<[2], [2], [1], [1], [0, 0, 0, 1, 1, 1], [0], [0]>} : vector<2x8x8xbf16>, vector<2x8x8xbf16>, vector<2x8x8xf32> -> vector<2x8x8xf32>
    "tpu.trace_stop"() : () -> ()
    %91 = vector.shape_cast %34 : vector<1x8xf32> to vector<1x1x8xf32>
    %92 = vector.broadcast %91 : vector<1x1x8xf32> to vector<2x8x8xf32>
    %93 = arith.addf %90, %92 : vector<2x8x8xf32>
    %cst_56 = arith.constant dense<0xFF800000> : vector<2x8xf32>
    %94 = vector.multi_reduction <maximumf>, %93, %cst_56 [2] : vector<2x8x8xf32> to vector<2x8xf32>
    %95 = vector.shape_cast %94 : vector<2x8xf32> to vector<2x8x1xf32>
    %96 = vector.broadcast %95 : vector<2x8x1xf32> to vector<2x8x8xf32>
    %97 = arith.subf %93, %96 : vector<2x8x8xf32>
    %98 = math.exp %97 : vector<2x8x8xf32>
    %cst_57 = arith.constant dense<0.000000e+00> : vector<2x8xf32>
    %99 = vector.multi_reduction <add>, %98, %cst_57 [2] : vector<2x8x8xf32> to vector<2x8xf32>
    %100 = vector.shape_cast %99 : vector<2x8xf32> to vector<2x8x1xf32>
    %101 = tpu.reciprocal %100 {approx = true} : vector<2x8x1xf32> -> vector<2x8x1xf32>
    %102 = vector.broadcast %101 : vector<2x8x1xf32> to vector<2x8x8xf32>
    %103 = arith.mulf %98, %102 : vector<2x8x8xf32>
    %104 = arith.truncf %103 : vector<2x8x8xf32> to vector<2x8x8xbf16>
    "tpu.trace_start"() <{level = 10 : i32, message = "bqk,bkd->bqd"}> : () -> ()
    %cst_58 = arith.constant dense<0.000000e+00> : vector<2x8x8xf32>
    %105 = tpu.matmul %104, %89, %cst_58 {dimension_numbers = #tpu.dot_dimension_numbers<[2], [1], [1], [2], [0, 0, 0, 1, 1, 2], [0], [0]>} : vector<2x8x8xbf16>, vector<2x8x8xbf16>, vector<2x8x8xf32> -> vector<2x8x8xf32>
    "tpu.trace_stop"() : () -> ()
    %106 = vector.shape_cast %105 : vector<2x8x8xf32> to vector<16x8xf32>
    %107 = arith.truncf %106 : vector<16x8xf32> to vector<16x8xbf16>
    %c0_59 = arith.constant 0 : index
    %c0_60 = arith.constant 0 : index
    %c0_61 = arith.constant 0 : index
    %c0_62 = arith.constant 0 : index
    %108 = vector.load %arg14[%c0_59, %c0_60, %c0_61, %c0_62] : memref<2x4x8x32xbf16, #tpu.memory_space<vmem>>, vector<1x1x8x32xbf16>
    %109 = vector.shape_cast %108 : vector<1x1x8x32xbf16> to vector<8x32xbf16>
    %cst_63 = arith.constant dense<0.000000e+00> : vector<16x32xf32>
    %110 = tpu.matmul %107, %109, %cst_63 {dimension_numbers = #tpu.dot_dimension_numbers<[1], [0], [0], [1], [0, 0, 1, 1], [], []>} : vector<16x8xbf16>, vector<8x32xbf16>, vector<16x32xf32> -> vector<16x32xf32>
    %111 = arith.addf %62, %110 : vector<16x32xf32>
    %c0_64 = arith.constant 0 : index
    %c1 = arith.constant 1 : index
    %c0_65 = arith.constant 0 : index
    %c0_66 = arith.constant 0 : index
    %112 = vector.load %arg8[%c0_64, %c1, %c0_65, %c0_66] : memref<2x4x32x8xbf16, #tpu.memory_space<vmem>>, vector<1x1x32x8xbf16>
    %113 = vector.shape_cast %112 : vector<1x1x32x8xbf16> to vector<32x8xbf16>
    %cst_67 = arith.constant dense<0.000000e+00> : vector<16x8xf32>
    %114 = tpu.matmul %61, %113, %cst_67 {dimension_numbers = #tpu.dot_dimension_numbers<[1], [0], [0], [1], [0, 0, 1, 1], [], []>} : vector<16x32xbf16>, vector<32x8xbf16>, vector<16x8xf32> -> vector<16x8xf32>
    %c0_68 = arith.constant 0 : index
    %c1_69 = arith.constant 1 : index
    %c0_70 = arith.constant 0 : index
    %c0_71 = arith.constant 0 : index
    %115 = vector.load %arg11[%c0_68, %c1_69, %c0_70, %c0_71] : memref<2x4x1x8xf32, #tpu.memory_space<vmem>>, vector<1x1x1x8xf32>
    %116 = vector.shape_cast %115 : vector<1x1x1x8xf32> to vector<1x8xf32>
    %117 = vector.broadcast %116 : vector<1x8xf32> to vector<16x8xf32>
    %118 = arith.addf %114, %117 : vector<16x8xf32>
    %c0_72 = arith.constant 0 : index
    %c1_73 = arith.constant 1 : index
    %c0_74 = arith.constant 0 : index
    %c0_75 = arith.constant 0 : index
    %119 = vector.load %arg9[%c0_72, %c1_73, %c0_74, %c0_75] : memref<2x4x32x8xbf16, #tpu.memory_space<vmem>>, vector<1x1x32x8xbf16>
    %120 = vector.shape_cast %119 : vector<1x1x32x8xbf16> to vector<32x8xbf16>
    %cst_76 = arith.constant dense<0.000000e+00> : vector<16x8xf32>
    %121 = tpu.matmul %61, %120, %cst_76 {dimension_numbers = #tpu.dot_dimension_numbers<[1], [0], [0], [1], [0, 0, 1, 1], [], []>} : vector<16x32xbf16>, vector<32x8xbf16>, vector<16x8xf32> -> vector<16x8xf32>
    %c0_77 = arith.constant 0 : index
    %c1_78 = arith.constant 1 : index
    %c0_79 = arith.constant 0 : index
    %c0_80 = arith.constant 0 : index
    %122 = vector.load %arg12[%c0_77, %c1_78, %c0_79, %c0_80] : memref<2x4x1x8xf32, #tpu.memory_space<vmem>>, vector<1x1x1x8xf32>
    %123 = vector.shape_cast %122 : vector<1x1x1x8xf32> to vector<1x8xf32>
    %124 = vector.broadcast %123 : vector<1x8xf32> to vector<16x8xf32>
    %125 = arith.addf %121, %124 : vector<16x8xf32>
    %c0_81 = arith.constant 0 : index
    %c1_82 = arith.constant 1 : index
    %c0_83 = arith.constant 0 : index
    %c0_84 = arith.constant 0 : index
    %126 = vector.load %arg10[%c0_81, %c1_82, %c0_83, %c0_84] : memref<2x4x32x8xbf16, #tpu.memory_space<vmem>>, vector<1x1x32x8xbf16>
    %127 = vector.shape_cast %126 : vector<1x1x32x8xbf16> to vector<32x8xbf16>
    %cst_85 = arith.constant dense<0.000000e+00> : vector<16x8xf32>
    %128 = tpu.matmul %61, %127, %cst_85 {dimension_numbers = #tpu.dot_dimension_numbers<[1], [0], [0], [1], [0, 0, 1, 1], [], []>} : vector<16x32xbf16>, vector<32x8xbf16>, vector<16x8xf32> -> vector<16x8xf32>
    %c0_86 = arith.constant 0 : index
    %c1_87 = arith.constant 1 : index
    %c0_88 = arith.constant 0 : index
    %c0_89 = arith.constant 0 : index
    %129 = vector.load %arg13[%c0_86, %c1_87, %c0_88, %c0_89] : memref<2x4x1x8xf32, #tpu.memory_space<vmem>>, vector<1x1x1x8xf32>
    %130 = vector.shape_cast %129 : vector<1x1x1x8xf32> to vector<1x8xf32>
    %131 = vector.broadcast %130 : vector<1x8xf32> to vector<16x8xf32>
    %132 = arith.addf %128, %131 : vector<16x8xf32>
    %133 = vector.shape_cast %118 : vector<16x8xf32> to vector<2x8x8xf32>
    %134 = arith.truncf %133 : vector<2x8x8xf32> to vector<2x8x8xbf16>
    %135 = vector.shape_cast %125 : vector<16x8xf32> to vector<2x8x8xf32>
    %136 = arith.truncf %135 : vector<2x8x8xf32> to vector<2x8x8xbf16>
    %137 = vector.shape_cast %132 : vector<16x8xf32> to vector<2x8x8xf32>
    %138 = arith.truncf %137 : vector<2x8x8xf32> to vector<2x8x8xbf16>
    "tpu.trace_start"() <{level = 10 : i32, message = "bqd,bkd->bqk"}> : () -> ()
    %cst_90 = arith.constant dense<0.000000e+00> : vector<2x8x8xf32>
    %139 = tpu.matmul %134, %136, %cst_90 {dimension_numbers = #tpu.dot_dimension_numbers<[2], [2], [1], [1], [0, 0, 0, 1, 1, 1], [0], [0]>} : vector<2x8x8xbf16>, vector<2x8x8xbf16>, vector<2x8x8xf32> -> vector<2x8x8xf32>
    "tpu.trace_stop"() : () -> ()
    %140 = vector.shape_cast %34 : vector<1x8xf32> to vector<1x1x8xf32>
    %141 = vector.broadcast %140 : vector<1x1x8xf32> to vector<2x8x8xf32>
    %142 = arith.addf %139, %141 : vector<2x8x8xf32>
    %cst_91 = arith.constant dense<0xFF800000> : vector<2x8xf32>
    %143 = vector.multi_reduction <maximumf>, %142, %cst_91 [2] : vector<2x8x8xf32> to vector<2x8xf32>
    %144 = vector.shape_cast %143 : vector<2x8xf32> to vector<2x8x1xf32>
    %145 = vector.broadcast %144 : vector<2x8x1xf32> to vector<2x8x8xf32>
    %146 = arith.subf %142, %145 : vector<2x8x8xf32>
    %147 = math.exp %146 : vector<2x8x8xf32>
    %cst_92 = arith.constant dense<0.000000e+00> : vector<2x8xf32>
    %148 = vector.multi_reduction <add>, %147, %cst_92 [2] : vector<2x8x8xf32> to vector<2x8xf32>
    %149 = vector.shape_cast %148 : vector<2x8xf32> to vector<2x8x1xf32>
    %150 = tpu.reciprocal %149 {approx = true} : vector<2x8x1xf32> -> vector<2x8x1xf32>
    %151 = vector.broadcast %150 : vector<2x8x1xf32> to vector<2x8x8xf32>
    %152 = arith.mulf %147, %151 : vector<2x8x8xf32>
    %153 = arith.truncf %152 : vector<2x8x8xf32> to vector<2x8x8xbf16>
    "tpu.trace_start"() <{level = 10 : i32, message = "bqk,bkd->bqd"}> : () -> ()
    %cst_93 = arith.constant dense<0.000000e+00> : vector<2x8x8xf32>
    %154 = tpu.matmul %153, %138, %cst_93 {dimension_numbers = #tpu.dot_dimension_numbers<[2], [1], [1], [2], [0, 0, 0, 1, 1, 2], [0], [0]>} : vector<2x8x8xbf16>, vector<2x8x8xbf16>, vector<2x8x8xf32> -> vector<2x8x8xf32>
    "tpu.trace_stop"() : () -> ()
    %155 = vector.shape_cast %154 : vector<2x8x8xf32> to vector<16x8xf32>
    %156 = arith.truncf %155 : vector<16x8xf32> to vector<16x8xbf16>
    %c0_94 = arith.constant 0 : index
    %c1_95 = arith.constant 1 : index
    %c0_96 = arith.constant 0 : index
    %c0_97 = arith.constant 0 : index
    %157 = vector.load %arg14[%c0_94, %c1_95, %c0_96, %c0_97] : memref<2x4x8x32xbf16, #tpu.memory_space<vmem>>, vector<1x1x8x32xbf16>
    %158 = vector.shape_cast %157 : vector<1x1x8x32xbf16> to vector<8x32xbf16>
    %cst_98 = arith.constant dense<0.000000e+00> : vector<16x32xf32>
    %159 = tpu.matmul %156, %158, %cst_98 {dimension_numbers = #tpu.dot_dimension_numbers<[1], [0], [0], [1], [0, 0, 1, 1], [], []>} : vector<16x8xbf16>, vector<8x32xbf16>, vector<16x32xf32> -> vector<16x32xf32>
    %160 = arith.addf %111, %159 : vector<16x32xf32>
    %c0_99 = arith.constant 0 : index
    %c2 = arith.constant 2 : index
    %c0_100 = arith.constant 0 : index
    %c0_101 = arith.constant 0 : index
    %161 = vector.load %arg8[%c0_99, %c2, %c0_100, %c0_101] : memref<2x4x32x8xbf16, #tpu.memory_space<vmem>>, vector<1x1x32x8xbf16>
    %162 = vector.shape_cast %161 : vector<1x1x32x8xbf16> to vector<32x8xbf16>
    %cst_102 = arith.constant dense<0.000000e+00> : vector<16x8xf32>
    %163 = tpu.matmul %61, %162, %cst_102 {dimension_numbers = #tpu.dot_dimension_numbers<[1], [0], [0], [1], [0, 0, 1, 1], [], []>} : vector<16x32xbf16>, vector<32x8xbf16>, vector<16x8xf32> -> vector<16x8xf32>
    %c0_103 = arith.constant 0 : index
    %c2_104 = arith.constant 2 : index
    %c0_105 = arith.constant 0 : index
    %c0_106 = arith.constant 0 : index
    %164 = vector.load %arg11[%c0_103, %c2_104, %c0_105, %c0_106] : memref<2x4x1x8xf32, #tpu.memory_space<vmem>>, vector<1x1x1x8xf32>
    %165 = vector.shape_cast %164 : vector<1x1x1x8xf32> to vector<1x8xf32>
    %166 = vector.broadcast %165 : vector<1x8xf32> to vector<16x8xf32>
    %167 = arith.addf %163, %166 : vector<16x8xf32>
    %c0_107 = arith.constant 0 : index
    %c2_108 = arith.constant 2 : index
    %c0_109 = arith.constant 0 : index
    %c0_110 = arith.constant 0 : index
    %168 = vector.load %arg9[%c0_107, %c2_108, %c0_109, %c0_110] : memref<2x4x32x8xbf16, #tpu.memory_space<vmem>>, vector<1x1x32x8xbf16>
    %169 = vector.shape_cast %168 : vector<1x1x32x8xbf16> to vector<32x8xbf16>
    %cst_111 = arith.constant dense<0.000000e+00> : vector<16x8xf32>
    %170 = tpu.matmul %61, %169, %cst_111 {dimension_numbers = #tpu.dot_dimension_numbers<[1], [0], [0], [1], [0, 0, 1, 1], [], []>} : vector<16x32xbf16>, vector<32x8xbf16>, vector<16x8xf32> -> vector<16x8xf32>
    %c0_112 = arith.constant 0 : index
    %c2_113 = arith.constant 2 : index
    %c0_114 = arith.constant 0 : index
    %c0_115 = arith.constant 0 : index
    %171 = vector.load %arg12[%c0_112, %c2_113, %c0_114, %c0_115] : memref<2x4x1x8xf32, #tpu.memory_space<vmem>>, vector<1x1x1x8xf32>
    %172 = vector.shape_cast %171 : vector<1x1x1x8xf32> to vector<1x8xf32>
    %173 = vector.broadcast %172 : vector<1x8xf32> to vector<16x8xf32>
    %174 = arith.addf %170, %173 : vector<16x8xf32>
    %c0_116 = arith.constant 0 : index
    %c2_117 = arith.constant 2 : index
    %c0_118 = arith.constant 0 : index
    %c0_119 = arith.constant 0 : index
    %175 = vector.load %arg10[%c0_116, %c2_117, %c0_118, %c0_119] : memref<2x4x32x8xbf16, #tpu.memory_space<vmem>>, vector<1x1x32x8xbf16>
    %176 = vector.shape_cast %175 : vector<1x1x32x8xbf16> to vector<32x8xbf16>
    %cst_120 = arith.constant dense<0.000000e+00> : vector<16x8xf32>
    %177 = tpu.matmul %61, %176, %cst_120 {dimension_numbers = #tpu.dot_dimension_numbers<[1], [0], [0], [1], [0, 0, 1, 1], [], []>} : vector<16x32xbf16>, vector<32x8xbf16>, vector<16x8xf32> -> vector<16x8xf32>
    %c0_121 = arith.constant 0 : index
    %c2_122 = arith.constant 2 : index
    %c0_123 = arith.constant 0 : index
    %c0_124 = arith.constant 0 : index
    %178 = vector.load %arg13[%c0_121, %c2_122, %c0_123, %c0_124] : memref<2x4x1x8xf32, #tpu.memory_space<vmem>>, vector<1x1x1x8xf32>
    %179 = vector.shape_cast %178 : vector<1x1x1x8xf32> to vector<1x8xf32>
    %180 = vector.broadcast %179 : vector<1x8xf32> to vector<16x8xf32>
    %181 = arith.addf %177, %180 : vector<16x8xf32>
    %182 = vector.shape_cast %167 : vector<16x8xf32> to vector<2x8x8xf32>
    %183 = arith.truncf %182 : vector<2x8x8xf32> to vector<2x8x8xbf16>
    %184 = vector.shape_cast %174 : vector<16x8xf32> to vector<2x8x8xf32>
    %185 = arith.truncf %184 : vector<2x8x8xf32> to vector<2x8x8xbf16>
    %186 = vector.shape_cast %181 : vector<16x8xf32> to vector<2x8x8xf32>
    %187 = arith.truncf %186 : vector<2x8x8xf32> to vector<2x8x8xbf16>
    "tpu.trace_start"() <{level = 10 : i32, message = "bqd,bkd->bqk"}> : () -> ()
    %cst_125 = arith.constant dense<0.000000e+00> : vector<2x8x8xf32>
    %188 = tpu.matmul %183, %185, %cst_125 {dimension_numbers = #tpu.dot_dimension_numbers<[2], [2], [1], [1], [0, 0, 0, 1, 1, 1], [0], [0]>} : vector<2x8x8xbf16>, vector<2x8x8xbf16>, vector<2x8x8xf32> -> vector<2x8x8xf32>
    "tpu.trace_stop"() : () -> ()
    %189 = vector.shape_cast %34 : vector<1x8xf32> to vector<1x1x8xf32>
    %190 = vector.broadcast %189 : vector<1x1x8xf32> to vector<2x8x8xf32>
    %191 = arith.addf %188, %190 : vector<2x8x8xf32>
    %cst_126 = arith.constant dense<0xFF800000> : vector<2x8xf32>
    %192 = vector.multi_reduction <maximumf>, %191, %cst_126 [2] : vector<2x8x8xf32> to vector<2x8xf32>
    %193 = vector.shape_cast %192 : vector<2x8xf32> to vector<2x8x1xf32>
    %194 = vector.broadcast %193 : vector<2x8x1xf32> to vector<2x8x8xf32>
    %195 = arith.subf %191, %194 : vector<2x8x8xf32>
    %196 = math.exp %195 : vector<2x8x8xf32>
    %cst_127 = arith.constant dense<0.000000e+00> : vector<2x8xf32>
    %197 = vector.multi_reduction <add>, %196, %cst_127 [2] : vector<2x8x8xf32> to vector<2x8xf32>
    %198 = vector.shape_cast %197 : vector<2x8xf32> to vector<2x8x1xf32>
    %199 = tpu.reciprocal %198 {approx = true} : vector<2x8x1xf32> -> vector<2x8x1xf32>
    %200 = vector.broadcast %199 : vector<2x8x1xf32> to vector<2x8x8xf32>
    %201 = arith.mulf %196, %200 : vector<2x8x8xf32>
    %202 = arith.truncf %201 : vector<2x8x8xf32> to vector<2x8x8xbf16>
    "tpu.trace_start"() <{level = 10 : i32, message = "bqk,bkd->bqd"}> : () -> ()
    %cst_128 = arith.constant dense<0.000000e+00> : vector<2x8x8xf32>
    %203 = tpu.matmul %202, %187, %cst_128 {dimension_numbers = #tpu.dot_dimension_numbers<[2], [1], [1], [2], [0, 0, 0, 1, 1, 2], [0], [0]>} : vector<2x8x8xbf16>, vector<2x8x8xbf16>, vector<2x8x8xf32> -> vector<2x8x8xf32>
    "tpu.trace_stop"() : () -> ()
    %204 = vector.shape_cast %203 : vector<2x8x8xf32> to vector<16x8xf32>
    %205 = arith.truncf %204 : vector<16x8xf32> to vector<16x8xbf16>
    %c0_129 = arith.constant 0 : index
    %c2_130 = arith.constant 2 : index
    %c0_131 = arith.constant 0 : index
    %c0_132 = arith.constant 0 : index
    %206 = vector.load %arg14[%c0_129, %c2_130, %c0_131, %c0_132] : memref<2x4x8x32xbf16, #tpu.memory_space<vmem>>, vector<1x1x8x32xbf16>
    %207 = vector.shape_cast %206 : vector<1x1x8x32xbf16> to vector<8x32xbf16>
    %cst_133 = arith.constant dense<0.000000e+00> : vector<16x32xf32>
    %208 = tpu.matmul %205, %207, %cst_133 {dimension_numbers = #tpu.dot_dimension_numbers<[1], [0], [0], [1], [0, 0, 1, 1], [], []>} : vector<16x8xbf16>, vector<8x32xbf16>, vector<16x32xf32> -> vector<16x32xf32>
    %209 = arith.addf %160, %208 : vector<16x32xf32>
    %c0_134 = arith.constant 0 : index
    %c3 = arith.constant 3 : index
    %c0_135 = arith.constant 0 : index
    %c0_136 = arith.constant 0 : index
    %210 = vector.load %arg8[%c0_134, %c3, %c0_135, %c0_136] : memref<2x4x32x8xbf16, #tpu.memory_space<vmem>>, vector<1x1x32x8xbf16>
    %211 = vector.shape_cast %210 : vector<1x1x32x8xbf16> to vector<32x8xbf16>
    %cst_137 = arith.constant dense<0.000000e+00> : vector<16x8xf32>
    %212 = tpu.matmul %61, %211, %cst_137 {dimension_numbers = #tpu.dot_dimension_numbers<[1], [0], [0], [1], [0, 0, 1, 1], [], []>} : vector<16x32xbf16>, vector<32x8xbf16>, vector<16x8xf32> -> vector<16x8xf32>
    %c0_138 = arith.constant 0 : index
    %c3_139 = arith.constant 3 : index
    %c0_140 = arith.constant 0 : index
    %c0_141 = arith.constant 0 : index
    %213 = vector.load %arg11[%c0_138, %c3_139, %c0_140, %c0_141] : memref<2x4x1x8xf32, #tpu.memory_space<vmem>>, vector<1x1x1x8xf32>
    %214 = vector.shape_cast %213 : vector<1x1x1x8xf32> to vector<1x8xf32>
    %215 = vector.broadcast %214 : vector<1x8xf32> to vector<16x8xf32>
    %216 = arith.addf %212, %215 : vector<16x8xf32>
    %c0_142 = arith.constant 0 : index
    %c3_143 = arith.constant 3 : index
    %c0_144 = arith.constant 0 : index
    %c0_145 = arith.constant 0 : index
    %217 = vector.load %arg9[%c0_142, %c3_143, %c0_144, %c0_145] : memref<2x4x32x8xbf16, #tpu.memory_space<vmem>>, vector<1x1x32x8xbf16>
    %218 = vector.shape_cast %217 : vector<1x1x32x8xbf16> to vector<32x8xbf16>
    %cst_146 = arith.constant dense<0.000000e+00> : vector<16x8xf32>
    %219 = tpu.matmul %61, %218, %cst_146 {dimension_numbers = #tpu.dot_dimension_numbers<[1], [0], [0], [1], [0, 0, 1, 1], [], []>} : vector<16x32xbf16>, vector<32x8xbf16>, vector<16x8xf32> -> vector<16x8xf32>
    %c0_147 = arith.constant 0 : index
    %c3_148 = arith.constant 3 : index
    %c0_149 = arith.constant 0 : index
    %c0_150 = arith.constant 0 : index
    %220 = vector.load %arg12[%c0_147, %c3_148, %c0_149, %c0_150] : memref<2x4x1x8xf32, #tpu.memory_space<vmem>>, vector<1x1x1x8xf32>
    %221 = vector.shape_cast %220 : vector<1x1x1x8xf32> to vector<1x8xf32>
    %222 = vector.broadcast %221 : vector<1x8xf32> to vector<16x8xf32>
    %223 = arith.addf %219, %222 : vector<16x8xf32>
    %c0_151 = arith.constant 0 : index
    %c3_152 = arith.constant 3 : index
    %c0_153 = arith.constant 0 : index
    %c0_154 = arith.constant 0 : index
    %224 = vector.load %arg10[%c0_151, %c3_152, %c0_153, %c0_154] : memref<2x4x32x8xbf16, #tpu.memory_space<vmem>>, vector<1x1x32x8xbf16>
    %225 = vector.shape_cast %224 : vector<1x1x32x8xbf16> to vector<32x8xbf16>
    %cst_155 = arith.constant dense<0.000000e+00> : vector<16x8xf32>
    %226 = tpu.matmul %61, %225, %cst_155 {dimension_numbers = #tpu.dot_dimension_numbers<[1], [0], [0], [1], [0, 0, 1, 1], [], []>} : vector<16x32xbf16>, vector<32x8xbf16>, vector<16x8xf32> -> vector<16x8xf32>
    %c0_156 = arith.constant 0 : index
    %c3_157 = arith.constant 3 : index
    %c0_158 = arith.constant 0 : index
    %c0_159 = arith.constant 0 : index
    %227 = vector.load %arg13[%c0_156, %c3_157, %c0_158, %c0_159] : memref<2x4x1x8xf32, #tpu.memory_space<vmem>>, vector<1x1x1x8xf32>
    %228 = vector.shape_cast %227 : vector<1x1x1x8xf32> to vector<1x8xf32>
    %229 = vector.broadcast %228 : vector<1x8xf32> to vector<16x8xf32>
    %230 = arith.addf %226, %229 : vector<16x8xf32>
    %231 = vector.shape_cast %216 : vector<16x8xf32> to vector<2x8x8xf32>
    %232 = arith.truncf %231 : vector<2x8x8xf32> to vector<2x8x8xbf16>
    %233 = vector.shape_cast %223 : vector<16x8xf32> to vector<2x8x8xf32>
    %234 = arith.truncf %233 : vector<2x8x8xf32> to vector<2x8x8xbf16>
    %235 = vector.shape_cast %230 : vector<16x8xf32> to vector<2x8x8xf32>
    %236 = arith.truncf %235 : vector<2x8x8xf32> to vector<2x8x8xbf16>
    "tpu.trace_start"() <{level = 10 : i32, message = "bqd,bkd->bqk"}> : () -> ()
    %cst_160 = arith.constant dense<0.000000e+00> : vector<2x8x8xf32>
    %237 = tpu.matmul %232, %234, %cst_160 {dimension_numbers = #tpu.dot_dimension_numbers<[2], [2], [1], [1], [0, 0, 0, 1, 1, 1], [0], [0]>} : vector<2x8x8xbf16>, vector<2x8x8xbf16>, vector<2x8x8xf32> -> vector<2x8x8xf32>
    "tpu.trace_stop"() : () -> ()
    %238 = vector.shape_cast %34 : vector<1x8xf32> to vector<1x1x8xf32>
    %239 = vector.broadcast %238 : vector<1x1x8xf32> to vector<2x8x8xf32>
    %240 = arith.addf %237, %239 : vector<2x8x8xf32>
    %cst_161 = arith.constant dense<0xFF800000> : vector<2x8xf32>
    %241 = vector.multi_reduction <maximumf>, %240, %cst_161 [2] : vector<2x8x8xf32> to vector<2x8xf32>
    %242 = vector.shape_cast %241 : vector<2x8xf32> to vector<2x8x1xf32>
    %243 = vector.broadcast %242 : vector<2x8x1xf32> to vector<2x8x8xf32>
    %244 = arith.subf %240, %243 : vector<2x8x8xf32>
    %245 = math.exp %244 : vector<2x8x8xf32>
    %cst_162 = arith.constant dense<0.000000e+00> : vector<2x8xf32>
    %246 = vector.multi_reduction <add>, %245, %cst_162 [2] : vector<2x8x8xf32> to vector<2x8xf32>
    %247 = vector.shape_cast %246 : vector<2x8xf32> to vector<2x8x1xf32>
    %248 = tpu.reciprocal %247 {approx = true} : vector<2x8x1xf32> -> vector<2x8x1xf32>
    %249 = vector.broadcast %248 : vector<2x8x1xf32> to vector<2x8x8xf32>
    %250 = arith.mulf %245, %249 : vector<2x8x8xf32>
    %251 = arith.truncf %250 : vector<2x8x8xf32> to vector<2x8x8xbf16>
    "tpu.trace_start"() <{level = 10 : i32, message = "bqk,bkd->bqd"}> : () -> ()
    %cst_163 = arith.constant dense<0.000000e+00> : vector<2x8x8xf32>
    %252 = tpu.matmul %251, %236, %cst_163 {dimension_numbers = #tpu.dot_dimension_numbers<[2], [1], [1], [2], [0, 0, 0, 1, 1, 2], [0], [0]>} : vector<2x8x8xbf16>, vector<2x8x8xbf16>, vector<2x8x8xf32> -> vector<2x8x8xf32>
    "tpu.trace_stop"() : () -> ()
    %253 = vector.shape_cast %252 : vector<2x8x8xf32> to vector<16x8xf32>
    %254 = arith.truncf %253 : vector<16x8xf32> to vector<16x8xbf16>
    %c0_164 = arith.constant 0 : index
    %c3_165 = arith.constant 3 : index
    %c0_166 = arith.constant 0 : index
    %c0_167 = arith.constant 0 : index
    %255 = vector.load %arg14[%c0_164, %c3_165, %c0_166, %c0_167] : memref<2x4x8x32xbf16, #tpu.memory_space<vmem>>, vector<1x1x8x32xbf16>
    %256 = vector.shape_cast %255 : vector<1x1x8x32xbf16> to vector<8x32xbf16>
    %cst_168 = arith.constant dense<0.000000e+00> : vector<16x32xf32>
    %257 = tpu.matmul %254, %256, %cst_168 {dimension_numbers = #tpu.dot_dimension_numbers<[1], [0], [0], [1], [0, 0, 1, 1], [], []>} : vector<16x8xbf16>, vector<8x32xbf16>, vector<16x32xf32> -> vector<16x32xf32>
    %258 = arith.addf %209, %257 : vector<16x32xf32>
    %259 = arith.addf %28, %258 : vector<16x32xf32>
    %c0_169 = arith.constant 0 : index
    %c0_170 = arith.constant 0 : index
    %c0_171 = arith.constant 0 : index
    %260 = vector.load %arg15[%c0_169, %c0_170, %c0_171] : memref<2x1x32xf32, #tpu.memory_space<vmem>>, vector<1x1x32xf32>
    %261 = vector.shape_cast %260 : vector<1x1x32xf32> to vector<1x32xf32>
    %262 = vector.broadcast %261 : vector<1x32xf32> to vector<16x32xf32>
    %263 = arith.addf %259, %262 : vector<16x32xf32>
    %c0_172 = arith.constant 0 : index
    %c0_173 = arith.constant 0 : index
    %c0_174 = arith.constant 0 : index
    %264 = vector.load %arg16[%c0_172, %c0_173, %c0_174] : memref<2x1x32xf32, #tpu.memory_space<vmem>>, vector<1x1x32xf32>
    %265 = vector.shape_cast %264 : vector<1x1x32xf32> to vector<1x32xf32>
    %c0_175 = arith.constant 0 : index
    %c0_176 = arith.constant 0 : index
    %c0_177 = arith.constant 0 : index
    %266 = vector.load %arg17[%c0_175, %c0_176, %c0_177] : memref<2x1x32xf32, #tpu.memory_space<vmem>>, vector<1x1x32xf32>
    %267 = vector.shape_cast %266 : vector<1x1x32xf32> to vector<1x32xf32>
    %cst_178 = arith.constant dense<0.000000e+00> : vector<16xf32>
    %268 = vector.multi_reduction <add>, %263, %cst_178 [1] : vector<16x32xf32> to vector<16xf32>
    %269 = vector.shape_cast %268 : vector<16xf32> to vector<16x1xf32>
    %cst_179 = arith.constant 3.200000e+01 : f32
    %270 = vector.broadcast %cst_179 : f32 to vector<16x1xf32>
    %271 = arith.divf %269, %270 : vector<16x1xf32>
    %272 = vector.broadcast %271 : vector<16x1xf32> to vector<16x32xf32>
    %273 = arith.subf %263, %272 : vector<16x32xf32>
    %274 = arith.mulf %273, %273 : vector<16x32xf32>
    %cst_180 = arith.constant dense<0.000000e+00> : vector<16xf32>
    %275 = vector.multi_reduction <add>, %274, %cst_180 [1] : vector<16x32xf32> to vector<16xf32>
    %276 = vector.shape_cast %275 : vector<16xf32> to vector<16x1xf32>
    %cst_181 = arith.constant 3.200000e+01 : f32
    %277 = vector.broadcast %cst_181 : f32 to vector<16x1xf32>
    %278 = arith.divf %276, %277 : vector<16x1xf32>
    %279 = vector.broadcast %271 : vector<16x1xf32> to vector<16x32xf32>
    %280 = arith.subf %263, %279 : vector<16x32xf32>
    %cst_182 = arith.constant 9.99999974E-6 : f32
    %281 = vector.broadcast %cst_182 : f32 to vector<16x1xf32>
    %282 = arith.addf %278, %281 : vector<16x1xf32>
    %283 = math.rsqrt %282 : vector<16x1xf32>
    %284 = vector.broadcast %283 : vector<16x1xf32> to vector<16x32xf32>
    %285 = arith.mulf %280, %284 : vector<16x32xf32>
    %286 = vector.broadcast %265 : vector<1x32xf32> to vector<16x32xf32>
    %287 = arith.mulf %285, %286 : vector<16x32xf32>
    %288 = vector.broadcast %267 : vector<1x32xf32> to vector<16x32xf32>
    %289 = arith.addf %287, %288 : vector<16x32xf32>
    %290 = arith.truncf %289 : vector<16x32xf32> to vector<16x32xbf16>
    %c0_183 = arith.constant 0 : index
    %c0_184 = arith.constant 0 : index
    %c0_185 = arith.constant 0 : index
    %291 = vector.load %arg18[%c0_183, %c0_184, %c0_185] : memref<2x32x64xbf16, #tpu.memory_space<vmem>>, vector<1x32x64xbf16>
    %292 = vector.shape_cast %291 : vector<1x32x64xbf16> to vector<32x64xbf16>
    %cst_186 = arith.constant dense<0.000000e+00> : vector<16x64xf32>
    %293 = tpu.matmul %290, %292, %cst_186 {dimension_numbers = #tpu.dot_dimension_numbers<[1], [0], [0], [1], [0, 0, 1, 1], [], []>} : vector<16x32xbf16>, vector<32x64xbf16>, vector<16x64xf32> -> vector<16x64xf32>
    %c0_187 = arith.constant 0 : index
    %c0_188 = arith.constant 0 : index
    %c0_189 = arith.constant 0 : index
    %294 = vector.load %arg19[%c0_187, %c0_188, %c0_189] : memref<2x1x64xf32, #tpu.memory_space<vmem>>, vector<1x1x64xf32>
    %295 = vector.shape_cast %294 : vector<1x1x64xf32> to vector<1x64xf32>
    %296 = vector.broadcast %295 : vector<1x64xf32> to vector<16x64xf32>
    %297 = arith.addf %293, %296 : vector<16x64xf32>
    %cst_190 = arith.constant 1.702000e+00 : f32
    %298 = vector.broadcast %cst_190 : f32 to vector<16x64xf32>
    %299 = arith.mulf %298, %297 : vector<16x64xf32>
    %300 = arith.negf %299 : vector<16x64xf32>
    %301 = math.exp %300 : vector<16x64xf32>
    %cst_191 = arith.constant 1.000000e+00 : f32
    %302 = vector.broadcast %cst_191 : f32 to vector<16x64xf32>
    %303 = arith.addf %302, %301 : vector<16x64xf32>
    %304 = arith.divf %302, %303 : vector<16x64xf32>
    %305 = arith.mulf %297, %304 : vector<16x64xf32>
    %306 = arith.truncf %305 : vector<16x64xf32> to vector<16x64xbf16>
    %c0_192 = arith.constant 0 : index
    %c0_193 = arith.constant 0 : index
    %c0_194 = arith.constant 0 : index
    %307 = vector.load %arg20[%c0_192, %c0_193, %c0_194] : memref<2x64x32xbf16, #tpu.memory_space<vmem>>, vector<1x64x32xbf16>
    %308 = vector.shape_cast %307 : vector<1x64x32xbf16> to vector<64x32xbf16>
    %cst_195 = arith.constant dense<0.000000e+00> : vector<16x32xf32>
    %309 = tpu.matmul %306, %308, %cst_195 {dimension_numbers = #tpu.dot_dimension_numbers<[1], [0], [0], [1], [0, 0, 1, 1], [], []>} : vector<16x64xbf16>, vector<64x32xbf16>, vector<16x32xf32> -> vector<16x32xf32>
    %310 = arith.addf %263, %309 : vector<16x32xf32>
    %c0_196 = arith.constant 0 : index
    %c0_197 = arith.constant 0 : index
    %c0_198 = arith.constant 0 : index
    %311 = vector.load %arg21[%c0_196, %c0_197, %c0_198] : memref<2x1x32xf32, #tpu.memory_space<vmem>>, vector<1x1x32xf32>
    %312 = vector.shape_cast %311 : vector<1x1x32xf32> to vector<1x32xf32>
    %313 = vector.broadcast %312 : vector<1x32xf32> to vector<16x32xf32>
    %314 = arith.addf %310, %313 : vector<16x32xf32>
    %c1_199 = arith.constant 1 : index
    %c0_200 = arith.constant 0 : index
    %c0_201 = arith.constant 0 : index
    %315 = vector.load %arg6[%c1_199, %c0_200, %c0_201] : memref<2x1x32xf32, #tpu.memory_space<vmem>>, vector<1x1x32xf32>
    %316 = vector.shape_cast %315 : vector<1x1x32xf32> to vector<1x32xf32>
    %c1_202 = arith.constant 1 : index
    %c0_203 = arith.constant 0 : index
    %c0_204 = arith.constant 0 : index
    %317 = vector.load %arg7[%c1_202, %c0_203, %c0_204] : memref<2x1x32xf32, #tpu.memory_space<vmem>>, vector<1x1x32xf32>
    %318 = vector.shape_cast %317 : vector<1x1x32xf32> to vector<1x32xf32>
    %cst_205 = arith.constant dense<0.000000e+00> : vector<16xf32>
    %319 = vector.multi_reduction <add>, %314, %cst_205 [1] : vector<16x32xf32> to vector<16xf32>
    %320 = vector.shape_cast %319 : vector<16xf32> to vector<16x1xf32>
    %cst_206 = arith.constant 3.200000e+01 : f32
    %321 = vector.broadcast %cst_206 : f32 to vector<16x1xf32>
    %322 = arith.divf %320, %321 : vector<16x1xf32>
    %323 = vector.broadcast %322 : vector<16x1xf32> to vector<16x32xf32>
    %324 = arith.subf %314, %323 : vector<16x32xf32>
    %325 = arith.mulf %324, %324 : vector<16x32xf32>
    %cst_207 = arith.constant dense<0.000000e+00> : vector<16xf32>
    %326 = vector.multi_reduction <add>, %325, %cst_207 [1] : vector<16x32xf32> to vector<16xf32>
    %327 = vector.shape_cast %326 : vector<16xf32> to vector<16x1xf32>
    %cst_208 = arith.constant 3.200000e+01 : f32
    %328 = vector.broadcast %cst_208 : f32 to vector<16x1xf32>
    %329 = arith.divf %327, %328 : vector<16x1xf32>
    %330 = vector.broadcast %322 : vector<16x1xf32> to vector<16x32xf32>
    %331 = arith.subf %314, %330 : vector<16x32xf32>
    %cst_209 = arith.constant 9.99999974E-6 : f32
    %332 = vector.broadcast %cst_209 : f32 to vector<16x1xf32>
    %333 = arith.addf %329, %332 : vector<16x1xf32>
    %334 = math.rsqrt %333 : vector<16x1xf32>
    %335 = vector.broadcast %334 : vector<16x1xf32> to vector<16x32xf32>
    %336 = arith.mulf %331, %335 : vector<16x32xf32>
    %337 = vector.broadcast %316 : vector<1x32xf32> to vector<16x32xf32>
    %338 = arith.mulf %336, %337 : vector<16x32xf32>
    %339 = vector.broadcast %318 : vector<1x32xf32> to vector<16x32xf32>
    %340 = arith.addf %338, %339 : vector<16x32xf32>
    %341 = arith.truncf %340 : vector<16x32xf32> to vector<16x32xbf16>
    %cst_210 = arith.constant 0.000000e+00 : f32
    %342 = vector.broadcast %cst_210 : f32 to vector<16x32xf32>
    %c1_211 = arith.constant 1 : index
    %c0_212 = arith.constant 0 : index
    %c0_213 = arith.constant 0 : index
    %c0_214 = arith.constant 0 : index
    %343 = vector.load %arg8[%c1_211, %c0_212, %c0_213, %c0_214] : memref<2x4x32x8xbf16, #tpu.memory_space<vmem>>, vector<1x1x32x8xbf16>
    %344 = vector.shape_cast %343 : vector<1x1x32x8xbf16> to vector<32x8xbf16>
    %cst_215 = arith.constant dense<0.000000e+00> : vector<16x8xf32>
    %345 = tpu.matmul %341, %344, %cst_215 {dimension_numbers = #tpu.dot_dimension_numbers<[1], [0], [0], [1], [0, 0, 1, 1], [], []>} : vector<16x32xbf16>, vector<32x8xbf16>, vector<16x8xf32> -> vector<16x8xf32>
    %c1_216 = arith.constant 1 : index
    %c0_217 = arith.constant 0 : index
    %c0_218 = arith.constant 0 : index
    %c0_219 = arith.constant 0 : index
    %346 = vector.load %arg11[%c1_216, %c0_217, %c0_218, %c0_219] : memref<2x4x1x8xf32, #tpu.memory_space<vmem>>, vector<1x1x1x8xf32>
    %347 = vector.shape_cast %346 : vector<1x1x1x8xf32> to vector<1x8xf32>
    %348 = vector.broadcast %347 : vector<1x8xf32> to vector<16x8xf32>
    %349 = arith.addf %345, %348 : vector<16x8xf32>
    %c1_220 = arith.constant 1 : index
    %c0_221 = arith.constant 0 : index
    %c0_222 = arith.constant 0 : index
    %c0_223 = arith.constant 0 : index
    %350 = vector.load %arg9[%c1_220, %c0_221, %c0_222, %c0_223] : memref<2x4x32x8xbf16, #tpu.memory_space<vmem>>, vector<1x1x32x8xbf16>
    %351 = vector.shape_cast %350 : vector<1x1x32x8xbf16> to vector<32x8xbf16>
    %cst_224 = arith.constant dense<0.000000e+00> : vector<16x8xf32>
    %352 = tpu.matmul %341, %351, %cst_224 {dimension_numbers = #tpu.dot_dimension_numbers<[1], [0], [0], [1], [0, 0, 1, 1], [], []>} : vector<16x32xbf16>, vector<32x8xbf16>, vector<16x8xf32> -> vector<16x8xf32>
    %c1_225 = arith.constant 1 : index
    %c0_226 = arith.constant 0 : index
    %c0_227 = arith.constant 0 : index
    %c0_228 = arith.constant 0 : index
    %353 = vector.load %arg12[%c1_225, %c0_226, %c0_227, %c0_228] : memref<2x4x1x8xf32, #tpu.memory_space<vmem>>, vector<1x1x1x8xf32>
    %354 = vector.shape_cast %353 : vector<1x1x1x8xf32> to vector<1x8xf32>
    %355 = vector.broadcast %354 : vector<1x8xf32> to vector<16x8xf32>
    %356 = arith.addf %352, %355 : vector<16x8xf32>
    %c1_229 = arith.constant 1 : index
    %c0_230 = arith.constant 0 : index
    %c0_231 = arith.constant 0 : index
    %c0_232 = arith.constant 0 : index
    %357 = vector.load %arg10[%c1_229, %c0_230, %c0_231, %c0_232] : memref<2x4x32x8xbf16, #tpu.memory_space<vmem>>, vector<1x1x32x8xbf16>
    %358 = vector.shape_cast %357 : vector<1x1x32x8xbf16> to vector<32x8xbf16>
    %cst_233 = arith.constant dense<0.000000e+00> : vector<16x8xf32>
    %359 = tpu.matmul %341, %358, %cst_233 {dimension_numbers = #tpu.dot_dimension_numbers<[1], [0], [0], [1], [0, 0, 1, 1], [], []>} : vector<16x32xbf16>, vector<32x8xbf16>, vector<16x8xf32> -> vector<16x8xf32>
    %c1_234 = arith.constant 1 : index
    %c0_235 = arith.constant 0 : index
    %c0_236 = arith.constant 0 : index
    %c0_237 = arith.constant 0 : index
    %360 = vector.load %arg13[%c1_234, %c0_235, %c0_236, %c0_237] : memref<2x4x1x8xf32, #tpu.memory_space<vmem>>, vector<1x1x1x8xf32>
    %361 = vector.shape_cast %360 : vector<1x1x1x8xf32> to vector<1x8xf32>
    %362 = vector.broadcast %361 : vector<1x8xf32> to vector<16x8xf32>
    %363 = arith.addf %359, %362 : vector<16x8xf32>
    %364 = vector.shape_cast %349 : vector<16x8xf32> to vector<2x8x8xf32>
    %365 = arith.truncf %364 : vector<2x8x8xf32> to vector<2x8x8xbf16>
    %366 = vector.shape_cast %356 : vector<16x8xf32> to vector<2x8x8xf32>
    %367 = arith.truncf %366 : vector<2x8x8xf32> to vector<2x8x8xbf16>
    %368 = vector.shape_cast %363 : vector<16x8xf32> to vector<2x8x8xf32>
    %369 = arith.truncf %368 : vector<2x8x8xf32> to vector<2x8x8xbf16>
    "tpu.trace_start"() <{level = 10 : i32, message = "bqd,bkd->bqk"}> : () -> ()
    %cst_238 = arith.constant dense<0.000000e+00> : vector<2x8x8xf32>
    %370 = tpu.matmul %365, %367, %cst_238 {dimension_numbers = #tpu.dot_dimension_numbers<[2], [2], [1], [1], [0, 0, 0, 1, 1, 1], [0], [0]>} : vector<2x8x8xbf16>, vector<2x8x8xbf16>, vector<2x8x8xf32> -> vector<2x8x8xf32>
    "tpu.trace_stop"() : () -> ()
    %371 = vector.shape_cast %34 : vector<1x8xf32> to vector<1x1x8xf32>
    %372 = vector.broadcast %371 : vector<1x1x8xf32> to vector<2x8x8xf32>
    %373 = arith.addf %370, %372 : vector<2x8x8xf32>
    %cst_239 = arith.constant dense<0xFF800000> : vector<2x8xf32>
    %374 = vector.multi_reduction <maximumf>, %373, %cst_239 [2] : vector<2x8x8xf32> to vector<2x8xf32>
    %375 = vector.shape_cast %374 : vector<2x8xf32> to vector<2x8x1xf32>
    %376 = vector.broadcast %375 : vector<2x8x1xf32> to vector<2x8x8xf32>
    %377 = arith.subf %373, %376 : vector<2x8x8xf32>
    %378 = math.exp %377 : vector<2x8x8xf32>
    %cst_240 = arith.constant dense<0.000000e+00> : vector<2x8xf32>
    %379 = vector.multi_reduction <add>, %378, %cst_240 [2] : vector<2x8x8xf32> to vector<2x8xf32>
    %380 = vector.shape_cast %379 : vector<2x8xf32> to vector<2x8x1xf32>
    %381 = tpu.reciprocal %380 {approx = true} : vector<2x8x1xf32> -> vector<2x8x1xf32>
    %382 = vector.broadcast %381 : vector<2x8x1xf32> to vector<2x8x8xf32>
    %383 = arith.mulf %378, %382 : vector<2x8x8xf32>
    %384 = arith.truncf %383 : vector<2x8x8xf32> to vector<2x8x8xbf16>
    "tpu.trace_start"() <{level = 10 : i32, message = "bqk,bkd->bqd"}> : () -> ()
    %cst_241 = arith.constant dense<0.000000e+00> : vector<2x8x8xf32>
    %385 = tpu.matmul %384, %369, %cst_241 {dimension_numbers = #tpu.dot_dimension_numbers<[2], [1], [1], [2], [0, 0, 0, 1, 1, 2], [0], [0]>} : vector<2x8x8xbf16>, vector<2x8x8xbf16>, vector<2x8x8xf32> -> vector<2x8x8xf32>
    "tpu.trace_stop"() : () -> ()
    %386 = vector.shape_cast %385 : vector<2x8x8xf32> to vector<16x8xf32>
    %387 = arith.truncf %386 : vector<16x8xf32> to vector<16x8xbf16>
    %c1_242 = arith.constant 1 : index
    %c0_243 = arith.constant 0 : index
    %c0_244 = arith.constant 0 : index
    %c0_245 = arith.constant 0 : index
    %388 = vector.load %arg14[%c1_242, %c0_243, %c0_244, %c0_245] : memref<2x4x8x32xbf16, #tpu.memory_space<vmem>>, vector<1x1x8x32xbf16>
    %389 = vector.shape_cast %388 : vector<1x1x8x32xbf16> to vector<8x32xbf16>
    %cst_246 = arith.constant dense<0.000000e+00> : vector<16x32xf32>
    %390 = tpu.matmul %387, %389, %cst_246 {dimension_numbers = #tpu.dot_dimension_numbers<[1], [0], [0], [1], [0, 0, 1, 1], [], []>} : vector<16x8xbf16>, vector<8x32xbf16>, vector<16x32xf32> -> vector<16x32xf32>
    %391 = arith.addf %342, %390 : vector<16x32xf32>
    %c1_247 = arith.constant 1 : index
    %c1_248 = arith.constant 1 : index
    %c0_249 = arith.constant 0 : index
    %c0_250 = arith.constant 0 : index
    %392 = vector.load %arg8[%c1_247, %c1_248, %c0_249, %c0_250] : memref<2x4x32x8xbf16, #tpu.memory_space<vmem>>, vector<1x1x32x8xbf16>
    %393 = vector.shape_cast %392 : vector<1x1x32x8xbf16> to vector<32x8xbf16>
    %cst_251 = arith.constant dense<0.000000e+00> : vector<16x8xf32>
    %394 = tpu.matmul %341, %393, %cst_251 {dimension_numbers = #tpu.dot_dimension_numbers<[1], [0], [0], [1], [0, 0, 1, 1], [], []>} : vector<16x32xbf16>, vector<32x8xbf16>, vector<16x8xf32> -> vector<16x8xf32>
    %c1_252 = arith.constant 1 : index
    %c1_253 = arith.constant 1 : index
    %c0_254 = arith.constant 0 : index
    %c0_255 = arith.constant 0 : index
    %395 = vector.load %arg11[%c1_252, %c1_253, %c0_254, %c0_255] : memref<2x4x1x8xf32, #tpu.memory_space<vmem>>, vector<1x1x1x8xf32>
    %396 = vector.shape_cast %395 : vector<1x1x1x8xf32> to vector<1x8xf32>
    %397 = vector.broadcast %396 : vector<1x8xf32> to vector<16x8xf32>
    %398 = arith.addf %394, %397 : vector<16x8xf32>
    %c1_256 = arith.constant 1 : index
    %c1_257 = arith.constant 1 : index
    %c0_258 = arith.constant 0 : index
    %c0_259 = arith.constant 0 : index
    %399 = vector.load %arg9[%c1_256, %c1_257, %c0_258, %c0_259] : memref<2x4x32x8xbf16, #tpu.memory_space<vmem>>, vector<1x1x32x8xbf16>
    %400 = vector.shape_cast %399 : vector<1x1x32x8xbf16> to vector<32x8xbf16>
    %cst_260 = arith.constant dense<0.000000e+00> : vector<16x8xf32>
    %401 = tpu.matmul %341, %400, %cst_260 {dimension_numbers = #tpu.dot_dimension_numbers<[1], [0], [0], [1], [0, 0, 1, 1], [], []>} : vector<16x32xbf16>, vector<32x8xbf16>, vector<16x8xf32> -> vector<16x8xf32>
    %c1_261 = arith.constant 1 : index
    %c1_262 = arith.constant 1 : index
    %c0_263 = arith.constant 0 : index
    %c0_264 = arith.constant 0 : index
    %402 = vector.load %arg12[%c1_261, %c1_262, %c0_263, %c0_264] : memref<2x4x1x8xf32, #tpu.memory_space<vmem>>, vector<1x1x1x8xf32>
    %403 = vector.shape_cast %402 : vector<1x1x1x8xf32> to vector<1x8xf32>
    %404 = vector.broadcast %403 : vector<1x8xf32> to vector<16x8xf32>
    %405 = arith.addf %401, %404 : vector<16x8xf32>
    %c1_265 = arith.constant 1 : index
    %c1_266 = arith.constant 1 : index
    %c0_267 = arith.constant 0 : index
    %c0_268 = arith.constant 0 : index
    %406 = vector.load %arg10[%c1_265, %c1_266, %c0_267, %c0_268] : memref<2x4x32x8xbf16, #tpu.memory_space<vmem>>, vector<1x1x32x8xbf16>
    %407 = vector.shape_cast %406 : vector<1x1x32x8xbf16> to vector<32x8xbf16>
    %cst_269 = arith.constant dense<0.000000e+00> : vector<16x8xf32>
    %408 = tpu.matmul %341, %407, %cst_269 {dimension_numbers = #tpu.dot_dimension_numbers<[1], [0], [0], [1], [0, 0, 1, 1], [], []>} : vector<16x32xbf16>, vector<32x8xbf16>, vector<16x8xf32> -> vector<16x8xf32>
    %c1_270 = arith.constant 1 : index
    %c1_271 = arith.constant 1 : index
    %c0_272 = arith.constant 0 : index
    %c0_273 = arith.constant 0 : index
    %409 = vector.load %arg13[%c1_270, %c1_271, %c0_272, %c0_273] : memref<2x4x1x8xf32, #tpu.memory_space<vmem>>, vector<1x1x1x8xf32>
    %410 = vector.shape_cast %409 : vector<1x1x1x8xf32> to vector<1x8xf32>
    %411 = vector.broadcast %410 : vector<1x8xf32> to vector<16x8xf32>
    %412 = arith.addf %408, %411 : vector<16x8xf32>
    %413 = vector.shape_cast %398 : vector<16x8xf32> to vector<2x8x8xf32>
    %414 = arith.truncf %413 : vector<2x8x8xf32> to vector<2x8x8xbf16>
    %415 = vector.shape_cast %405 : vector<16x8xf32> to vector<2x8x8xf32>
    %416 = arith.truncf %415 : vector<2x8x8xf32> to vector<2x8x8xbf16>
    %417 = vector.shape_cast %412 : vector<16x8xf32> to vector<2x8x8xf32>
    %418 = arith.truncf %417 : vector<2x8x8xf32> to vector<2x8x8xbf16>
    "tpu.trace_start"() <{level = 10 : i32, message = "bqd,bkd->bqk"}> : () -> ()
    %cst_274 = arith.constant dense<0.000000e+00> : vector<2x8x8xf32>
    %419 = tpu.matmul %414, %416, %cst_274 {dimension_numbers = #tpu.dot_dimension_numbers<[2], [2], [1], [1], [0, 0, 0, 1, 1, 1], [0], [0]>} : vector<2x8x8xbf16>, vector<2x8x8xbf16>, vector<2x8x8xf32> -> vector<2x8x8xf32>
    "tpu.trace_stop"() : () -> ()
    %420 = vector.shape_cast %34 : vector<1x8xf32> to vector<1x1x8xf32>
    %421 = vector.broadcast %420 : vector<1x1x8xf32> to vector<2x8x8xf32>
    %422 = arith.addf %419, %421 : vector<2x8x8xf32>
    %cst_275 = arith.constant dense<0xFF800000> : vector<2x8xf32>
    %423 = vector.multi_reduction <maximumf>, %422, %cst_275 [2] : vector<2x8x8xf32> to vector<2x8xf32>
    %424 = vector.shape_cast %423 : vector<2x8xf32> to vector<2x8x1xf32>
    %425 = vector.broadcast %424 : vector<2x8x1xf32> to vector<2x8x8xf32>
    %426 = arith.subf %422, %425 : vector<2x8x8xf32>
    %427 = math.exp %426 : vector<2x8x8xf32>
    %cst_276 = arith.constant dense<0.000000e+00> : vector<2x8xf32>
    %428 = vector.multi_reduction <add>, %427, %cst_276 [2] : vector<2x8x8xf32> to vector<2x8xf32>
    %429 = vector.shape_cast %428 : vector<2x8xf32> to vector<2x8x1xf32>
    %430 = tpu.reciprocal %429 {approx = true} : vector<2x8x1xf32> -> vector<2x8x1xf32>
    %431 = vector.broadcast %430 : vector<2x8x1xf32> to vector<2x8x8xf32>
    %432 = arith.mulf %427, %431 : vector<2x8x8xf32>
    %433 = arith.truncf %432 : vector<2x8x8xf32> to vector<2x8x8xbf16>
    "tpu.trace_start"() <{level = 10 : i32, message = "bqk,bkd->bqd"}> : () -> ()
    %cst_277 = arith.constant dense<0.000000e+00> : vector<2x8x8xf32>
    %434 = tpu.matmul %433, %418, %cst_277 {dimension_numbers = #tpu.dot_dimension_numbers<[2], [1], [1], [2], [0, 0, 0, 1, 1, 2], [0], [0]>} : vector<2x8x8xbf16>, vector<2x8x8xbf16>, vector<2x8x8xf32> -> vector<2x8x8xf32>
    "tpu.trace_stop"() : () -> ()
    %435 = vector.shape_cast %434 : vector<2x8x8xf32> to vector<16x8xf32>
    %436 = arith.truncf %435 : vector<16x8xf32> to vector<16x8xbf16>
    %c1_278 = arith.constant 1 : index
    %c1_279 = arith.constant 1 : index
    %c0_280 = arith.constant 0 : index
    %c0_281 = arith.constant 0 : index
    %437 = vector.load %arg14[%c1_278, %c1_279, %c0_280, %c0_281] : memref<2x4x8x32xbf16, #tpu.memory_space<vmem>>, vector<1x1x8x32xbf16>
    %438 = vector.shape_cast %437 : vector<1x1x8x32xbf16> to vector<8x32xbf16>
    %cst_282 = arith.constant dense<0.000000e+00> : vector<16x32xf32>
    %439 = tpu.matmul %436, %438, %cst_282 {dimension_numbers = #tpu.dot_dimension_numbers<[1], [0], [0], [1], [0, 0, 1, 1], [], []>} : vector<16x8xbf16>, vector<8x32xbf16>, vector<16x32xf32> -> vector<16x32xf32>
    %440 = arith.addf %391, %439 : vector<16x32xf32>
    %c1_283 = arith.constant 1 : index
    %c2_284 = arith.constant 2 : index
    %c0_285 = arith.constant 0 : index
    %c0_286 = arith.constant 0 : index
    %441 = vector.load %arg8[%c1_283, %c2_284, %c0_285, %c0_286] : memref<2x4x32x8xbf16, #tpu.memory_space<vmem>>, vector<1x1x32x8xbf16>
    %442 = vector.shape_cast %441 : vector<1x1x32x8xbf16> to vector<32x8xbf16>
    %cst_287 = arith.constant dense<0.000000e+00> : vector<16x8xf32>
    %443 = tpu.matmul %341, %442, %cst_287 {dimension_numbers = #tpu.dot_dimension_numbers<[1], [0], [0], [1], [0, 0, 1, 1], [], []>} : vector<16x32xbf16>, vector<32x8xbf16>, vector<16x8xf32> -> vector<16x8xf32>
    %c1_288 = arith.constant 1 : index
    %c2_289 = arith.constant 2 : index
    %c0_290 = arith.constant 0 : index
    %c0_291 = arith.constant 0 : index
    %444 = vector.load %arg11[%c1_288, %c2_289, %c0_290, %c0_291] : memref<2x4x1x8xf32, #tpu.memory_space<vmem>>, vector<1x1x1x8xf32>
    %445 = vector.shape_cast %444 : vector<1x1x1x8xf32> to vector<1x8xf32>
    %446 = vector.broadcast %445 : vector<1x8xf32> to vector<16x8xf32>
    %447 = arith.addf %443, %446 : vector<16x8xf32>
    %c1_292 = arith.constant 1 : index
    %c2_293 = arith.constant 2 : index
    %c0_294 = arith.constant 0 : index
    %c0_295 = arith.constant 0 : index
    %448 = vector.load %arg9[%c1_292, %c2_293, %c0_294, %c0_295] : memref<2x4x32x8xbf16, #tpu.memory_space<vmem>>, vector<1x1x32x8xbf16>
    %449 = vector.shape_cast %448 : vector<1x1x32x8xbf16> to vector<32x8xbf16>
    %cst_296 = arith.constant dense<0.000000e+00> : vector<16x8xf32>
    %450 = tpu.matmul %341, %449, %cst_296 {dimension_numbers = #tpu.dot_dimension_numbers<[1], [0], [0], [1], [0, 0, 1, 1], [], []>} : vector<16x32xbf16>, vector<32x8xbf16>, vector<16x8xf32> -> vector<16x8xf32>
    %c1_297 = arith.constant 1 : index
    %c2_298 = arith.constant 2 : index
    %c0_299 = arith.constant 0 : index
    %c0_300 = arith.constant 0 : index
    %451 = vector.load %arg12[%c1_297, %c2_298, %c0_299, %c0_300] : memref<2x4x1x8xf32, #tpu.memory_space<vmem>>, vector<1x1x1x8xf32>
    %452 = vector.shape_cast %451 : vector<1x1x1x8xf32> to vector<1x8xf32>
    %453 = vector.broadcast %452 : vector<1x8xf32> to vector<16x8xf32>
    %454 = arith.addf %450, %453 : vector<16x8xf32>
    %c1_301 = arith.constant 1 : index
    %c2_302 = arith.constant 2 : index
    %c0_303 = arith.constant 0 : index
    %c0_304 = arith.constant 0 : index
    %455 = vector.load %arg10[%c1_301, %c2_302, %c0_303, %c0_304] : memref<2x4x32x8xbf16, #tpu.memory_space<vmem>>, vector<1x1x32x8xbf16>
    %456 = vector.shape_cast %455 : vector<1x1x32x8xbf16> to vector<32x8xbf16>
    %cst_305 = arith.constant dense<0.000000e+00> : vector<16x8xf32>
    %457 = tpu.matmul %341, %456, %cst_305 {dimension_numbers = #tpu.dot_dimension_numbers<[1], [0], [0], [1], [0, 0, 1, 1], [], []>} : vector<16x32xbf16>, vector<32x8xbf16>, vector<16x8xf32> -> vector<16x8xf32>
    %c1_306 = arith.constant 1 : index
    %c2_307 = arith.constant 2 : index
    %c0_308 = arith.constant 0 : index
    %c0_309 = arith.constant 0 : index
    %458 = vector.load %arg13[%c1_306, %c2_307, %c0_308, %c0_309] : memref<2x4x1x8xf32, #tpu.memory_space<vmem>>, vector<1x1x1x8xf32>
    %459 = vector.shape_cast %458 : vector<1x1x1x8xf32> to vector<1x8xf32>
    %460 = vector.broadcast %459 : vector<1x8xf32> to vector<16x8xf32>
    %461 = arith.addf %457, %460 : vector<16x8xf32>
    %462 = vector.shape_cast %447 : vector<16x8xf32> to vector<2x8x8xf32>
    %463 = arith.truncf %462 : vector<2x8x8xf32> to vector<2x8x8xbf16>
    %464 = vector.shape_cast %454 : vector<16x8xf32> to vector<2x8x8xf32>
    %465 = arith.truncf %464 : vector<2x8x8xf32> to vector<2x8x8xbf16>
    %466 = vector.shape_cast %461 : vector<16x8xf32> to vector<2x8x8xf32>
    %467 = arith.truncf %466 : vector<2x8x8xf32> to vector<2x8x8xbf16>
    "tpu.trace_start"() <{level = 10 : i32, message = "bqd,bkd->bqk"}> : () -> ()
    %cst_310 = arith.constant dense<0.000000e+00> : vector<2x8x8xf32>
    %468 = tpu.matmul %463, %465, %cst_310 {dimension_numbers = #tpu.dot_dimension_numbers<[2], [2], [1], [1], [0, 0, 0, 1, 1, 1], [0], [0]>} : vector<2x8x8xbf16>, vector<2x8x8xbf16>, vector<2x8x8xf32> -> vector<2x8x8xf32>
    "tpu.trace_stop"() : () -> ()
    %469 = vector.shape_cast %34 : vector<1x8xf32> to vector<1x1x8xf32>
    %470 = vector.broadcast %469 : vector<1x1x8xf32> to vector<2x8x8xf32>
    %471 = arith.addf %468, %470 : vector<2x8x8xf32>
    %cst_311 = arith.constant dense<0xFF800000> : vector<2x8xf32>
    %472 = vector.multi_reduction <maximumf>, %471, %cst_311 [2] : vector<2x8x8xf32> to vector<2x8xf32>
    %473 = vector.shape_cast %472 : vector<2x8xf32> to vector<2x8x1xf32>
    %474 = vector.broadcast %473 : vector<2x8x1xf32> to vector<2x8x8xf32>
    %475 = arith.subf %471, %474 : vector<2x8x8xf32>
    %476 = math.exp %475 : vector<2x8x8xf32>
    %cst_312 = arith.constant dense<0.000000e+00> : vector<2x8xf32>
    %477 = vector.multi_reduction <add>, %476, %cst_312 [2] : vector<2x8x8xf32> to vector<2x8xf32>
    %478 = vector.shape_cast %477 : vector<2x8xf32> to vector<2x8x1xf32>
    %479 = tpu.reciprocal %478 {approx = true} : vector<2x8x1xf32> -> vector<2x8x1xf32>
    %480 = vector.broadcast %479 : vector<2x8x1xf32> to vector<2x8x8xf32>
    %481 = arith.mulf %476, %480 : vector<2x8x8xf32>
    %482 = arith.truncf %481 : vector<2x8x8xf32> to vector<2x8x8xbf16>
    "tpu.trace_start"() <{level = 10 : i32, message = "bqk,bkd->bqd"}> : () -> ()
    %cst_313 = arith.constant dense<0.000000e+00> : vector<2x8x8xf32>
    %483 = tpu.matmul %482, %467, %cst_313 {dimension_numbers = #tpu.dot_dimension_numbers<[2], [1], [1], [2], [0, 0, 0, 1, 1, 2], [0], [0]>} : vector<2x8x8xbf16>, vector<2x8x8xbf16>, vector<2x8x8xf32> -> vector<2x8x8xf32>
    "tpu.trace_stop"() : () -> ()
    %484 = vector.shape_cast %483 : vector<2x8x8xf32> to vector<16x8xf32>
    %485 = arith.truncf %484 : vector<16x8xf32> to vector<16x8xbf16>
    %c1_314 = arith.constant 1 : index
    %c2_315 = arith.constant 2 : index
    %c0_316 = arith.constant 0 : index
    %c0_317 = arith.constant 0 : index
    %486 = vector.load %arg14[%c1_314, %c2_315, %c0_316, %c0_317] : memref<2x4x8x32xbf16, #tpu.memory_space<vmem>>, vector<1x1x8x32xbf16>
    %487 = vector.shape_cast %486 : vector<1x1x8x32xbf16> to vector<8x32xbf16>
    %cst_318 = arith.constant dense<0.000000e+00> : vector<16x32xf32>
    %488 = tpu.matmul %485, %487, %cst_318 {dimension_numbers = #tpu.dot_dimension_numbers<[1], [0], [0], [1], [0, 0, 1, 1], [], []>} : vector<16x8xbf16>, vector<8x32xbf16>, vector<16x32xf32> -> vector<16x32xf32>
    %489 = arith.addf %440, %488 : vector<16x32xf32>
    %c1_319 = arith.constant 1 : index
    %c3_320 = arith.constant 3 : index
    %c0_321 = arith.constant 0 : index
    %c0_322 = arith.constant 0 : index
    %490 = vector.load %arg8[%c1_319, %c3_320, %c0_321, %c0_322] : memref<2x4x32x8xbf16, #tpu.memory_space<vmem>>, vector<1x1x32x8xbf16>
    %491 = vector.shape_cast %490 : vector<1x1x32x8xbf16> to vector<32x8xbf16>
    %cst_323 = arith.constant dense<0.000000e+00> : vector<16x8xf32>
    %492 = tpu.matmul %341, %491, %cst_323 {dimension_numbers = #tpu.dot_dimension_numbers<[1], [0], [0], [1], [0, 0, 1, 1], [], []>} : vector<16x32xbf16>, vector<32x8xbf16>, vector<16x8xf32> -> vector<16x8xf32>
    %c1_324 = arith.constant 1 : index
    %c3_325 = arith.constant 3 : index
    %c0_326 = arith.constant 0 : index
    %c0_327 = arith.constant 0 : index
    %493 = vector.load %arg11[%c1_324, %c3_325, %c0_326, %c0_327] : memref<2x4x1x8xf32, #tpu.memory_space<vmem>>, vector<1x1x1x8xf32>
    %494 = vector.shape_cast %493 : vector<1x1x1x8xf32> to vector<1x8xf32>
    %495 = vector.broadcast %494 : vector<1x8xf32> to vector<16x8xf32>
    %496 = arith.addf %492, %495 : vector<16x8xf32>
    %c1_328 = arith.constant 1 : index
    %c3_329 = arith.constant 3 : index
    %c0_330 = arith.constant 0 : index
    %c0_331 = arith.constant 0 : index
    %497 = vector.load %arg9[%c1_328, %c3_329, %c0_330, %c0_331] : memref<2x4x32x8xbf16, #tpu.memory_space<vmem>>, vector<1x1x32x8xbf16>
    %498 = vector.shape_cast %497 : vector<1x1x32x8xbf16> to vector<32x8xbf16>
    %cst_332 = arith.constant dense<0.000000e+00> : vector<16x8xf32>
    %499 = tpu.matmul %341, %498, %cst_332 {dimension_numbers = #tpu.dot_dimension_numbers<[1], [0], [0], [1], [0, 0, 1, 1], [], []>} : vector<16x32xbf16>, vector<32x8xbf16>, vector<16x8xf32> -> vector<16x8xf32>
    %c1_333 = arith.constant 1 : index
    %c3_334 = arith.constant 3 : index
    %c0_335 = arith.constant 0 : index
    %c0_336 = arith.constant 0 : index
    %500 = vector.load %arg12[%c1_333, %c3_334, %c0_335, %c0_336] : memref<2x4x1x8xf32, #tpu.memory_space<vmem>>, vector<1x1x1x8xf32>
    %501 = vector.shape_cast %500 : vector<1x1x1x8xf32> to vector<1x8xf32>
    %502 = vector.broadcast %501 : vector<1x8xf32> to vector<16x8xf32>
    %503 = arith.addf %499, %502 : vector<16x8xf32>
    %c1_337 = arith.constant 1 : index
    %c3_338 = arith.constant 3 : index
    %c0_339 = arith.constant 0 : index
    %c0_340 = arith.constant 0 : index
    %504 = vector.load %arg10[%c1_337, %c3_338, %c0_339, %c0_340] : memref<2x4x32x8xbf16, #tpu.memory_space<vmem>>, vector<1x1x32x8xbf16>
    %505 = vector.shape_cast %504 : vector<1x1x32x8xbf16> to vector<32x8xbf16>
    %cst_341 = arith.constant dense<0.000000e+00> : vector<16x8xf32>
    %506 = tpu.matmul %341, %505, %cst_341 {dimension_numbers = #tpu.dot_dimension_numbers<[1], [0], [0], [1], [0, 0, 1, 1], [], []>} : vector<16x32xbf16>, vector<32x8xbf16>, vector<16x8xf32> -> vector<16x8xf32>
    %c1_342 = arith.constant 1 : index
    %c3_343 = arith.constant 3 : index
    %c0_344 = arith.constant 0 : index
    %c0_345 = arith.constant 0 : index
    %507 = vector.load %arg13[%c1_342, %c3_343, %c0_344, %c0_345] : memref<2x4x1x8xf32, #tpu.memory_space<vmem>>, vector<1x1x1x8xf32>
    %508 = vector.shape_cast %507 : vector<1x1x1x8xf32> to vector<1x8xf32>
    %509 = vector.broadcast %508 : vector<1x8xf32> to vector<16x8xf32>
    %510 = arith.addf %506, %509 : vector<16x8xf32>
    %511 = vector.shape_cast %496 : vector<16x8xf32> to vector<2x8x8xf32>
    %512 = arith.truncf %511 : vector<2x8x8xf32> to vector<2x8x8xbf16>
    %513 = vector.shape_cast %503 : vector<16x8xf32> to vector<2x8x8xf32>
    %514 = arith.truncf %513 : vector<2x8x8xf32> to vector<2x8x8xbf16>
    %515 = vector.shape_cast %510 : vector<16x8xf32> to vector<2x8x8xf32>
    %516 = arith.truncf %515 : vector<2x8x8xf32> to vector<2x8x8xbf16>
    "tpu.trace_start"() <{level = 10 : i32, message = "bqd,bkd->bqk"}> : () -> ()
    %cst_346 = arith.constant dense<0.000000e+00> : vector<2x8x8xf32>
    %517 = tpu.matmul %512, %514, %cst_346 {dimension_numbers = #tpu.dot_dimension_numbers<[2], [2], [1], [1], [0, 0, 0, 1, 1, 1], [0], [0]>} : vector<2x8x8xbf16>, vector<2x8x8xbf16>, vector<2x8x8xf32> -> vector<2x8x8xf32>
    "tpu.trace_stop"() : () -> ()
    %518 = vector.shape_cast %34 : vector<1x8xf32> to vector<1x1x8xf32>
    %519 = vector.broadcast %518 : vector<1x1x8xf32> to vector<2x8x8xf32>
    %520 = arith.addf %517, %519 : vector<2x8x8xf32>
    %cst_347 = arith.constant dense<0xFF800000> : vector<2x8xf32>
    %521 = vector.multi_reduction <maximumf>, %520, %cst_347 [2] : vector<2x8x8xf32> to vector<2x8xf32>
    %522 = vector.shape_cast %521 : vector<2x8xf32> to vector<2x8x1xf32>
    %523 = vector.broadcast %522 : vector<2x8x1xf32> to vector<2x8x8xf32>
    %524 = arith.subf %520, %523 : vector<2x8x8xf32>
    %525 = math.exp %524 : vector<2x8x8xf32>
    %cst_348 = arith.constant dense<0.000000e+00> : vector<2x8xf32>
    %526 = vector.multi_reduction <add>, %525, %cst_348 [2] : vector<2x8x8xf32> to vector<2x8xf32>
    %527 = vector.shape_cast %526 : vector<2x8xf32> to vector<2x8x1xf32>
    %528 = tpu.reciprocal %527 {approx = true} : vector<2x8x1xf32> -> vector<2x8x1xf32>
    %529 = vector.broadcast %528 : vector<2x8x1xf32> to vector<2x8x8xf32>
    %530 = arith.mulf %525, %529 : vector<2x8x8xf32>
    %531 = arith.truncf %530 : vector<2x8x8xf32> to vector<2x8x8xbf16>
    "tpu.trace_start"() <{level = 10 : i32, message = "bqk,bkd->bqd"}> : () -> ()
    %cst_349 = arith.constant dense<0.000000e+00> : vector<2x8x8xf32>
    %532 = tpu.matmul %531, %516, %cst_349 {dimension_numbers = #tpu.dot_dimension_numbers<[2], [1], [1], [2], [0, 0, 0, 1, 1, 2], [0], [0]>} : vector<2x8x8xbf16>, vector<2x8x8xbf16>, vector<2x8x8xf32> -> vector<2x8x8xf32>
    "tpu.trace_stop"() : () -> ()
    %533 = vector.shape_cast %532 : vector<2x8x8xf32> to vector<16x8xf32>
    %534 = arith.truncf %533 : vector<16x8xf32> to vector<16x8xbf16>
    %c1_350 = arith.constant 1 : index
    %c3_351 = arith.constant 3 : index
    %c0_352 = arith.constant 0 : index
    %c0_353 = arith.constant 0 : index
    %535 = vector.load %arg14[%c1_350, %c3_351, %c0_352, %c0_353] : memref<2x4x8x32xbf16, #tpu.memory_space<vmem>>, vector<1x1x8x32xbf16>
    %536 = vector.shape_cast %535 : vector<1x1x8x32xbf16> to vector<8x32xbf16>
    %cst_354 = arith.constant dense<0.000000e+00> : vector<16x32xf32>
    %537 = tpu.matmul %534, %536, %cst_354 {dimension_numbers = #tpu.dot_dimension_numbers<[1], [0], [0], [1], [0, 0, 1, 1], [], []>} : vector<16x8xbf16>, vector<8x32xbf16>, vector<16x32xf32> -> vector<16x32xf32>
    %538 = arith.addf %489, %537 : vector<16x32xf32>
    %539 = arith.addf %314, %538 : vector<16x32xf32>
    %c1_355 = arith.constant 1 : index
    %c0_356 = arith.constant 0 : index
    %c0_357 = arith.constant 0 : index
    %540 = vector.load %arg15[%c1_355, %c0_356, %c0_357] : memref<2x1x32xf32, #tpu.memory_space<vmem>>, vector<1x1x32xf32>
    %541 = vector.shape_cast %540 : vector<1x1x32xf32> to vector<1x32xf32>
    %542 = vector.broadcast %541 : vector<1x32xf32> to vector<16x32xf32>
    %543 = arith.addf %539, %542 : vector<16x32xf32>
    %c1_358 = arith.constant 1 : index
    %c0_359 = arith.constant 0 : index
    %c0_360 = arith.constant 0 : index
    %544 = vector.load %arg16[%c1_358, %c0_359, %c0_360] : memref<2x1x32xf32, #tpu.memory_space<vmem>>, vector<1x1x32xf32>
    %545 = vector.shape_cast %544 : vector<1x1x32xf32> to vector<1x32xf32>
    %c1_361 = arith.constant 1 : index
    %c0_362 = arith.constant 0 : index
    %c0_363 = arith.constant 0 : index
    %546 = vector.load %arg17[%c1_361, %c0_362, %c0_363] : memref<2x1x32xf32, #tpu.memory_space<vmem>>, vector<1x1x32xf32>
    %547 = vector.shape_cast %546 : vector<1x1x32xf32> to vector<1x32xf32>
    %cst_364 = arith.constant dense<0.000000e+00> : vector<16xf32>
    %548 = vector.multi_reduction <add>, %543, %cst_364 [1] : vector<16x32xf32> to vector<16xf32>
    %549 = vector.shape_cast %548 : vector<16xf32> to vector<16x1xf32>
    %cst_365 = arith.constant 3.200000e+01 : f32
    %550 = vector.broadcast %cst_365 : f32 to vector<16x1xf32>
    %551 = arith.divf %549, %550 : vector<16x1xf32>
    %552 = vector.broadcast %551 : vector<16x1xf32> to vector<16x32xf32>
    %553 = arith.subf %543, %552 : vector<16x32xf32>
    %554 = arith.mulf %553, %553 : vector<16x32xf32>
    %cst_366 = arith.constant dense<0.000000e+00> : vector<16xf32>
    %555 = vector.multi_reduction <add>, %554, %cst_366 [1] : vector<16x32xf32> to vector<16xf32>
    %556 = vector.shape_cast %555 : vector<16xf32> to vector<16x1xf32>
    %cst_367 = arith.constant 3.200000e+01 : f32
    %557 = vector.broadcast %cst_367 : f32 to vector<16x1xf32>
    %558 = arith.divf %556, %557 : vector<16x1xf32>
    %559 = vector.broadcast %551 : vector<16x1xf32> to vector<16x32xf32>
    %560 = arith.subf %543, %559 : vector<16x32xf32>
    %cst_368 = arith.constant 9.99999974E-6 : f32
    %561 = vector.broadcast %cst_368 : f32 to vector<16x1xf32>
    %562 = arith.addf %558, %561 : vector<16x1xf32>
    %563 = math.rsqrt %562 : vector<16x1xf32>
    %564 = vector.broadcast %563 : vector<16x1xf32> to vector<16x32xf32>
    %565 = arith.mulf %560, %564 : vector<16x32xf32>
    %566 = vector.broadcast %545 : vector<1x32xf32> to vector<16x32xf32>
    %567 = arith.mulf %565, %566 : vector<16x32xf32>
    %568 = vector.broadcast %547 : vector<1x32xf32> to vector<16x32xf32>
    %569 = arith.addf %567, %568 : vector<16x32xf32>
    %570 = arith.truncf %569 : vector<16x32xf32> to vector<16x32xbf16>
    %c1_369 = arith.constant 1 : index
    %c0_370 = arith.constant 0 : index
    %c0_371 = arith.constant 0 : index
    %571 = vector.load %arg18[%c1_369, %c0_370, %c0_371] : memref<2x32x64xbf16, #tpu.memory_space<vmem>>, vector<1x32x64xbf16>
    %572 = vector.shape_cast %571 : vector<1x32x64xbf16> to vector<32x64xbf16>
    %cst_372 = arith.constant dense<0.000000e+00> : vector<16x64xf32>
    %573 = tpu.matmul %570, %572, %cst_372 {dimension_numbers = #tpu.dot_dimension_numbers<[1], [0], [0], [1], [0, 0, 1, 1], [], []>} : vector<16x32xbf16>, vector<32x64xbf16>, vector<16x64xf32> -> vector<16x64xf32>
    %c1_373 = arith.constant 1 : index
    %c0_374 = arith.constant 0 : index
    %c0_375 = arith.constant 0 : index
    %574 = vector.load %arg19[%c1_373, %c0_374, %c0_375] : memref<2x1x64xf32, #tpu.memory_space<vmem>>, vector<1x1x64xf32>
    %575 = vector.shape_cast %574 : vector<1x1x64xf32> to vector<1x64xf32>
    %576 = vector.broadcast %575 : vector<1x64xf32> to vector<16x64xf32>
    %577 = arith.addf %573, %576 : vector<16x64xf32>
    %cst_376 = arith.constant 1.702000e+00 : f32
    %578 = vector.broadcast %cst_376 : f32 to vector<16x64xf32>
    %579 = arith.mulf %578, %577 : vector<16x64xf32>
    %580 = arith.negf %579 : vector<16x64xf32>
    %581 = math.exp %580 : vector<16x64xf32>
    %cst_377 = arith.constant 1.000000e+00 : f32
    %582 = vector.broadcast %cst_377 : f32 to vector<16x64xf32>
    %583 = arith.addf %582, %581 : vector<16x64xf32>
    %584 = arith.divf %582, %583 : vector<16x64xf32>
    %585 = arith.mulf %577, %584 : vector<16x64xf32>
    %586 = arith.truncf %585 : vector<16x64xf32> to vector<16x64xbf16>
    %c1_378 = arith.constant 1 : index
    %c0_379 = arith.constant 0 : index
    %c0_380 = arith.constant 0 : index
    %587 = vector.load %arg20[%c1_378, %c0_379, %c0_380] : memref<2x64x32xbf16, #tpu.memory_space<vmem>>, vector<1x64x32xbf16>
    %588 = vector.shape_cast %587 : vector<1x64x32xbf16> to vector<64x32xbf16>
    %cst_381 = arith.constant dense<0.000000e+00> : vector<16x32xf32>
    %589 = tpu.matmul %586, %588, %cst_381 {dimension_numbers = #tpu.dot_dimension_numbers<[1], [0], [0], [1], [0, 0, 1, 1], [], []>} : vector<16x64xbf16>, vector<64x32xbf16>, vector<16x32xf32> -> vector<16x32xf32>
    %590 = arith.addf %543, %589 : vector<16x32xf32>
    %c1_382 = arith.constant 1 : index
    %c0_383 = arith.constant 0 : index
    %c0_384 = arith.constant 0 : index
    %591 = vector.load %arg21[%c1_382, %c0_383, %c0_384] : memref<2x1x32xf32, #tpu.memory_space<vmem>>, vector<1x1x32xf32>
    %592 = vector.shape_cast %591 : vector<1x1x32xf32> to vector<1x32xf32>
    %593 = vector.broadcast %592 : vector<1x32xf32> to vector<16x32xf32>
    %594 = arith.addf %590, %593 : vector<16x32xf32>
    %595 = vector.shape_cast %594 : vector<16x32xf32> to vector<2x8x32xf32>
    %596 = vector.extract_strided_slice %595 {offsets = [0, 0, 0], sizes = [2, 1, 32], strides = [1, 1, 1]} : vector<2x8x32xf32> to vector<2x1x32xf32>
    %597 = vector.shape_cast %596 : vector<2x1x32xf32> to vector<2x32xf32>
    %c0_385 = arith.constant 0 : index
    %c0_386 = arith.constant 0 : index
    %598 = vector.load %arg22[%c0_385, %c0_386] : memref<1x32xf32, #tpu.memory_space<vmem>>, vector<1x32xf32>
    %599 = vector.broadcast %598 : vector<1x32xf32> to vector<2x32xf32>
    %600 = arith.mulf %597, %599 : vector<2x32xf32>
    %cst_387 = arith.constant dense<0.000000e+00> : vector<2xf32>
    %601 = vector.multi_reduction <add>, %600, %cst_387 [1] : vector<2x32xf32> to vector<2xf32>
    %602 = vector.shape_cast %601 : vector<2xf32> to vector<2x1xf32>
    %c0_388 = arith.constant 0 : index
    %c0_389 = arith.constant 0 : index
    %603 = vector.load %arg1[%c0_388, %c0_389] : memref<2x32xf32, #tpu.memory_space<vmem>>, vector<2x32xf32>
    %c0_390 = arith.constant 0 : index
    %c0_391 = arith.constant 0 : index
    %604 = vector.load %arg23[%c0_390, %c0_391] : memref<1x32xf32, #tpu.memory_space<vmem>>, vector<1x32xf32>
    %605 = vector.broadcast %604 : vector<1x32xf32> to vector<2x32xf32>
    %606 = arith.mulf %603, %605 : vector<2x32xf32>
    %cst_392 = arith.constant dense<0.000000e+00> : vector<2xf32>
    %607 = vector.multi_reduction <add>, %606, %cst_392 [1] : vector<2x32xf32> to vector<2xf32>
    %608 = vector.shape_cast %607 : vector<2xf32> to vector<2x1xf32>
    %609 = arith.addf %602, %608 : vector<2x1xf32>
    %c0_393 = arith.constant 0 : index
    %c0_394 = arith.constant 0 : index
    %610 = vector.load %arg24[%c0_393, %c0_394] : memref<1x1xf32, #tpu.memory_space<vmem>>, vector<1x1xf32>
    %611 = vector.broadcast %610 : vector<1x1xf32> to vector<2x1xf32>
    %612 = arith.addf %609, %611 : vector<2x1xf32>
    %c0_395 = arith.constant 0 : index
    %c0_396 = arith.constant 0 : index
    %613 = vector.load %arg25[%c0_395, %c0_396] : memref<2x1xf32, #tpu.memory_space<vmem>>, vector<2x1xf32>
    tpu.vector_store %arg25[%c0_395, %c0_396], %612 {strides = array<i32>} : memref<2x1xf32, #tpu.memory_space<vmem>>, vector<2x1xf32>,
    return
  }
}

</mosaic_0001>

<bundles_post_ra>
// kernel: pairwise_vit_infer.1
= control target key start
LH: loop header
LB: loop body
LE: loop exit
PB: predicated region body
PF: predicated region fallthrough
CT: control target
= control target key end

     0   :  { %v5731_v0 = vmov 0   ;;  %vm192_vm0 = vcmask 523264   ;;  %vm239_vm1 = vcmask 261120   ;;  %vm5733_vm2 = vmmov 0   ;;  %s6783_s3 = inlined_call_operand.vmem [shape: bf16[192,32], index: 3, kind: input, shape index: {}]   ;;  %s6784_s0 = inlined_call_operand.vmem [shape: bf16[16,192], index: 0, kind: input, shape index: {}]   ;;  %s6785_s2 = inlined_call_operand.vmem [shape: f32[16,32], index: 2, kind: input, shape index: {}]   ;;  %s6786_s4 = inlined_call_operand.vmem [shape: f32[1,32], index: 4, kind: input, shape index: {}]   ;;  %s6787_s5 = inlined_call_operand.vmem [shape: f32[1,32], index: 5, kind: input, shape index: {}]   ;;  %s6788_s8 = inlined_call_operand.vmem [shape: bf16[2,4,32,8], index: 8, kind: input, shape index: {}]   ;;  %s6789_s9 = inlined_call_operand.vmem [shape: bf16[2,4,32,8], index: 9, kind: input, shape index: {}]   ;;  %s6790_s10 = inlined_call_operand.vmem [shape: bf16[2,4,32,8], index: 10, kind: input, shape index: {}]   ;;  %s6791_s6 = inlined_call_operand.vmem [shape: f32[2,1,32], index: 6, kind: input, shape index: {}]   ;;  %s6792_s7 = inlined_call_operand.vmem [shape: f32[2,1,32], index: 7, kind: input, shape index: {}]   ;;  %s6793_s12 = inlined_call_operand.vmem [shape: f32[2,4,1,8], index: 12, kind: input, shape index: {}]   ;;  %s6794_s11 = inlined_call_operand.vmem [shape: f32[2,4,1,8], index: 11, kind: input, shape index: {}]   ;;  %s6795_s13 = inlined_call_operand.vmem [shape: f32[2,4,1,8], index: 13, kind: input, shape index: {}]   ;;  %s6796_s14 = inlined_call_operand.vmem [shape: bf16[2,4,8,32], index: 14, kind: input, shape index: {}]   ;;  %s6797_s15 = inlined_call_operand.vmem [shape: f32[2,1,32], index: 15, kind: input, shape index: {}]   ;;  %s6798_s18 = inlined_call_operand.vmem [shape: bf16[2,32,64], index: 18, kind: input, shape index: {}]   ;;  %s6799_s16 = inlined_call_operand.vmem [shape: f32[2,1,32], index: 16, kind: input, shape index: {}]   ;;  %s6800_s17 = inlined_call_operand.vmem [shape: f32[2,1,32], index: 17, kind: input, shape index: {}]   ;;  %s6801_s20 = inlined_call_operand.vmem [shape: bf16[2,64,32], index: 20, kind: input, shape index: {}]   ;;  %s6802_s19 = inlined_call_operand.vmem [shape: f32[2,1,64], index: 19, kind: input, shape index: {}]   ;;  %s6803_s21 = inlined_call_operand.vmem [shape: f32[2,1,32], index: 21, kind: input, shape index: {}]   ;;  %s6804_s1 = inlined_call_operand.vmem [shape: f32[2,32], index: 1, kind: input, shape index: {}]   ;;  %s6805_s23 = inlined_call_operand.vmem [shape: f32[1,32], index: 23, kind: input, shape index: {}]   ;;  %s6806_s24 = inlined_call_operand.<no memory space> [shape: f32[1,1], index: 24, kind: input, shape index: {}]   ;;  %s6807_s22 = inlined_call_operand.vmem [shape: f32[1,32], index: 22, kind: input, shape index: {}]   ;;  %s6808_s25 = inlined_call_operand.vmem [shape: f32[2,1], index: 25, kind: output, shape index: {}]  }
   0x1   :  { %6817 = sst [smem:[#allocation3_spill]] %s6783_s3  ;;  %196 = vmatprep.subr.bf16.mxu0 %v5731_v0  ;;  %vm533_vm3 = vcmask 64512   ;;  %vm653_vm4 = vcmask 1043456   ;;  %vm4560_vm6 = vcmask 254976   ;;  %vm4557_vm7 = vcmask 1041409  }
   0x2   :  { %6818 = sst [smem:[#allocation4_spill]] %s6784_s0  ;;  %vm4585_vm8 = vcmask 1024  }
   0x3   :  { %6819 = sst [smem:[#allocation5_spill]] %s6785_s2  ;;  %s6828_s28 = sld [smem:[#allocation4_spill]] }
   0x4   :  { %6820 = sst [smem:[#allocation6_spill]] %s6786_s4  ;;  %s6829_s4 = sld [smem:[#allocation5_spill]] }
   0x5   :  { %6821 = sst [smem:[#allocation7_spill]] %s6787_s5 }
   0x6   :  { %6822 = sst [smem:[#allocation8_spill]] %s6788_s8 }
   0x7   :  { %6823 = sst [smem:[#allocation9_spill]] %s6789_s9  ;;  %s6827_s9 = sld [smem:[#allocation3_spill]] }
   0x8   :  { %6824 = sst [smem:[#allocation10_spill]] %s6790_s10  ;;  %s6832_s29 = sld [smem:[#allocation8_spill]] }
   0x9   :  { %6825 = sst [smem:[#allocation11_spill]] %s6791_s6  ;;  %v5570_v5 = vld [vmem:[%s6828_s28 + $0x4] ss:$8 sps:$4 sm:$0xff]   ;;  %v5568_v14 = vld [vmem:[%s6828_s28] ss:$8 sps:$4 sm:$0xff]   ;;  %s6830_s6 = sld [smem:[#allocation6_spill]] }
   0xa   :  { %6826 = sst [smem:[#allocation12_spill]] %s6792_s7  ;;  %4605 = vmatprep.mubr.msk.bf16.mxu0 %vm192_vm0, %v5570_v5  ;;  %v109_v15 = vld [vmem:[%s6829_s4] sm:$0xff]  ;;  %v110_v17 = vld [vmem:[%s6829_s4 + $0x8] sm:$0xff]  ;;  %s6831_s7 = sld [smem:[#allocation7_spill]] }
   0xb   :  { %s6833_s10 = sld [smem:[#allocation9_spill]]  ;;  %s6834_s27 = sld [smem:[#allocation11_spill]] }
   0xc   :  { %s6835_s8 = sld [smem:[#allocation12_spill]] }
   0xd   :  { %v5556_v1 = vld [vmem:[%s6827_s9] sm:$0xff]   ;;  %v5557_v2 = vld [vmem:[%s6827_s9 + $0x8] sm:$0xff]   ;;  %v5558_v3 = vld [vmem:[%s6827_s9 + $0x10] sm:$0xff]  }
   0xe   :  { %197 = vmatpush1.bf16.msra.mxu0 %v5556_v1  ;;  %v5559_v4 = vld [vmem:[%s6827_s9 + $0x18] sm:$0xff]   ;;  %v5560_v6 = vld [vmem:[%s6827_s9 + $0x20] sm:$0xff]   ;;  %v5561_v7 = vld [vmem:[%s6827_s9 + $0x28] sm:$0xff]  }
   0xf   :  { %198 = vmatprep.subr.bf16.mxu0 %v5731_v0  ;;  %v5562_v8 = vld [vmem:[%s6827_s9 + $0x30] sm:$0xff]   ;;  %v5563_v9 = vld [vmem:[%s6827_s9 + $0x38] sm:$0xff]   ;;  %v5564_v10 = vld [vmem:[%s6827_s9 + $0x40] sm:$0xff]  }
  0x10   :  { %v5565_v11 = vld [vmem:[%s6827_s9 + $0x48] sm:$0xff]   ;;  %v5566_v12 = vld [vmem:[%s6827_s9 + $0x50] sm:$0xff]   ;;  %v5567_v13 = vld [vmem:[%s6827_s9 + $0x58] sm:$0xff]   ;;  %s6836_s9 = sld [smem:[#allocation10_spill]] }
  0x11   :  { %v4606_v42 = vld [vmem:[%s6830_s6] ss:$0 sm:$0xff]  ;;  %v5572_v1 = vld [vmem:[%s6833_s10 + $0x10] sm:$0xff]  }
  0x12   :  { %199 = vmatpush1.bf16.msra.mxu0 %v5557_v2  ;;  %v4607_v44 = vld [vmem:[%s6831_s7] ss:$0 sm:$0xff]  ;;  %v5573_v2 = vld [vmem:[%s6832_s29 + $0x8] sm:$0xff]  }
  0x13   :  { %200 = vmatprep.subr.bf16.mxu0 %v5731_v0  ;;  %v5571_v63 = vld [vmem:[%s6832_s29] sm:$0xff]  }
  0x16   :  { %201 = vmatpush1.bf16.msra.mxu0 %v5558_v3  ;;  %v5574_v3 = vld [vmem:[%s6833_s10 + $0x18] sm:$0xff]  }
  0x17   :  { %202 = vmatprep.subr.bf16.mxu0 %v5731_v0 }
  0x1a   :  { %203 = vmatpush1.bf16.msra.mxu0 %v5559_v4 }
  0x1b   :  { %204 = vmatprep.subr.bf16.mxu0 %v5731_v0 }
  0x1e   :  { %205 = vmatpush1.bf16.msra.mxu0 %v5560_v6 }
  0x1f   :  { %206 = vmatprep.subr.bf16.mxu0 %v5731_v0 }
  0x22   :  { %207 = vmatpush1.bf16.msra.mxu0 %v5561_v7 }
  0x23   :  { %208 = vmatprep.subr.bf16.mxu0 %v5731_v0 }
  0x26   :  { %209 = vmatpush1.bf16.msra.mxu0 %v5562_v8 }
  0x27   :  { %210 = vmatprep.subr.bf16.mxu0 %v5731_v0 }
  0x2a   :  { %211 = vmatpush1.bf16.msra.mxu0 %v5563_v9 }
  0x2b   :  { %212 = vmatprep.subr.bf16.mxu0 %v5731_v0 }
  0x2e   :  { %213 = vmatpush1.bf16.msra.mxu0 %v5564_v10 }
  0x2f   :  { %214 = vmatprep.subr.bf16.mxu0 %v5731_v0 }
  0x32   :  { %215 = vmatpush1.bf16.msra.mxu0 %v5565_v11 }
  0x33   :  { %216 = vmatprep.subr.bf16.mxu0 %v5731_v0 }
  0x36   :  { %217 = vmatpush1.bf16.msra.mxu0 %v5566_v12  ;;  %v4608_v12 = vld [vmem:[%s6834_s27] ss:$0 sm:$0xff] }
  0x37   :  { %218 = vmatprep.subr.bf16.mxu0 %v5731_v0  ;;  %v5732_v0 = vmov 0.0  }
  0x38   :  { %5080 = vmatprep.subr.bf16.mxu1 %v5732_v0  ;;  %5084 = vmatprep.mubr.msk.bf16.mxu1 %vm5733_vm2, %v5732_v0 }
  0x39   :  { %5081 = vmatpush3.bf16.msra.mxu1 %v5571_v63 }
  0x3a   :  { %219 = vmatpush1.bf16.msra.mxu0 %v5567_v13  ;;  %5082 = vmatprep.subr.bf16.mxu1 %v5732_v0 }
  0x3b   :  { %5136 = vmatprep.subr.bf16.mxu0 %v5732_v0 }
  0x3d   :  { %229 = vmatmul.mubr.bf16.vlgmr.msra.gmra.mrb[0].mxu0 %v5568_v14  ;;  %5083 = vmatpush3.bf16.msra.mxu1 %v5573_v2  ;;  %v283_v2 = vlaneseq }
  0x3e   :  { %5137 = vmatpush3.bf16.msra.mxu0 %v5572_v1  ;;  %5088 = vmatprep.subr.bf16.mxu1 %v5732_v0 }
  0x3f   :  { %5138 = vmatprep.subr.bf16.mxu0 %v5732_v0  ;;  %5140 = vmatprep.mubr.msk.bf16.mxu0 %vm5733_vm2, %v5732_v0 }
  0x42   :  { %5139 = vmatpush3.bf16.msra.mxu0 %v5574_v3  ;;  %v284_v3 = vand.u32 127, %v283_v2  ;;  %v4649_v2 = vld [vmem:[%s6795_s13 + $0x1] ss:$0 sm:$0xff] }
  0x43   :  { %5152 = vmatprep.subr.bf16.mxu0 %v5732_v0 }
  0x44   :  { %vm285_vm5 = vcmp.lt.s32.totalorder %v284_v3, 5 }
 0x110   :  { %v230_v16 = vpop.f32.mrb[0].mxu0 }
 0x111   :  { %v231_v18 = vadd.f32 %v230_v16, %v109_v15  ;;  %v232_v19 = vpop.f32.mrb[1].mxu0  ;;  %v4609_v16 = vld [vmem:[%s6835_s8] ss:$0 sm:$0xff] }
 0x112   :  { %v233_v20 = vpop.f32.mrb[2].mxu0 }
 0x113   :  { %v234_v21 = vadd.f32 %v233_v20, %v110_v17  ;;  %v235_v22 = vpop.f32.mrb[3].mxu0  ;;  %v240_v23 = vsel %vm239_vm1, %v231_v18, 0.0  ;;  %v5575_v20 = vld [vmem:[%s6833_s10] sm:$0xff]  }
 0x114   :  { %241 = vadd.xlane.f32.xlu0 %v240_v23  ;;  %v5576_v22 = vld [vmem:[%s6833_s10 + $0x8] sm:$0xff]   ;;  %v5577_v23 = vld [vmem:[%s6836_s9] sm:$0xff]  }
 0x115   :  { %v243_v24 = vsel %vm239_vm1, %v234_v21, 0.0 }
 0x118   :  { %244 = vadd.xlane.f32.xlu0 %v243_v24  ;;  %v5578_v24 = vld [vmem:[%s6836_s9 + $0x8] sm:$0xff]  }
 0x1a1   :  { %v242_v25 = vpop.xlane.xlu0 %241 }
 0x1a2   :  { %v247_v26 = vmul.f32 0.03125, %v242_v25  ;;  %v4640_v25 = vld [vmem:[%s6793_s12 + $0x1] ss:$0 sm:$0xff] }
 0x1a4   :  { %v249_v27 = vsub.f32 %v231_v18, %v247_v26 }
 0x1a5   :  { %v245_v28 = vpop.xlane.xlu0 %244 }
 0x1a6   :  { %v248_v29 = vmul.f32 0.03125, %v245_v28  ;;  %v251_v30 = vmul.f32 %v249_v27, %v249_v27 }
 0x1a8   :  { %v250_v31 = vsub.f32 %v234_v21, %v248_v29  ;;  %v253_v32 = vsel %vm239_vm1, %v251_v30, 0.0 }
 0x1a9   :  { %254 = vadd.xlane.f32.xlu1 %v253_v32 }
 0x1aa   :  { %v252_v33 = vmul.f32 %v250_v31, %v250_v31 }
 0x1ac   :  { %v256_v34 = vsel %vm239_vm1, %v252_v33, 0.0 }
 0x1ad   :  { %257 = vadd.xlane.f32.xlu1 %v256_v34 }
 0x236   :  { %v255_v35 = vpop.xlane.xlu1 %254 }
 0x237   :  { %v259_v36 = vmul.f32 0.03125, %v255_v35 }
 0x239   :  { %v261_v37 = vadd.f32 1e-05, %v259_v36 }
 0x23a   :  { %v258_v38 = vpop.xlane.xlu1 %257 }
 0x23b   :  { %5631 = vrsqrt.f32 %v261_v37  ;;  %v260_v39 = vmul.f32 0.03125, %v258_v38  ;;  %v4614_v38 = vld [vmem:[%s6793_s12] ss:$0 sm:$0xff] }
 0x23d   :  { %v262_v40 = vadd.f32 1e-05, %v260_v39 }
 0x23f   :  { %5633 = vrsqrt.f32 %v262_v40 }
 0x245   :  { %v5632_v41 = vpop.eup %5631 }
 0x246   :  { %v265_v43 = vmul.f32 %v5632_v41, %v249_v27 }
 0x248   :  { %v273_v45 = vmul.f32 %v4606_v42, %v265_v43 }
 0x249   :  { %v5634_v46 = vpop.eup %5633 }
 0x24a   :  { %v5924_v47 = vadd.f32 %v4607_v44, %v273_v45  ;;  %v266_v48 = vmul.f32 %v5634_v46, %v250_v31  ;;  %v4610_v45 = vld [vmem:[%s6794_s11] ss:$0 sm:$0xff] }
 0x24c   :  { %v289_v49 = vsel %vm239_vm1, %v5924_v47, 0.0  ;;  %v274_v50 = vmul.f32 %v4606_v42, %v266_v48 }
 0x24d   :  { %290 = vadd.xlane.f32.xlu0 %v289_v49 }
 0x24e   :  { %v5928_v51 = vadd.f32 %v4607_v44, %v274_v50 }
 0x250   :  { %v292_v52 = vsel %vm239_vm1, %v5928_v51, 0.0 }
 0x251   :  { %293 = vadd.xlane.f32.xlu1 %v292_v52 }
 0x2da   :  { %v291_v53 = vpop.xlane.xlu0 %290 }
 0x2db   :  { %v295_v54 = vmul.f32 0.03125, %v291_v53 }
 0x2dd   :  { %v297_v55 = vsub.f32 %v5924_v47, %v295_v54  ;;  %v4618_v54 = vld [vmem:[%s6795_s13] ss:$0 sm:$0xff] }
 0x2de   :  { %v294_v56 = vpop.xlane.xlu1 %293 }
 0x2df   :  { %v296_v57 = vmul.f32 0.03125, %v294_v56  ;;  %v299_v58 = vmul.f32 %v297_v55, %v297_v55 }
 0x2e1   :  { %v298_v59 = vsub.f32 %v5928_v51, %v296_v57  ;;  %v301_v60 = vsel %vm239_vm1, %v299_v58, 0.0 }
 0x2e2   :  { %302 = vadd.xlane.f32.xlu0 %v301_v60 }
 0x2e3   :  { %v300_v61 = vmul.f32 %v298_v59, %v298_v59 }
 0x2e5   :  { %v304_v62 = vsel %vm239_vm1, %v300_v61, 0.0 }
 0x2e6   :  { %305 = vadd.xlane.f32.xlu1 %v304_v62 }
 0x36f   :  { %v303_v4 = vpop.xlane.xlu0 %302 }
 0x370   :  { %v307_v5 = vmul.f32 0.03125, %v303_v4  ;;  %v5734_v4 = vmov -1e+30  }
 0x372   :  { %v309_v6 = vadd.f32 1e-05, %v307_v5  ;;  %v6026_v5 = vsel %vm285_vm5, 0.0, %v5734_v4 }
 0x373   :  { %v306_v7 = vpop.xlane.xlu1 %305 }
 0x374   :  { %5635 = vrsqrt.f32 %v309_v6  ;;  %v308_v8 = vmul.f32 0.03125, %v306_v7 }
 0x376   :  { %v310_v9 = vadd.f32 1e-05, %v308_v8 }
 0x378   :  { %5637 = vrsqrt.f32 %v310_v9 }
 0x37e   :  { %v5636_v10 = vpop.eup %5635 }
 0x37f   :  { %v313_v11 = vmul.f32 %v5636_v10, %v297_v55 }
 0x381   :  { %v321_v14 = vmul.f32 %v4608_v12, %v313_v11 }
 0x382   :  { %v5638_v13 = vpop.eup %5637 }
 0x383   :  { %v314_v15 = vmul.f32 %v5638_v13, %v298_v59  ;;  %v329_v18 = vadd.f32 %v4609_v16, %v321_v14 }
 0x385   :  { %v322_v17 = vmul.f32 %v4608_v12, %v314_v15 }
 0x387   :  { %v330_v19 = vadd.f32 %v4609_v16, %v322_v17 }
 0x389   :  { %v5967_v21 = vpack.c.bf16 %v330_v19, %v329_v18 }
 0x38b   :  { %5085 = vmatmul.mubr.msk.bf16.vlgmr.msra.gmra.mrb[0].mxu1 %vm239_vm1, %v5967_v21  ;;  %5141 = vmatmul.mubr.msk.bf16.vlgmr.msra.gmra.mrb[4].mxu0 %vm239_vm1, %v5967_v21 }
 0x38c   :  { %5089 = vmatpush3.bf16.msra.mxu1 %v5575_v20  ;;  %5092 = vmatprep.mubr.msk.bf16.mxu1 %vm5733_vm2, %v5732_v0 }
 0x38d   :  { %5090 = vmatprep.subr.bf16.mxu1 %v5732_v0  ;;  %5154 = vmatprep.mubr.msk.bf16.mxu0 %vm5733_vm2, %v5732_v0 }
 0x390   :  { %5091 = vmatpush3.bf16.msra.mxu1 %v5576_v22 }
 0x391   :  { %5096 = vmatprep.subr.bf16.mxu1 %v5732_v0 }
 0x393   :  { %5093 = vmatmul.mubr.msk.bf16.vlgmr.msra.gmra.mrb[4].mxu1 %vm239_vm1, %v5967_v21 }
 0x394   :  { %5097 = vmatpush3.bf16.msra.mxu1 %v5577_v23  ;;  %5100 = vmatprep.mubr.msk.bf16.mxu1 %vm5733_vm2, %v5732_v0 }
 0x395   :  { %5098 = vmatprep.subr.bf16.mxu1 %v5732_v0 }
 0x398   :  { %5099 = vmatpush3.bf16.msra.mxu1 %v5578_v24 }
 0x399   :  { %5104 = vmatprep.subr.bf16.mxu1 %v5732_v0 }
 0x39b   :  { %5101 = vmatmul.mubr.msk.bf16.vlgmr.msra.gmra.mrb[8].mxu1 %vm239_vm1, %v5967_v21 }
 0x39c   :  { %5106 = vmatprep.mubr.msk.bf16.mxu1 %vm5733_vm2, %v5732_v0 }
 0x45e   :  { %v392_v26 = vpop.f32.mrb[0].mxu1  ;;  %v870_v27 = vpop.f32.mrb[4].mxu0 }
 0x45f   :  { %v871_v28 = vadd.f32 %v4640_v25, %v870_v27  ;;  %v5086_v29 = vpop.f32.mrb[1].mxu1  ;;  %v5142_v30 = vpop.f32.mrb[5].mxu0  ;;  %v393_v49 = vadd.f32 %v4610_v45, %v392_v26 }
 0x460   :  { %v395_v31 = vpop.f32.mrb[2].mxu1  ;;  %v873_v32 = vpop.f32.mrb[6].mxu0 }
 0x461   :  { %v945_v33 = vpack.c.bf16 %v871_v28, %v871_v28  ;;  %v6001_v34 = vadd.f32 %v4640_v25, %v873_v32  ;;  %v5087_v35 = vpop.f32.mrb[3].mxu1  ;;  %v5143_v36 = vpop.f32.mrb[7].mxu0  ;;  %v527_v56 = vpack.c.bf16 %v393_v49, %v393_v49  ;;  %v396_v61 = vadd.f32 %v4610_v45, %v395_v31 }
 0x463   :  { %v953_v37 = vsel %vm533_vm3, %v945_v33, 0  ;;  %v528_v63 = vpack.c.bf16 %v396_v61, %v396_v61 }
 0x464   :  { %5153 = vmatpush3.bf16.xpose.msra.mxu0 %v953_v37 }
 0x465   :  { %5164 = vmatprep.subr.bf16.mxu0 %v5732_v0 }
 0x466   :  { %v456_v39 = vpop.f32.mrb[4].mxu1 }
 0x467   :  { %v457_v40 = vadd.f32 %v4614_v38, %v456_v39  ;;  %v5094_v41 = vpop.f32.mrb[5].mxu1  ;;  %v5579_v39 = vld [vmem:[%s6832_s29 + $0x10] sm:$0xff]  }
 0x468   :  { %v459_v42 = vpop.f32.mrb[6].mxu1  ;;  %v5580_v41 = vld [vmem:[%s6832_s29 + $0x18] sm:$0xff]  }
 0x469   :  { %v529_v43 = vpack.c.bf16 %v457_v40, %v457_v40  ;;  %v5095_v44 = vpop.f32.mrb[7].mxu1  ;;  %v460_v48 = vadd.f32 %v4614_v38, %v459_v42  ;;  %v5581_v42 = vld [vmem:[%s6836_s9 + $0x10] sm:$0xff]  }
 0x46a   :  { %v946_v44 = vpack.c.bf16 %v6001_v34, %v6001_v34 }
 0x46b   :  { %v538_v46 = vsel %vm533_vm3, %v529_v43, 0  ;;  %v530_v52 = vpack.c.bf16 %v460_v48, %v460_v48  ;;  %v5582_v43 = vld [vmem:[%s6836_s9 + $0x18] sm:$0xff]  }
 0x46c   :  { %5105 = vmatpush3.bf16.xpose.msra.mxu1 %v538_v46  ;;  %v999_v45 = vsel %vm533_vm3, %v946_v44, 0  ;;  %v744_v44 = vld [vmem:[%s6796_s14] sm:$0xf] }
 0x46d   :  { %5110 = vmatprep.subr.bf16.mxu1 %v5732_v0  ;;  %v584_v59 = vsel %vm533_vm3, %v530_v52, 0 }
 0x46e   :  { %v520_v50 = vpop.f32.mrb[8].mxu1 }
 0x46f   :  { %v5102_v53 = vpop.f32.mrb[9].mxu1  ;;  %v521_v60 = vadd.f32 %v4618_v54, %v520_v50 }
 0x470   :  { %v523_v55 = vpop.f32.mrb[10].mxu1 }
 0x471   :  { %v524_v57 = vadd.f32 %v4618_v54, %v523_v55  ;;  %v5103_v58 = vpop.f32.mrb[11].mxu1  ;;  %v531_v62 = vpack.c.bf16 %v521_v60, %v521_v60 }
 0x473   :  { %5107 = vmatmul.mubr.msk.bf16.vlgmr.msra.gmra.mrb[12].mxu1 %vm533_vm3, %v527_v56  ;;  %v655_v1 = vsel %vm653_vm4, %v531_v62, 0  ;;  %v532_v32 = vpack.c.bf16 %v524_v57, %v524_v57  ;;  %v4631_v56 = vld [vmem:[%s6794_s11 + $0x1] ss:$0 sm:$0xff] }
 0x474   :  { %5111 = vmatpush3.bf16.xpose.msra.mxu1 %v584_v59  ;;  %5112 = vmatprep.mubr.msk.bf16.mxu1 %vm5733_vm2, %v5732_v0 }
 0x475   :  { %5116 = vmatprep.subr.bf16.mxu1 %v5732_v0  ;;  %v701_v36 = vsel %vm653_vm4, %v532_v32, 0 }
 0x47b   :  { %5113 = vmatmul.mubr.msk.bf16.vlgmr.msra.gmra.mrb[16].mxu1 %vm533_vm3, %v528_v63 }
 0x47c   :  { %5117 = vmatpush3.bf16.msra.mxu1 %v655_v1  ;;  %5118 = vmatprep.mubr.msk.bf16.mxu1 %vm5733_vm2, %v5732_v0 }
 0x47d   :  { %5122 = vmatprep.subr.bf16.mxu1 %v5732_v0 }
 0x546   :  { %v574_v6 = vpop.f32.mrb[12].mxu1 }
 0x547   :  { %v575_v7 = vadd.f32 %v574_v6, %v6026_v5  ;;  %v5108_v8 = vpop.f32.mrb[13].mxu1 }
 0x548   :  { %v577_v9 = vpop.f32.mrb[14].mxu1 }
 0x549   :  { %v5109_v10 = vpop.f32.mrb[15].mxu1  ;;  %v626_v11 = vsel %vm533_vm3, %v575_v7, -inf }
 0x54a   :  { %627 = vmax.xlane.f32.xlu0 %v626_v11 }
 0x54e   :  { %v620_v12 = vpop.f32.mrb[16].mxu1 }
 0x54f   :  { %v621_v13 = vadd.f32 %v620_v12, %v6026_v5  ;;  %v5114_v14 = vpop.f32.mrb[17].mxu1 }
 0x550   :  { %v623_v15 = vpop.f32.mrb[18].mxu1 }
 0x551   :  { %v5115_v16 = vpop.f32.mrb[19].mxu1  ;;  %v629_v17 = vsel %vm533_vm3, %v621_v13, -inf }
 0x552   :  { %630 = vmax.xlane.f32.xlu1 %v629_v17 }
 0x5d7   :  { %v628_v18 = vpop.xlane.xlu0 %627 }
 0x5d8   :  { %v632_v19 = vsub.f32 %v575_v7, %v628_v18 }
 0x5da   :  { %v634_v20 = vmul.f32 1.442695, %v632_v19 }
 0x5dc   :  { %5639 = vpow2.f32 %v634_v20 }
 0x5df   :  { %v631_v22 = vpop.xlane.xlu1 %630 }
 0x5e0   :  { %v633_v23 = vsub.f32 %v621_v13, %v631_v22 }
 0x5e2   :  { %v636_v24 = vmul.f32 1.442695, %v633_v23 }
 0x5e4   :  { %5641 = vpow2.f32 %v636_v24 }
 0x5e6   :  { %v5640_v25 = vpop.eup %5639 }
 0x5e7   :  { %v638_v26 = vsel %vm533_vm3, %v5640_v25, 0.0 }
 0x5e8   :  { %639 = vadd.xlane.f32.xlu0 %v638_v26 }
 0x5ee   :  { %v5642_v27 = vpop.eup %5641 }
 0x5ef   :  { %v641_v28 = vsel %vm533_vm3, %v5642_v27, 0.0 }
 0x5f0   :  { %642 = vadd.xlane.f32.xlu1 %v641_v28 }
 0x675   :  { %v640_v29 = vpop.xlane.xlu0 %639 }
 0x676   :  { %5643 = vrcp.f32 %v640_v29 }
 0x67d   :  { %v643_v30 = vpop.xlane.xlu1 %642 }
 0x67e   :  { %5645 = vrcp.f32 %v643_v30 }
 0x680   :  { %v5644_v31 = vpop.eup %5643 }
 0x681   :  { %v646_v33 = vmul.f32 %v5644_v31, %v5640_v25 }
 0x683   :  { %v648_v35 = vpack.c.bf16 %v646_v33, %v646_v33 }
 0x685   :  { %5119 = vmatmul.mubr.msk.bf16.vlgmr.msra.gmra.mrb[20].mxu1 %vm533_vm3, %v648_v35 }
 0x686   :  { %5123 = vmatpush3.bf16.msra.mxu1 %v701_v36  ;;  %5124 = vmatprep.mubr.msk.bf16.mxu1 %vm5733_vm2, %v5732_v0 }
 0x687   :  { %5128 = vmatprep.subr.bf16.mxu1 %v5732_v0 }
 0x688   :  { %v5646_v37 = vpop.eup %5645 }
 0x689   :  { %v647_v38 = vmul.f32 %v5646_v37, %v5642_v27 }
 0x68b   :  { %v649_v40 = vpack.c.bf16 %v647_v38, %v647_v38 }
 0x68d   :  { %5125 = vmatmul.mubr.msk.bf16.vlgmr.msra.gmra.mrb[24].mxu1 %vm533_vm3, %v649_v40 }
 0x68e   :  { %5129 = vmatpush3.bf16.msra.mxu1 %v5579_v39  ;;  %5132 = vmatprep.mubr.msk.bf16.mxu1 %vm5733_vm2, %v5732_v0 }
 0x68f   :  { %5130 = vmatprep.subr.bf16.mxu1 %v5732_v0 }
 0x692   :  { %5131 = vmatpush3.bf16.msra.mxu1 %v5580_v41  ;;  %v4657_v41 = vld [vmem:[%s6796_s14 + $0x4] sm:$0xf] }
 0x693   :  { %5144 = vmatprep.subr.bf16.mxu1 %v5732_v0 }
 0x695   :  { %5133 = vmatmul.mubr.msk.bf16.vlgmr.msra.gmra.mrb[28].mxu1 %vm239_vm1, %v5967_v21 }
 0x696   :  { %5145 = vmatpush3.bf16.msra.mxu1 %v5581_v42  ;;  %5148 = vmatprep.mubr.msk.bf16.mxu1 %vm5733_vm2, %v5732_v0 }
 0x697   :  { %5146 = vmatprep.subr.bf16.mxu1 %v5732_v0 }
 0x69a   :  { %5147 = vmatpush3.bf16.msra.mxu1 %v5582_v43 }
 0x69b   :  { %5158 = vmatprep.subr.bf16.mxu1 %v5732_v0 }
 0x69d   :  { %5149 = vmatmul.mubr.msk.bf16.vlgmr.msra.gmra.mrb[32].mxu1 %vm239_vm1, %v5967_v21 }
 0x69e   :  { %5160 = vmatprep.mubr.msk.bf16.mxu1 %vm5733_vm2, %v5732_v0 }
 0x6a3   :  { %5159 = vmatpush3.bf16.xpose.msra.mxu1 %v999_v45 }
 0x6a4   :  { %5170 = vmatprep.subr.bf16.mxu1 %v5732_v0 }
 0x758   :  { %v6070_v46 = vpop.f32.mrb[20].mxu1 }
 0x759   :  { %v5120_v48 = vpop.f32.mrb[21].mxu1 }
 0x75a   :  { %v694_v49 = vpop.f32.mrb[22].mxu1 }
 0x75b   :  { %v5121_v50 = vpop.f32.mrb[23].mxu1  ;;  %v1164_v49 = vsel %vm653_vm4, %v4657_v41, 0 }
 0x760   :  { %v6072_v52 = vpop.f32.mrb[24].mxu1 }
 0x761   :  { %v743_v53 = vpack.c.bf16 %v6072_v52, %v6070_v46  ;;  %v5126_v54 = vpop.f32.mrb[25].mxu1 }
 0x762   :  { %v740_v34 = vpop.f32.mrb[26].mxu1  ;;  %v1211_v54 = vsel %vm653_vm4, %v744_v44, 0 }
 0x763   :  { %v5127_v55 = vpop.f32.mrb[27].mxu1  ;;  %v5583_v34 = vld [vmem:[%s6833_s10 + $0x20] sm:$0xff]  }
 0x764   :  { %v5584_v55 = vld [vmem:[%s6833_s10 + $0x28] sm:$0xff]  }
 0x768   :  { %v804_v57 = vpop.f32.mrb[28].mxu1 }
 0x769   :  { %v805_v58 = vadd.f32 %v4631_v56, %v804_v57  ;;  %v5134_v59 = vpop.f32.mrb[29].mxu1  ;;  %v5585_v57 = vld [vmem:[%s6832_s29 + $0x20] sm:$0xff]  }
 0x76a   :  { %v807_v60 = vpop.f32.mrb[30].mxu1 }
 0x76b   :  { %v943_v61 = vpack.c.bf16 %v805_v58, %v805_v58  ;;  %v808_v62 = vadd.f32 %v4631_v56, %v807_v60  ;;  %v5135_v63 = vpop.f32.mrb[31].mxu1 }
 0x76c   :  { %v5586_v63 = vld [vmem:[%s6832_s29 + $0x28] sm:$0xff]  }
 0x76d   :  { %v944_v1 = vpack.c.bf16 %v808_v62, %v808_v62  ;;  %5155 = vmatmul.mubr.msk.bf16.vlgmr.msra.gmra.mrb[8].mxu0 %vm533_vm3, %v943_v61 }
 0x76e   :  { %5166 = vmatprep.mubr.msk.bf16.mxu0 %vm5733_vm2, %v5732_v0 }
 0x76f   :  { %5161 = vmatmul.mubr.msk.bf16.vlgmr.msra.gmra.mrb[36].mxu1 %vm533_vm3, %v944_v1 }
 0x770   :  { %v936_v3 = vpop.f32.mrb[32].mxu1  ;;  %5172 = vmatprep.mubr.msk.bf16.mxu1 %vm5733_vm2, %v5732_v0 }
 0x771   :  { %v937_v4 = vadd.f32 %v4649_v2, %v936_v3  ;;  %v5150_v6 = vpop.f32.mrb[33].mxu1 }
 0x772   :  { %v939_v7 = vpop.f32.mrb[34].mxu1 }
 0x773   :  { %v947_v8 = vpack.c.bf16 %v937_v4, %v937_v4  ;;  %v940_v9 = vadd.f32 %v4649_v2, %v939_v7  ;;  %v5151_v10 = vpop.f32.mrb[35].mxu1  ;;  %v5587_v2 = vld [vmem:[%s6836_s9 + $0x20] sm:$0xff]   ;;  %v5588_v7 = vld [vmem:[%s6836_s9 + $0x28] sm:$0xff]  }
 0x775   :  { %v1069_v11 = vsel %vm653_vm4, %v947_v8, 0  ;;  %v948_v12 = vpack.c.bf16 %v940_v9, %v940_v9  ;;  %v4674_v8 = vld [vmem:[%s6793_s12 + $0x2] ss:$0 sm:$0xff] }
 0x776   :  { %5165 = vmatpush3.bf16.msra.mxu0 %v1069_v11 }
 0x777   :  { %v1115_v13 = vsel %vm653_vm4, %v948_v12, 0  ;;  %5176 = vmatprep.subr.bf16.mxu0 %v5732_v0 }
 0x778   :  { %5171 = vmatpush3.bf16.msra.mxu1 %v1115_v13 }
 0x779   :  { %5182 = vmatprep.subr.bf16.mxu1 %v5732_v0 }
 0x840   :  { %v989_v14 = vpop.f32.mrb[8].mxu0 }
 0x841   :  { %v990_v15 = vadd.f32 %v989_v14, %v6026_v5  ;;  %v5156_v16 = vpop.f32.mrb[9].mxu0 }
 0x842   :  { %v992_v17 = vpop.f32.mrb[10].mxu0  ;;  %v1035_v18 = vpop.f32.mrb[36].mxu1 }
 0x843   :  { %v1036_v19 = vadd.f32 %v1035_v18, %v6026_v5  ;;  %v5157_v20 = vpop.f32.mrb[11].mxu0  ;;  %v5162_v22 = vpop.f32.mrb[37].mxu1  ;;  %v1041_v23 = vsel %vm533_vm3, %v990_v15, -inf }
 0x844   :  { %1042 = vmax.xlane.f32.xlu0 %v1041_v23  ;;  %v1038_v24 = vpop.f32.mrb[38].mxu1 }
 0x845   :  { %v5163_v25 = vpop.f32.mrb[39].mxu1  ;;  %v1044_v26 = vsel %vm533_vm3, %v1036_v19, -inf }
 0x846   :  { %1045 = vmax.xlane.f32.xlu1 %v1044_v26  ;;  %v4665_v26 = vld [vmem:[%s6794_s11 + $0x2] ss:$0 sm:$0xff] }
 0x8d1   :  { %v1043_v27 = vpop.xlane.xlu0 %1042 }
 0x8d2   :  { %v1047_v28 = vsub.f32 %v990_v15, %v1043_v27 }
 0x8d3   :  { %v1046_v29 = vpop.xlane.xlu1 %1045 }
 0x8d4   :  { %v1049_v30 = vmul.f32 1.442695, %v1047_v28  ;;  %v1048_v31 = vsub.f32 %v1036_v19, %v1046_v29 }
 0x8d6   :  { %5647 = vpow2.f32 %v1049_v30  ;;  %v1051_v32 = vmul.f32 1.442695, %v1048_v31 }
 0x8d8   :  { %5649 = vpow2.f32 %v1051_v32 }
 0x8e0   :  { %v5648_v33 = vpop.eup %5647 }
 0x8e1   :  { %v1053_v35 = vsel %vm533_vm3, %v5648_v33, 0.0 }
 0x8e2   :  { %v5650_v36 = vpop.eup %5649  ;;  %1054 = vadd.xlane.f32.xlu0 %v1053_v35 }
 0x8e3   :  { %v1056_v37 = vsel %vm533_vm3, %v5650_v36, 0.0 }
 0x8e4   :  { %1057 = vadd.xlane.f32.xlu1 %v1056_v37 }
 0x96f   :  { %v1055_v38 = vpop.xlane.xlu0 %1054 }
 0x970   :  { %5651 = vrcp.f32 %v1055_v38 }
 0x971   :  { %v1058_v39 = vpop.xlane.xlu1 %1057 }
 0x972   :  { %5653 = vrcp.f32 %v1058_v39 }
 0x97a   :  { %v5652_v40 = vpop.eup %5651 }
 0x97b   :  { %v1061_v42 = vmul.f32 %v5652_v40, %v5648_v33 }
 0x97c   :  { %v5654_v43 = vpop.eup %5653 }
 0x97d   :  { %v1062_v45 = vmul.f32 %v5654_v43, %v5650_v36  ;;  %v1063_v48 = vpack.c.bf16 %v1061_v42, %v1061_v42  ;;  %v4683_v36 = vld [vmem:[%s6795_s13 + $0x2] ss:$0 sm:$0xff] }
 0x97f   :  { %5167 = vmatmul.mubr.msk.bf16.vlgmr.msra.gmra.mrb[12].mxu0 %vm533_vm3, %v1063_v48  ;;  %v1064_v50 = vpack.c.bf16 %v1062_v45, %v1062_v45 }
 0x980   :  { %5177 = vmatpush3.bf16.msra.mxu0 %v1164_v49  ;;  %5178 = vmatprep.mubr.msk.bf16.mxu0 %vm5733_vm2, %v5732_v0 }
 0x981   :  { %5173 = vmatmul.mubr.msk.bf16.vlgmr.msra.gmra.mrb[40].mxu1 %vm533_vm3, %v1064_v50  ;;  %5188 = vmatprep.subr.bf16.mxu0 %v5732_v0 }
 0x982   :  { %5183 = vmatpush3.bf16.msra.mxu1 %v1211_v54  ;;  %5184 = vmatprep.mubr.msk.bf16.mxu1 %vm5733_vm2, %v5732_v0 }
 0x983   :  { %5196 = vmatprep.subr.bf16.mxu1 %v5732_v0 }
 0x989   :  { %5185 = vmatmul.mubr.msk.bf16.vlgmr.msra.gmra.mrb[44].mxu1 %vm533_vm3, %v743_v53 }
 0x98a   :  { %5197 = vmatpush3.bf16.msra.mxu1 %v5583_v34  ;;  %5200 = vmatprep.mubr.msk.bf16.mxu1 %vm5733_vm2, %v5732_v0 }
 0x98b   :  { %5198 = vmatprep.subr.bf16.mxu1 %v5732_v0 }
 0x98e   :  { %5199 = vmatpush3.bf16.msra.mxu1 %v5584_v55 }
 0x98f   :  { %5212 = vmatprep.subr.bf16.mxu1 %v5732_v0 }
 0x991   :  { %5201 = vmatmul.mubr.msk.bf16.vlgmr.msra.gmra.mrb[48].mxu1 %vm239_vm1, %v5967_v21 }
 0x992   :  { %5214 = vmatprep.mubr.msk.bf16.mxu1 %vm5733_vm2, %v5732_v0 }
 0xa52   :  { %v1105_v46 = vpop.f32.mrb[12].mxu0 }
 0xa53   :  { %v5168_v52 = vpop.f32.mrb[13].mxu0 }
 0xa54   :  { %v1108_v53 = vpop.f32.mrb[14].mxu0  ;;  %v1151_v56 = vpop.f32.mrb[40].mxu1 }
 0xa55   :  { %v1157_v58 = vpack.c.bf16 %v1151_v56, %v1105_v46  ;;  %v5169_v59 = vpop.f32.mrb[15].mxu0  ;;  %v5174_v60 = vpop.f32.mrb[41].mxu1 }
 0xa56   :  { %v1154_v61 = vpop.f32.mrb[42].mxu1 }
 0xa57   :  { %v5175_v62 = vpop.f32.mrb[43].mxu1  ;;  %5179 = vmatmul.mubr.msk.bf16.vlgmr.msra.gmra.mrb[16].mxu0 %vm533_vm3, %v1157_v58 }
 0xa58   :  { %5189 = vmatpush3.bf16.msra.mxu0 %v5585_v57  ;;  %5192 = vmatprep.mubr.msk.bf16.mxu0 %vm5733_vm2, %v5732_v0 }
 0xa59   :  { %5190 = vmatprep.subr.bf16.mxu0 %v5732_v0 }
 0xa5c   :  { %5191 = vmatpush3.bf16.msra.mxu0 %v5586_v63  ;;  %v1247_v1 = vpop.f32.mrb[44].mxu1 }
 0xa5d   :  { %v5186_v3 = vpop.f32.mrb[45].mxu1  ;;  %5204 = vmatprep.subr.bf16.mxu0 %v5732_v0 }
 0xa5e   :  { %v1250_v4 = vpop.f32.mrb[46].mxu1 }
 0xa5f   :  { %v5187_v6 = vpop.f32.mrb[47].mxu1  ;;  %5193 = vmatmul.mubr.msk.bf16.vlgmr.msra.gmra.mrb[20].mxu0 %vm239_vm1, %v5967_v21 }
 0xa60   :  { %5205 = vmatpush3.bf16.msra.mxu0 %v5587_v2  ;;  %5208 = vmatprep.mubr.msk.bf16.mxu0 %vm5733_vm2, %v5732_v0 }
 0xa61   :  { %5206 = vmatprep.subr.bf16.mxu0 %v5732_v0 }
 0xa64   :  { %5207 = vmatpush3.bf16.msra.mxu0 %v5588_v7  ;;  %v1379_v9 = vpop.f32.mrb[48].mxu1 }
 0xa65   :  { %v1380_v10 = vadd.f32 %v4674_v8, %v1379_v9  ;;  %v5202_v11 = vpop.f32.mrb[49].mxu1  ;;  %5218 = vmatprep.subr.bf16.mxu0 %v5732_v0 }
 0xa66   :  { %v1382_v12 = vpop.f32.mrb[50].mxu1  ;;  %v4691_v11 = vld [vmem:[%s6796_s14 + $0x8] sm:$0xf] }
 0xa67   :  { %v1454_v13 = vpack.c.bf16 %v1380_v10, %v1380_v10  ;;  %v1383_v14 = vadd.f32 %v4674_v8, %v1382_v12  ;;  %v5203_v15 = vpop.f32.mrb[51].mxu1  ;;  %5209 = vmatmul.mubr.msk.bf16.vlgmr.msra.gmra.mrb[24].mxu0 %vm239_vm1, %v5967_v21 }
 0xa68   :  { %5220 = vmatprep.mubr.msk.bf16.mxu0 %vm5733_vm2, %v5732_v0 }
 0xa69   :  { %v1462_v16 = vsel %vm533_vm3, %v1454_v13, 0  ;;  %v1455_v17 = vpack.c.bf16 %v1383_v14, %v1383_v14 }
 0xa6a   :  { %5213 = vmatpush3.bf16.xpose.msra.mxu1 %v1462_v16  ;;  %v1673_v16 = vsel %vm653_vm4, %v4691_v11, 0 }
 0xa6b   :  { %v1508_v18 = vsel %vm533_vm3, %v1455_v17, 0  ;;  %5224 = vmatprep.subr.bf16.mxu1 %v5732_v0  ;;  %v5589_v17 = vld [vmem:[%s6832_s29 + $0x30] sm:$0xff]  }
 0xa6d   :  { %5219 = vmatpush3.bf16.xpose.msra.mxu0 %v1508_v18 }
 0xa6e   :  { %5230 = vmatprep.subr.bf16.mxu0 %v5732_v0 }
 0xb2a   :  { %v1200_v19 = vpop.f32.mrb[16].mxu0 }
 0xb2b   :  { %v6166_v20 = vadd.f32 %v1247_v1, %v1200_v19  ;;  %v5180_v22 = vpop.f32.mrb[17].mxu0  ;;  %v5590_v19 = vld [vmem:[%s6832_s29 + $0x38] sm:$0xff]  }
 0xb2c   :  { %v1203_v23 = vpop.f32.mrb[18].mxu0  ;;  %v5591_v22 = vld [vmem:[%s6836_s9 + $0x30] sm:$0xff]  }
 0xb2d   :  { %v6168_v24 = vadd.f32 %v1250_v4, %v1203_v23  ;;  %v5181_v25 = vpop.f32.mrb[19].mxu0  ;;  %v5592_v23 = vld [vmem:[%s6836_s9 + $0x38] sm:$0xff]  }
 0xb32   :  { %v1313_v27 = vpop.f32.mrb[20].mxu0 }
 0xb33   :  { %v1314_v28 = vadd.f32 %v4665_v26, %v1313_v27  ;;  %v5194_v29 = vpop.f32.mrb[21].mxu0 }
 0xb34   :  { %v1316_v30 = vpop.f32.mrb[22].mxu0  ;;  %v5593_v29 = vld [vmem:[%s6833_s10 + $0x30] sm:$0xff]  }
 0xb35   :  { %v1452_v31 = vpack.c.bf16 %v1314_v28, %v1314_v28  ;;  %v1317_v32 = vadd.f32 %v4665_v26, %v1316_v30  ;;  %v5195_v33 = vpop.f32.mrb[23].mxu0 }
 0xb37   :  { %v1453_v35 = vpack.c.bf16 %v1317_v32, %v1317_v32  ;;  %5215 = vmatmul.mubr.msk.bf16.vlgmr.msra.gmra.mrb[52].mxu1 %vm533_vm3, %v1452_v31 }
 0xb38   :  { %5226 = vmatprep.mubr.msk.bf16.mxu1 %vm5733_vm2, %v5732_v0 }
 0xb39   :  { %5221 = vmatmul.mubr.msk.bf16.vlgmr.msra.gmra.mrb[28].mxu0 %vm533_vm3, %v1453_v35 }
 0xb3a   :  { %v1445_v37 = vpop.f32.mrb[24].mxu0  ;;  %5232 = vmatprep.mubr.msk.bf16.mxu0 %vm5733_vm2, %v5732_v0 }
 0xb3b   :  { %v1446_v38 = vadd.f32 %v4683_v36, %v1445_v37  ;;  %v5210_v39 = vpop.f32.mrb[25].mxu0 }
 0xb3c   :  { %v1448_v40 = vpop.f32.mrb[26].mxu0 }
 0xb3d   :  { %v1456_v41 = vpack.c.bf16 %v1446_v38, %v1446_v38  ;;  %v1449_v42 = vadd.f32 %v4683_v36, %v1448_v40  ;;  %v5211_v43 = vpop.f32.mrb[27].mxu0  ;;  %v5594_v36 = vld [vmem:[%s6833_s10 + $0x38] sm:$0xff]  }
 0xb3f   :  { %v1578_v44 = vsel %vm653_vm4, %v1456_v41, 0  ;;  %v1457_v45 = vpack.c.bf16 %v1449_v42, %v1449_v42 }
 0xb40   :  { %5225 = vmatpush3.bf16.msra.mxu1 %v1578_v44 }
 0xb41   :  { %v1624_v48 = vsel %vm653_vm4, %v1457_v45, 0  ;;  %5236 = vmatprep.subr.bf16.mxu1 %v5732_v0 }
 0xb42   :  { %5231 = vmatpush3.bf16.msra.mxu0 %v1624_v48 }
 0xb43   :  { %5242 = vmatprep.subr.bf16.mxu0 %v5732_v0 }
 0xc0a   :  { %v1498_v49 = vpop.f32.mrb[52].mxu1 }
 0xc0b   :  { %v1499_v50 = vadd.f32 %v1498_v49, %v6026_v5  ;;  %v5216_v54 = vpop.f32.mrb[53].mxu1 }
 0xc0c   :  { %v1501_v34 = vpop.f32.mrb[54].mxu1  ;;  %v1544_v55 = vpop.f32.mrb[28].mxu0 }
 0xc0d   :  { %v1545_v46 = vadd.f32 %v1544_v55, %v6026_v5  ;;  %v5217_v52 = vpop.f32.mrb[55].mxu1  ;;  %v5222_v53 = vpop.f32.mrb[29].mxu0  ;;  %v1550_v56 = vsel %vm533_vm3, %v1499_v50, -inf }
 0xc0e   :  { %v1547_v57 = vpop.f32.mrb[30].mxu0  ;;  %1551 = vmax.xlane.f32.xlu0 %v1550_v56  ;;  %v4716_v53 = vld [vmem:[%s6795_s13 + $0x3] ss:$0 sm:$0xff] }
 0xc0f   :  { %v5223_v58 = vpop.f32.mrb[31].mxu0  ;;  %v1553_v59 = vsel %vm533_vm3, %v1545_v46, -inf }
 0xc10   :  { %1554 = vmax.xlane.f32.xlu1 %v1553_v59 }
 0xc9b   :  { %v1552_v60 = vpop.xlane.xlu0 %1551 }
 0xc9c   :  { %v1556_v61 = vsub.f32 %v1499_v50, %v1552_v60 }
 0xc9d   :  { %v1555_v62 = vpop.xlane.xlu1 %1554 }
 0xc9e   :  { %v1558_v63 = vmul.f32 1.442695, %v1556_v61  ;;  %v1557_v1 = vsub.f32 %v1545_v46, %v1555_v62 }
 0xca0   :  { %5655 = vpow2.f32 %v1558_v63  ;;  %v1560_v2 = vmul.f32 1.442695, %v1557_v1 }
 0xca2   :  { %5657 = vpow2.f32 %v1560_v2 }
 0xcaa   :  { %v5656_v3 = vpop.eup %5655 }
 0xcab   :  { %v1562_v4 = vsel %vm533_vm3, %v5656_v3, 0.0 }
 0xcac   :  { %v5658_v6 = vpop.eup %5657  ;;  %1563 = vadd.xlane.f32.xlu0 %v1562_v4 }
 0xcad   :  { %v1565_v7 = vsel %vm533_vm3, %v5658_v6, 0.0 }
 0xcae   :  { %1566 = vadd.xlane.f32.xlu1 %v1565_v7 }
 0xd39   :  { %v1564_v8 = vpop.xlane.xlu0 %1563 }
 0xd3a   :  { %5659 = vrcp.f32 %v1564_v8 }
 0xd3b   :  { %v1567_v9 = vpop.xlane.xlu1 %1566 }
 0xd3c   :  { %5661 = vrcp.f32 %v1567_v9 }
 0xd44   :  { %v5660_v10 = vpop.eup %5659 }
 0xd45   :  { %v1570_v12 = vmul.f32 %v5660_v10, %v5656_v3 }
 0xd46   :  { %v5662_v13 = vpop.eup %5661 }
 0xd47   :  { %v1571_v14 = vmul.f32 %v5662_v13, %v5658_v6  ;;  %v1572_v15 = vpack.c.bf16 %v1570_v12, %v1570_v12 }
 0xd49   :  { %5227 = vmatmul.mubr.msk.bf16.vlgmr.msra.gmra.mrb[56].mxu1 %vm533_vm3, %v1572_v15  ;;  %v1573_v18 = vpack.c.bf16 %v1571_v14, %v1571_v14 }
 0xd4a   :  { %5237 = vmatpush3.bf16.msra.mxu1 %v1673_v16  ;;  %5238 = vmatprep.mubr.msk.bf16.mxu1 %vm5733_vm2, %v5732_v0 }
 0xd4b   :  { %5233 = vmatmul.mubr.msk.bf16.vlgmr.msra.gmra.mrb[32].mxu0 %vm533_vm3, %v1573_v18  ;;  %5250 = vmatprep.subr.bf16.mxu1 %v5732_v0 }
 0xd4c   :  { %5243 = vmatpush3.bf16.msra.mxu0 %v5589_v17  ;;  %5246 = vmatprep.mubr.msk.bf16.mxu0 %vm5733_vm2, %v5732_v0 }
 0xd4d   :  { %5244 = vmatprep.subr.bf16.mxu0 %v5732_v0 }
 0xd50   :  { %5245 = vmatpush3.bf16.msra.mxu0 %v5590_v19 }
 0xd51   :  { %5258 = vmatprep.subr.bf16.mxu0 %v5732_v0 }
 0xd53   :  { %5247 = vmatmul.mubr.msk.bf16.vlgmr.msra.gmra.mrb[36].mxu0 %vm239_vm1, %v5967_v21 }
 0xd54   :  { %5259 = vmatpush3.bf16.msra.mxu0 %v5591_v22  ;;  %5262 = vmatprep.mubr.msk.bf16.mxu0 %vm5733_vm2, %v5732_v0 }
 0xd55   :  { %5260 = vmatprep.subr.bf16.mxu0 %v5732_v0 }
 0xd58   :  { %5261 = vmatpush3.bf16.msra.mxu0 %v5592_v23 }
 0xd59   :  { %5272 = vmatprep.subr.bf16.mxu0 %v5732_v0 }
 0xd5b   :  { %5263 = vmatmul.mubr.msk.bf16.vlgmr.msra.gmra.mrb[40].mxu0 %vm239_vm1, %v5967_v21 }
 0xd5c   :  { %5274 = vmatprep.mubr.msk.bf16.mxu0 %vm5733_vm2, %v5732_v0 }
 0xe1c   :  { %v1614_v25 = vpop.f32.mrb[56].mxu1 }
 0xe1d   :  { %v5228_v26 = vpop.f32.mrb[57].mxu1 }
 0xe1e   :  { %v1617_v27 = vpop.f32.mrb[58].mxu1  ;;  %v1660_v28 = vpop.f32.mrb[32].mxu0 }
 0xe1f   :  { %v1666_v30 = vpack.c.bf16 %v1660_v28, %v1614_v25  ;;  %v5229_v31 = vpop.f32.mrb[59].mxu1  ;;  %v5234_v32 = vpop.f32.mrb[33].mxu0 }
 0xe20   :  { %v1663_v33 = vpop.f32.mrb[34].mxu0 }
 0xe21   :  { %v5235_v35 = vpop.f32.mrb[35].mxu0  ;;  %5239 = vmatmul.mubr.msk.bf16.vlgmr.msra.gmra.mrb[60].mxu1 %vm533_vm3, %v1666_v30 }
 0xe22   :  { %5251 = vmatpush3.bf16.msra.mxu1 %v5593_v29  ;;  %5254 = vmatprep.mubr.msk.bf16.mxu1 %vm5733_vm2, %v5732_v0 }
 0xe23   :  { %5252 = vmatprep.subr.bf16.mxu1 %v5732_v0 }
 0xe26   :  { %v1777_v37 = vpop.f32.mrb[36].mxu0  ;;  %5253 = vmatpush3.bf16.msra.mxu1 %v5594_v36 }
 0xe27   :  { %v5248_v38 = vpop.f32.mrb[37].mxu0  ;;  %5266 = vmatprep.subr.bf16.mxu1 %v5732_v0 }
 0xe28   :  { %v1780_v39 = vpop.f32.mrb[38].mxu0 }
 0xe29   :  { %v5249_v40 = vpop.f32.mrb[39].mxu0  ;;  %5255 = vmatmul.mubr.msk.bf16.vlgmr.msra.gmra.mrb[64].mxu1 %vm239_vm1, %v5967_v21  ;;  %v4707_v21 = vld [vmem:[%s6793_s12 + $0x3] ss:$0 sm:$0xff] }
 0xe2a   :  { %5268 = vmatprep.mubr.msk.bf16.mxu1 %vm5733_vm2, %v5732_v0 }
 0xe2e   :  { %v1909_v41 = vpop.f32.mrb[40].mxu0 }
 0xe2f   :  { %v5264_v42 = vpop.f32.mrb[41].mxu0  ;;  %v1910_v59 = vadd.f32 %v4716_v53, %v1909_v41 }
 0xe30   :  { %v1912_v43 = vpop.f32.mrb[42].mxu0 }
 0xe31   :  { %v5265_v44 = vpop.f32.mrb[43].mxu0  ;;  %v1913_v63 = vadd.f32 %v4716_v53, %v1912_v43  ;;  %v1920_v3 = vpack.c.bf16 %v1910_v59, %v1910_v59 }
 0xe33   :  { %v1921_v6 = vpack.c.bf16 %v1913_v63, %v1913_v63  ;;  %v2042_v8 = vsel %vm653_vm4, %v1920_v3, 0 }
 0xe35   :  { %v2088_v9 = vsel %vm653_vm4, %v1921_v6, 0 }
 0xef4   :  { %v1709_v45 = vpop.f32.mrb[60].mxu1 }
 0xef5   :  { %v6243_v48 = vadd.f32 %v1709_v45, %v6166_v20  ;;  %v5240_v49 = vpop.f32.mrb[61].mxu1 }
 0xef6   :  { %v1712_v50 = vpop.f32.mrb[62].mxu1 }
 0xef7   :  { %v6246_v54 = vadd.f32 %v1712_v50, %v6168_v24  ;;  %v5241_v34 = vpop.f32.mrb[63].mxu1  ;;  %v4698_v24 = vld [vmem:[%s6794_s11 + $0x3] ss:$0 sm:$0xff] }
 0xef8   :  { %v1778_v62 = vadd.f32 %v4698_v24, %v1777_v37  ;;  %v1781_v2 = vadd.f32 %v4698_v24, %v1780_v39  ;;  %v4724_v39 = vld [vmem:[%s6796_s14 + $0xc] sm:$0xf]  ;;  %v4726_v24 = vld [vmem:[%s6797_s15] ss:$0 sm:$0xff] }
 0xef9   :  { %v2137_v44 = vsel %vm653_vm4, %v4724_v39, 0  ;;  %v4729_v39 = vld [vmem:[%s6802_s19] ss:$0 sm:$0xff] }
 0xefa   :  { %v1916_v4 = vpack.c.bf16 %v1778_v62, %v1778_v62  ;;  %v1917_v7 = vpack.c.bf16 %v1781_v2, %v1781_v2 }
 0xefc   :  { %v1843_v55 = vpop.f32.mrb[64].mxu1 }
 0xefd   :  { %v1844_v46 = vadd.f32 %v4707_v21, %v1843_v55  ;;  %v5256_v52 = vpop.f32.mrb[65].mxu1 }
 0xefe   :  { %v1846_v56 = vpop.f32.mrb[66].mxu1 }
 0xeff   :  { %v1918_v20 = vpack.c.bf16 %v1844_v46, %v1844_v46  ;;  %v1847_v57 = vadd.f32 %v4707_v21, %v1846_v56  ;;  %v5257_v58 = vpop.f32.mrb[67].mxu1 }
 0xf01   :  { %v1926_v60 = vsel %vm533_vm3, %v1918_v20, 0  ;;  %v1919_v61 = vpack.c.bf16 %v1847_v57, %v1847_v57 }
 0xf02   :  { %5267 = vmatpush3.bf16.xpose.msra.mxu1 %v1926_v60 }
 0xf03   :  { %v1972_v1 = vsel %vm533_vm3, %v1919_v61, 0  ;;  %5278 = vmatprep.subr.bf16.mxu1 %v5732_v0 }
 0xf04   :  { %5273 = vmatpush3.bf16.xpose.msra.mxu0 %v1972_v1 }
 0xf05   :  { %5284 = vmatprep.subr.bf16.mxu0 %v5732_v0 }
 0xf09   :  { %5269 = vmatmul.mubr.msk.bf16.vlgmr.msra.gmra.mrb[68].mxu1 %vm533_vm3, %v1916_v4 }
 0xf0a   :  { %5279 = vmatpush3.bf16.msra.mxu1 %v2042_v8  ;;  %5280 = vmatprep.mubr.msk.bf16.mxu1 %vm5733_vm2, %v5732_v0 }
 0xf0b   :  { %5275 = vmatmul.mubr.msk.bf16.vlgmr.msra.gmra.mrb[44].mxu0 %vm533_vm3, %v1917_v7  ;;  %5290 = vmatprep.subr.bf16.mxu1 %v5732_v0 }
 0xf0c   :  { %5285 = vmatpush3.bf16.msra.mxu0 %v2088_v9  ;;  %5286 = vmatprep.mubr.msk.bf16.mxu0 %vm5733_vm2, %v5732_v0 }
 0xf0d   :  { %5296 = vmatprep.subr.bf16.mxu0 %v5732_v0 }
 0xfdc   :  { %v1962_v10 = vpop.f32.mrb[68].mxu1 }
 0xfdd   :  { %v1963_v11 = vadd.f32 %v1962_v10, %v6026_v5  ;;  %v5270_v12 = vpop.f32.mrb[69].mxu1 }
 0xfde   :  { %v1965_v13 = vpop.f32.mrb[70].mxu1  ;;  %v2008_v14 = vpop.f32.mrb[44].mxu0  ;;  %v5595_v12 = vld [vmem:[%s6798_s18] sm:$0xff]  }
 0xfdf   :  { %v2009_v15 = vadd.f32 %v2008_v14, %v6026_v5  ;;  %v5271_v16 = vpop.f32.mrb[71].mxu1  ;;  %v5276_v17 = vpop.f32.mrb[45].mxu0  ;;  %v2014_v18 = vsel %vm533_vm3, %v1963_v11, -inf  ;;  %v5596_v13 = vld [vmem:[%s6798_s18 + $0x8] sm:$0xff]  }
 0xfe0   :  { %v2011_v19 = vpop.f32.mrb[46].mxu0  ;;  %2015 = vmax.xlane.f32.xlu0 %v2014_v18 }
 0xfe1   :  { %v5277_v22 = vpop.f32.mrb[47].mxu0  ;;  %v2017_v23 = vsel %vm533_vm3, %v2009_v15, -inf }
 0xfe2   :  { %2018 = vmax.xlane.f32.xlu1 %v2017_v23  ;;  %v4727_v23 = vld [vmem:[%s6799_s16] ss:$0 sm:$0xff] }
0x106d   :  { %v2016_v25 = vpop.xlane.xlu0 %2015 }
0x106e   :  { %v2020_v26 = vsub.f32 %v1963_v11, %v2016_v25 }
0x106f   :  { %v2019_v27 = vpop.xlane.xlu1 %2018 }
0x1070   :  { %v2022_v28 = vmul.f32 1.442695, %v2020_v26  ;;  %v2021_v29 = vsub.f32 %v2009_v15, %v2019_v27 }
0x1072   :  { %5663 = vpow2.f32 %v2022_v28  ;;  %v2024_v30 = vmul.f32 1.442695, %v2021_v29  ;;  %v4728_v29 = vld [vmem:[%s6800_s17] ss:$0 sm:$0xff] }
0x1074   :  { %5665 = vpow2.f32 %v2024_v30 }
0x107c   :  { %v5664_v31 = vpop.eup %5663 }
0x107d   :  { %v2026_v32 = vsel %vm533_vm3, %v5664_v31, 0.0 }
0x107e   :  { %v5666_v33 = vpop.eup %5665  ;;  %2027 = vadd.xlane.f32.xlu0 %v2026_v32 }
0x107f   :  { %v2029_v35 = vsel %vm533_vm3, %v5666_v33, 0.0 }
0x1080   :  { %2030 = vadd.xlane.f32.xlu1 %v2029_v35  ;;  %v5597_v35 = vld [vmem:[%s6801_s20] sm:$0xff]  }
0x110b   :  { %v2028_v36 = vpop.xlane.xlu0 %2027 }
0x110c   :  { %5667 = vrcp.f32 %v2028_v36  ;;  %v5598_v36 = vld [vmem:[%s6801_s20 + $0x8] sm:$0xff]  }
0x110d   :  { %v2031_v37 = vpop.xlane.xlu1 %2030 }
0x110e   :  { %5669 = vrcp.f32 %v2031_v37  ;;  %v5599_v37 = vld [vmem:[%s6801_s20 + $0x10] sm:$0xff]  }
0x1116   :  { %v5668_v38 = vpop.eup %5667 }
0x1117   :  { %v2034_v40 = vmul.f32 %v5668_v38, %v5664_v31  ;;  %v5600_v38 = vld [vmem:[%s6801_s20 + $0x18] sm:$0xff]  }
0x1118   :  { %v5670_v41 = vpop.eup %5669 }
0x1119   :  { %v2035_v42 = vmul.f32 %v5670_v41, %v5666_v33  ;;  %v2036_v43 = vpack.c.bf16 %v2034_v40, %v2034_v40 }
0x111b   :  { %5281 = vmatmul.mubr.msk.bf16.vlgmr.msra.gmra.mrb[72].mxu1 %vm533_vm3, %v2036_v43  ;;  %v2037_v45 = vpack.c.bf16 %v2035_v42, %v2035_v42 }
0x111c   :  { %5291 = vmatpush3.bf16.msra.mxu1 %v2137_v44  ;;  %5292 = vmatprep.mubr.msk.bf16.mxu1 %vm5733_vm2, %v5732_v0 }
0x111d   :  { %5287 = vmatmul.mubr.msk.bf16.vlgmr.msra.gmra.mrb[48].mxu0 %vm533_vm3, %v2037_v45  ;;  %5304 = vmatprep.subr.bf16.mxu1 %v5732_v0 }
0x111e   :  { %5300 = vmatprep.mubr.msk.bf16.mxu0 %vm5733_vm2, %v5732_v0  ;;  %5297 = vmatpush3.bf16.msra.mxu0 %v5595_v12 }
0x111f   :  { %5298 = vmatprep.subr.bf16.mxu0 %v5732_v0 }
0x1122   :  { %5299 = vmatpush3.bf16.msra.mxu0 %v5596_v13 }
0x1123   :  { %5316 = vmatprep.subr.bf16.mxu0 %v5732_v0 }
0x11ee   :  { %v2078_v49 = vpop.f32.mrb[72].mxu1 }
0x11ef   :  { %v5282_v50 = vpop.f32.mrb[73].mxu1 }
0x11f0   :  { %v2081_v34 = vpop.f32.mrb[74].mxu1  ;;  %v2124_v21 = vpop.f32.mrb[48].mxu0 }
0x11f1   :  { %v2130_v55 = vpack.c.bf16 %v2124_v21, %v2078_v49  ;;  %v5283_v46 = vpop.f32.mrb[75].mxu1  ;;  %v5288_v52 = vpop.f32.mrb[49].mxu0 }
0x11f2   :  { %v2127_v53 = vpop.f32.mrb[50].mxu0 }
0x11f3   :  { %v5289_v56 = vpop.f32.mrb[51].mxu0  ;;  %5293 = vmatmul.mubr.msk.bf16.vlgmr.msra.gmra.mrb[76].mxu1 %vm533_vm3, %v2130_v55 }
0x11f4   :  { %5312 = vmatprep.mubr.msk.bf16.mxu1 %vm5733_vm2, %v5732_v0  ;;  %5305 = vmatpush3.bf16.msra.mxu1 %v5597_v35 }
0x11f5   :  { %5306 = vmatprep.subr.bf16.mxu1 %v5732_v0 }
0x11f8   :  { %5307 = vmatpush3.bf16.msra.mxu1 %v5598_v36 }
0x11f9   :  { %5308 = vmatprep.subr.bf16.mxu1 %v5732_v0 }
0x11fc   :  { %5309 = vmatpush3.bf16.msra.mxu1 %v5599_v37 }
0x11fd   :  { %5310 = vmatprep.subr.bf16.mxu1 %v5732_v0 }
0x1200   :  { %5311 = vmatpush3.bf16.msra.mxu1 %v5600_v38  ;;  %v5605_v38 = vld [vmem:[%s6833_s10 + $0x40] sm:$0xff]  }
0x1201   :  { %5332 = vmatprep.subr.bf16.mxu1 %v5732_v0 }
0x12c6   :  { %v2173_v20 = vpop.f32.mrb[76].mxu1 }
0x12c7   :  { %v2180_v57 = vadd.f32 %v2173_v20, %v6243_v48  ;;  %v5294_v58 = vpop.f32.mrb[77].mxu1 }
0x12c8   :  { %v2176_v59 = vpop.f32.mrb[78].mxu1 }
0x12c9   :  { %v2182_v60 = vadd.f32 %v2180_v57, %v5924_v47  ;;  %v2181_v61 = vadd.f32 %v2176_v59, %v6246_v54  ;;  %v5295_v62 = vpop.f32.mrb[79].mxu1 }
0x12cb   :  { %v6297_v63 = vadd.f32 %v4726_v24, %v2182_v60  ;;  %v2183_v1 = vadd.f32 %v2181_v61, %v5928_v51  ;;  %v4740_v60 = vld [vmem:[%s6803_s21] ss:$0 sm:$0xff] }
0x12cd   :  { %v6300_v2 = vadd.f32 %v4726_v24, %v2183_v1  ;;  %v2195_v48 = vsel %vm239_vm1, %v6297_v63, 0.0 }
0x12ce   :  { %2196 = vadd.xlane.f32.xlu0 %v2195_v48 }
0x12cf   :  { %v2198_v3 = vsel %vm239_vm1, %v6300_v2, 0.0 }
0x12d0   :  { %2199 = vadd.xlane.f32.xlu1 %v2198_v3 }
0x135b   :  { %v2197_v4 = vpop.xlane.xlu0 %2196 }
0x135c   :  { %v2201_v6 = vmul.f32 0.03125, %v2197_v4 }
0x135d   :  { %v2200_v47 = vpop.xlane.xlu1 %2199 }
0x135e   :  { %v2203_v54 = vsub.f32 %v6297_v63, %v2201_v6  ;;  %v2202_v7 = vmul.f32 0.03125, %v2200_v47 }
0x1360   :  { %v2204_v8 = vsub.f32 %v6300_v2, %v2202_v7  ;;  %v2205_v9 = vmul.f32 %v2203_v54, %v2203_v54 }
0x1362   :  { %v2207_v51 = vsel %vm239_vm1, %v2205_v9, 0.0  ;;  %v2206_v10 = vmul.f32 %v2204_v8, %v2204_v8 }
0x1363   :  { %2208 = vadd.xlane.f32.xlu0 %v2207_v51 }
0x1364   :  { %v2210_v11 = vsel %vm239_vm1, %v2206_v10, 0.0 }
0x1365   :  { %2211 = vadd.xlane.f32.xlu1 %v2210_v11 }
0x13f0   :  { %v2209_v14 = vpop.xlane.xlu0 %2208 }
0x13f1   :  { %v2213_v15 = vmul.f32 0.03125, %v2209_v14  ;;  %v5601_v14 = vld [vmem:[%s6832_s29 + $0x40] sm:$0xff]  }
0x13f2   :  { %v2212_v16 = vpop.xlane.xlu1 %2211 }
0x13f3   :  { %v2215_v17 = vadd.f32 1e-05, %v2213_v15  ;;  %v2214_v18 = vmul.f32 0.03125, %v2212_v16  ;;  %v5602_v15 = vld [vmem:[%s6836_s9 + $0x40] sm:$0xff]   ;;  %v5603_v16 = vld [vmem:[%s6832_s29 + $0x48] sm:$0xff]  }
0x13f5   :  { %5671 = vrsqrt.f32 %v2215_v17  ;;  %v2216_v19 = vadd.f32 1e-05, %v2214_v18  ;;  %v5604_v17 = vld [vmem:[%s6836_s9 + $0x48] sm:$0xff]  }
0x13f7   :  { %5673 = vrsqrt.f32 %v2216_v19 }
0x13ff   :  { %v5672_v22 = vpop.eup %5671 }
0x1400   :  { %v2219_v25 = vmul.f32 %v5672_v22, %v2203_v54 }
0x1401   :  { %v5674_v26 = vpop.eup %5673 }
0x1402   :  { %v2227_v27 = vmul.f32 %v4727_v23, %v2219_v25  ;;  %v2220_v28 = vmul.f32 %v5674_v26, %v2204_v8 }
0x1404   :  { %v2228_v30 = vmul.f32 %v4727_v23, %v2220_v28  ;;  %v2235_v31 = vadd.f32 %v4728_v29, %v2227_v27  ;;  %v4743_v28 = vld [vmem:[%s6834_s27 + $0x1] ss:$0 sm:$0xff] }
0x1406   :  { %v2236_v32 = vadd.f32 %v4728_v29, %v2228_v30 }
0x1408   :  { %v2237_v33 = vpack.c.bf16 %v2236_v32, %v2235_v31 }
0x140a   :  { %5301 = vmatmul.mubr.msk.bf16.vlgmr.msra.gmra.mrb[52].mxu0 %vm239_vm1, %v2237_v33  ;;  %v4744_v33 = vld [vmem:[%s6835_s8 + $0x1] ss:$0 sm:$0xff] }
0x140b   :  { %5320 = vmatprep.mubr.msk.bf16.mxu0 %vm5733_vm2, %v5732_v0  ;;  %5317 = vmatpush3.bf16.msra.mxu0 %v5601_v14 }
0x140c   :  { %5318 = vmatprep.subr.bf16.mxu0 %v5732_v0 }
0x140f   :  { %5319 = vmatpush3.bf16.msra.mxu0 %v5603_v16 }
0x1410   :  { %5324 = vmatprep.subr.bf16.mxu0 %v5732_v0 }
0x14dd   :  { %v2298_v40 = vpop.f32.mrb[52].mxu0 }
0x14de   :  { %v2299_v41 = vadd.f32 %v4729_v39, %v2298_v40  ;;  %v5302_v42 = vpop.f32.mrb[53].mxu0  ;;  %v5606_v40 = vld [vmem:[%s6833_s10 + $0x48] sm:$0xff]  }
0x14df   :  { %v2301_v43 = vpop.f32.mrb[54].mxu0 }
0x14e0   :  { %v4733_v44 = vmul.f32 -1.702, %v2299_v41  ;;  %v2302_v45 = vadd.f32 %v4729_v39, %v2301_v43  ;;  %v5303_v49 = vpop.f32.mrb[55].mxu0 }
0x14e2   :  { %v2309_v50 = vmul.f32 1.442695, %v4733_v44  ;;  %v4734_v34 = vmul.f32 -1.702, %v2302_v45 }
0x14e4   :  { %5675 = vpow2.f32 %v2309_v50  ;;  %v2311_v21 = vmul.f32 1.442695, %v4734_v34 }
0x14e6   :  { %5677 = vpow2.f32 %v2311_v21  ;;  %v4759_v21 = vld [vmem:[%s6793_s12 + $0x4] ss:$0 sm:$0xff] }
0x14ee   :  { %v5676_v55 = vpop.eup %5675 }
0x14ef   :  { %v2313_v46 = vadd.f32 1.0, %v5676_v55 }
0x14f0   :  { %v5678_v52 = vpop.eup %5677 }
0x14f1   :  { %5679 = vrcp.f32 %v2313_v46  ;;  %v2314_v53 = vadd.f32 1.0, %v5678_v52 }
0x14f3   :  { %5681 = vrcp.f32 %v2314_v53  ;;  %v4768_v53 = vld [vmem:[%s6795_s13 + $0x4] ss:$0 sm:$0xff] }
0x14fb   :  { %v5680_v56 = vpop.eup %5679 }
0x14fc   :  { %v2319_v57 = vmul.f32 %v5680_v56, %v2299_v41 }
0x14fd   :  { %v5682_v20 = vpop.eup %5681 }
0x14fe   :  { %v2320_v58 = vmul.f32 %v5682_v20, %v2302_v45 }
0x1500   :  { %v2321_v24 = vpack.c.bf16 %v2320_v58, %v2319_v57 }
0x1502   :  { %5313 = vmatmul.mubr.msk.bf16.vlgmr.msra.gmra.mrb[80].mxu1 %vm192_vm0, %v2321_v24  ;;  %v4750_v24 = vld [vmem:[%s6794_s11 + $0x4] ss:$0 sm:$0xff] }
0x1503   :  { %5336 = vmatprep.mubr.msk.bf16.mxu1 %vm5733_vm2, %v5732_v0  ;;  %5333 = vmatpush3.bf16.msra.mxu1 %v5602_v15 }
0x1504   :  { %5334 = vmatprep.subr.bf16.mxu1 %v5732_v0 }
0x1507   :  { %5335 = vmatpush3.bf16.msra.mxu1 %v5604_v17 }
0x1508   :  { %5346 = vmatprep.subr.bf16.mxu1 %v5732_v0 }
0x15d5   :  { %v2391_v59 = vpop.f32.mrb[80].mxu1 }
0x15d6   :  { %v2398_v61 = vadd.f32 %v2391_v59, %v6297_v63  ;;  %v5314_v62 = vpop.f32.mrb[81].mxu1 }
0x15d7   :  { %v2394_v1 = vpop.f32.mrb[82].mxu1 }
0x15d8   :  { %v6353_v48 = vadd.f32 %v4740_v60, %v2398_v61  ;;  %v2399_v3 = vadd.f32 %v2394_v1, %v6300_v2  ;;  %v5315_v4 = vpop.f32.mrb[83].mxu1 }
0x15da   :  { %v6356_v6 = vadd.f32 %v4740_v60, %v2399_v3  ;;  %v2413_v47 = vsel %vm239_vm1, %v6353_v48, 0.0 }
0x15db   :  { %2414 = vadd.xlane.f32.xlu0 %v2413_v47 }
0x15dc   :  { %v2416_v54 = vsel %vm239_vm1, %v6356_v6, 0.0 }
0x15dd   :  { %2417 = vadd.xlane.f32.xlu1 %v2416_v54 }
0x1668   :  { %v2415_v7 = vpop.xlane.xlu0 %2414 }
0x1669   :  { %v2419_v8 = vmul.f32 0.03125, %v2415_v7 }
0x166a   :  { %v2418_v63 = vpop.xlane.xlu1 %2417 }
0x166b   :  { %v2421_v9 = vsub.f32 %v6353_v48, %v2419_v8  ;;  %v2420_v51 = vmul.f32 0.03125, %v2418_v63 }
0x166d   :  { %v2422_v10 = vsub.f32 %v6356_v6, %v2420_v51  ;;  %v2423_v2 = vmul.f32 %v2421_v9, %v2421_v9 }
0x166f   :  { %v2425_v11 = vsel %vm239_vm1, %v2423_v2, 0.0  ;;  %v2424_v12 = vmul.f32 %v2422_v10, %v2422_v10 }
0x1670   :  { %2426 = vadd.xlane.f32.xlu0 %v2425_v11 }
0x1671   :  { %v2428_v13 = vsel %vm239_vm1, %v2424_v12, 0.0 }
0x1672   :  { %2429 = vadd.xlane.f32.xlu1 %v2428_v13 }
0x16fd   :  { %v2427_v18 = vpop.xlane.xlu0 %2426 }
0x16fe   :  { %v2431_v19 = vmul.f32 0.03125, %v2427_v18 }
0x16ff   :  { %v2430_v22 = vpop.xlane.xlu1 %2429 }
0x1700   :  { %v2433_v23 = vadd.f32 1e-05, %v2431_v19  ;;  %v2432_v25 = vmul.f32 0.03125, %v2430_v22 }
0x1702   :  { %5683 = vrsqrt.f32 %v2433_v23  ;;  %v2434_v26 = vadd.f32 1e-05, %v2432_v25 }
0x1704   :  { %5685 = vrsqrt.f32 %v2434_v26 }
0x170c   :  { %v5684_v27 = vpop.eup %5683 }
0x170d   :  { %v2437_v29 = vmul.f32 %v5684_v27, %v2421_v9 }
0x170e   :  { %v5686_v30 = vpop.eup %5685 }
0x170f   :  { %v2445_v31 = vmul.f32 %v4743_v28, %v2437_v29  ;;  %v2438_v32 = vmul.f32 %v5686_v30, %v2422_v10 }
0x1711   :  { %v2446_v35 = vmul.f32 %v4743_v28, %v2438_v32  ;;  %v2453_v36 = vadd.f32 %v4744_v33, %v2445_v31 }
0x1713   :  { %v2454_v37 = vadd.f32 %v4744_v33, %v2446_v35 }
0x1715   :  { %v6391_v39 = vpack.c.bf16 %v2454_v37, %v2453_v36 }
0x1717   :  { %5321 = vmatmul.mubr.msk.bf16.vlgmr.msra.gmra.mrb[56].mxu0 %vm239_vm1, %v6391_v39  ;;  %5337 = vmatmul.mubr.msk.bf16.vlgmr.msra.gmra.mrb[84].mxu1 %vm239_vm1, %v6391_v39 }
0x1718   :  { %5325 = vmatpush3.bf16.msra.mxu0 %v5605_v38  ;;  %5328 = vmatprep.mubr.msk.bf16.mxu0 %vm5733_vm2, %v5732_v0 }
0x1719   :  { %5326 = vmatprep.subr.bf16.mxu0 %v5732_v0  ;;  %5348 = vmatprep.mubr.msk.bf16.mxu1 %vm5733_vm2, %v5732_v0 }
0x171c   :  { %5327 = vmatpush3.bf16.msra.mxu0 %v5606_v40  ;;  %v5607_v40 = vld [vmem:[%s6832_s29 + $0x50] sm:$0xff]  }
0x171d   :  { %5340 = vmatprep.subr.bf16.mxu0 %v5732_v0 }
0x171f   :  { %5329 = vmatmul.mubr.msk.bf16.vlgmr.msra.gmra.mrb[60].mxu0 %vm239_vm1, %v6391_v39 }
0x1720   :  { %5342 = vmatprep.mubr.msk.bf16.mxu0 %vm5733_vm2, %v5732_v0 }
0x17ea   :  { %v2518_v41 = vpop.f32.mrb[56].mxu0  ;;  %v2650_v42 = vpop.f32.mrb[84].mxu1 }
0x17eb   :  { %v5322_v43 = vpop.f32.mrb[57].mxu0  ;;  %v5338_v44 = vpop.f32.mrb[85].mxu1  ;;  %v2651_v59 = vadd.f32 %v4768_v53, %v2650_v42  ;;  %v2519_v62 = vadd.f32 %v4750_v24, %v2518_v41 }
0x17ec   :  { %v2521_v45 = vpop.f32.mrb[58].mxu0  ;;  %v2653_v49 = vpop.f32.mrb[86].mxu1  ;;  %v5608_v43 = vld [vmem:[%s6833_s10 + $0x50] sm:$0xff]  }
0x17ed   :  { %v5323_v50 = vpop.f32.mrb[59].mxu0  ;;  %v5339_v34 = vpop.f32.mrb[87].mxu1  ;;  %v2654_v1 = vadd.f32 %v4768_v53, %v2653_v49  ;;  %v2661_v4 = vpack.c.bf16 %v2651_v59, %v2651_v59  ;;  %v2522_v47 = vadd.f32 %v4750_v24, %v2521_v45  ;;  %v2657_v54 = vpack.c.bf16 %v2519_v62, %v2519_v62  ;;  %v5609_v45 = vld [vmem:[%s6832_s29 + $0x58] sm:$0xff]   ;;  %v4791_v59 = vld [vmem:[%s6793_s12 + $0x5] ss:$0 sm:$0xff] }
0x17ee   :  { %v5610_v49 = vld [vmem:[%s6833_s10 + $0x58] sm:$0xff]   ;;  %v5611_v50 = vld [vmem:[%s6836_s9 + $0x50] sm:$0xff]  }
0x17ef   :  { %v2662_v7 = vpack.c.bf16 %v2654_v1, %v2654_v1  ;;  %v2783_v8 = vsel %vm653_vm4, %v2661_v4, 0  ;;  %v2658_v63 = vpack.c.bf16 %v2522_v47, %v2522_v47  ;;  %v5612_v34 = vld [vmem:[%s6836_s9 + $0x58] sm:$0xff]  }
0x17f1   :  { %v2829_v9 = vsel %vm653_vm4, %v2662_v7, 0 }
0x17f2   :  { %v2584_v55 = vpop.f32.mrb[60].mxu0 }
0x17f3   :  { %v2585_v46 = vadd.f32 %v4759_v21, %v2584_v55  ;;  %v5330_v52 = vpop.f32.mrb[61].mxu0 }
0x17f4   :  { %v2587_v56 = vpop.f32.mrb[62].mxu0 }
0x17f5   :  { %v2659_v20 = vpack.c.bf16 %v2585_v46, %v2585_v46  ;;  %v2588_v57 = vadd.f32 %v4759_v21, %v2587_v56  ;;  %v5331_v58 = vpop.f32.mrb[63].mxu0 }
0x17f7   :  { %v2667_v60 = vsel %vm533_vm3, %v2659_v20, 0  ;;  %v2660_v61 = vpack.c.bf16 %v2588_v57, %v2588_v57 }
0x17f8   :  { %5341 = vmatpush3.bf16.xpose.msra.mxu0 %v2667_v60 }
0x17f9   :  { %v2713_v3 = vsel %vm533_vm3, %v2660_v61, 0  ;;  %5352 = vmatprep.subr.bf16.mxu0 %v5732_v0 }
0x17fa   :  { %5347 = vmatpush3.bf16.xpose.msra.mxu1 %v2713_v3 }
0x17fb   :  { %5358 = vmatprep.subr.bf16.mxu1 %v5732_v0 }
0x17ff   :  { %5343 = vmatmul.mubr.msk.bf16.vlgmr.msra.gmra.mrb[64].mxu0 %vm533_vm3, %v2657_v54 }
0x1800   :  { %5353 = vmatpush3.bf16.msra.mxu0 %v2783_v8  ;;  %5354 = vmatprep.mubr.msk.bf16.mxu0 %vm5733_vm2, %v5732_v0 }
0x1801   :  { %5349 = vmatmul.mubr.msk.bf16.vlgmr.msra.gmra.mrb[88].mxu1 %vm533_vm3, %v2658_v63  ;;  %5364 = vmatprep.subr.bf16.mxu0 %v5732_v0  ;;  %v4782_v63 = vld [vmem:[%s6794_s11 + $0x5] ss:$0 sm:$0xff] }
0x1802   :  { %5359 = vmatpush3.bf16.msra.mxu1 %v2829_v9  ;;  %5360 = vmatprep.mubr.msk.bf16.mxu1 %vm5733_vm2, %v5732_v0  ;;  %v4800_v9 = vld [vmem:[%s6795_s13 + $0x5] ss:$0 sm:$0xff] }
0x1803   :  { %5372 = vmatprep.subr.bf16.mxu1 %v5732_v0 }
0x18d2   :  { %v2703_v51 = vpop.f32.mrb[64].mxu0 }
0x18d3   :  { %v2704_v10 = vadd.f32 %v2703_v51, %v6026_v5  ;;  %v5344_v2 = vpop.f32.mrb[65].mxu0 }
0x18d4   :  { %v2706_v11 = vpop.f32.mrb[66].mxu0  ;;  %v2749_v12 = vpop.f32.mrb[88].mxu1 }
0x18d5   :  { %v2750_v13 = vadd.f32 %v2749_v12, %v6026_v5  ;;  %v5345_v14 = vpop.f32.mrb[67].mxu0  ;;  %v5350_v15 = vpop.f32.mrb[89].mxu1  ;;  %v2755_v16 = vsel %vm533_vm3, %v2704_v10, -inf }
0x18d6   :  { %2756 = vmax.xlane.f32.xlu1 %v2755_v16  ;;  %v2752_v17 = vpop.f32.mrb[90].mxu1 }
0x18d7   :  { %v5351_v18 = vpop.f32.mrb[91].mxu1  ;;  %v2758_v19 = vsel %vm533_vm3, %v2750_v13, -inf }
0x18d8   :  { %2759 = vmax.xlane.f32.xlu0 %v2758_v19 }
0x1963   :  { %v2757_v22 = vpop.xlane.xlu1 %2756 }
0x1964   :  { %v2761_v23 = vsub.f32 %v2704_v10, %v2757_v22 }
0x1965   :  { %v2760_v25 = vpop.xlane.xlu0 %2759 }
0x1966   :  { %v2763_v26 = vmul.f32 1.442695, %v2761_v23  ;;  %v2762_v27 = vsub.f32 %v2750_v13, %v2760_v25 }
0x1968   :  { %5687 = vpow2.f32 %v2763_v26  ;;  %v2765_v28 = vmul.f32 1.442695, %v2762_v27 }
0x196a   :  { %5689 = vpow2.f32 %v2765_v28 }
0x1972   :  { %v5688_v29 = vpop.eup %5687 }
0x1973   :  { %v2767_v30 = vsel %vm533_vm3, %v5688_v29, 0.0 }
0x1974   :  { %v5690_v31 = vpop.eup %5689  ;;  %2768 = vadd.xlane.f32.xlu1 %v2767_v30 }
0x1975   :  { %v2770_v32 = vsel %vm533_vm3, %v5690_v31, 0.0 }
0x1976   :  { %2771 = vadd.xlane.f32.xlu0 %v2770_v32 }
0x1a01   :  { %v2769_v33 = vpop.xlane.xlu1 %2768 }
0x1a02   :  { %5691 = vrcp.f32 %v2769_v33 }
0x1a03   :  { %v2772_v35 = vpop.xlane.xlu0 %2771 }
0x1a04   :  { %5693 = vrcp.f32 %v2772_v35 }
0x1a0c   :  { %v5692_v36 = vpop.eup %5691 }
0x1a0d   :  { %v2775_v37 = vmul.f32 %v5692_v36, %v5688_v29 }
0x1a0e   :  { %v5694_v38 = vpop.eup %5693 }
0x1a0f   :  { %v2776_v41 = vmul.f32 %v5694_v38, %v5690_v31  ;;  %v2777_v42 = vpack.c.bf16 %v2775_v37, %v2775_v37 }
0x1a11   :  { %5355 = vmatmul.mubr.msk.bf16.vlgmr.msra.gmra.mrb[68].mxu0 %vm533_vm3, %v2777_v42  ;;  %v2778_v44 = vpack.c.bf16 %v2776_v41, %v2776_v41 }
0x1a12   :  { %5365 = vmatpush3.bf16.msra.mxu0 %v5607_v40  ;;  %5368 = vmatprep.mubr.msk.bf16.mxu0 %vm5733_vm2, %v5732_v0 }
0x1a13   :  { %5361 = vmatmul.mubr.msk.bf16.vlgmr.msra.gmra.mrb[92].mxu1 %vm533_vm3, %v2778_v44  ;;  %5366 = vmatprep.subr.bf16.mxu0 %v5732_v0 }
0x1a14   :  { %5373 = vmatpush3.bf16.msra.mxu1 %v5608_v43  ;;  %5376 = vmatprep.mubr.msk.bf16.mxu1 %vm5733_vm2, %v5732_v0 }
0x1a15   :  { %5374 = vmatprep.subr.bf16.mxu1 %v5732_v0 }
0x1a16   :  { %5367 = vmatpush3.bf16.msra.mxu0 %v5609_v45 }
0x1a17   :  { %5380 = vmatprep.subr.bf16.mxu0 %v5732_v0 }
0x1a18   :  { %5375 = vmatpush3.bf16.msra.mxu1 %v5610_v49 }
0x1a19   :  { %5369 = vmatmul.mubr.msk.bf16.vlgmr.msra.gmra.mrb[72].mxu0 %vm239_vm1, %v6391_v39  ;;  %5388 = vmatprep.subr.bf16.mxu1 %v5732_v0 }
0x1a1a   :  { %5381 = vmatpush3.bf16.msra.mxu0 %v5611_v50  ;;  %5384 = vmatprep.mubr.msk.bf16.mxu0 %vm5733_vm2, %v5732_v0 }
0x1a1b   :  { %5377 = vmatmul.mubr.msk.bf16.vlgmr.msra.gmra.mrb[96].mxu1 %vm239_vm1, %v6391_v39  ;;  %5382 = vmatprep.subr.bf16.mxu0 %v5732_v0 }
0x1a1c   :  { %5390 = vmatprep.mubr.msk.bf16.mxu1 %vm5733_vm2, %v5732_v0 }
0x1a1e   :  { %5383 = vmatpush3.bf16.msra.mxu0 %v5612_v34 }
0x1a1f   :  { %5394 = vmatprep.subr.bf16.mxu0 %v5732_v0 }
0x1a21   :  { %5385 = vmatmul.mubr.msk.bf16.vlgmr.msra.gmra.mrb[76].mxu0 %vm239_vm1, %v6391_v39 }
0x1a22   :  { %5396 = vmatprep.mubr.msk.bf16.mxu0 %vm5733_vm2, %v5732_v0 }
0x1ae4   :  { %v6481_v21 = vpop.f32.mrb[68].mxu0 }
0x1ae5   :  { %v5356_v55 = vpop.f32.mrb[69].mxu0 }
0x1ae6   :  { %v2822_v46 = vpop.f32.mrb[70].mxu0  ;;  %v6483_v52 = vpop.f32.mrb[92].mxu1 }
0x1ae7   :  { %v2871_v53 = vpack.c.bf16 %v6483_v52, %v6481_v21  ;;  %v5357_v56 = vpop.f32.mrb[71].mxu0  ;;  %v5362_v20 = vpop.f32.mrb[93].mxu1 }
0x1ae8   :  { %v2868_v57 = vpop.f32.mrb[94].mxu1 }
0x1ae9   :  { %v5363_v58 = vpop.f32.mrb[95].mxu1 }
0x1aec   :  { %v2933_v24 = vpop.f32.mrb[72].mxu0 }
0x1aed   :  { %v5370_v60 = vpop.f32.mrb[73].mxu0  ;;  %v2934_v11 = vadd.f32 %v4782_v63, %v2933_v24  ;;  %v4808_v24 = vld [vmem:[%s6796_s14 + $0x14] sm:$0xf] }
0x1aee   :  { %v2936_v61 = vpop.f32.mrb[74].mxu0  ;;  %v2999_v62 = vpop.f32.mrb[96].mxu1 }
0x1aef   :  { %v3000_v1 = vadd.f32 %v4791_v59, %v2999_v62  ;;  %v5371_v3 = vpop.f32.mrb[75].mxu0  ;;  %v5378_v4 = vpop.f32.mrb[97].mxu1  ;;  %v2937_v16 = vadd.f32 %v4782_v63, %v2936_v61  ;;  %v3072_v22 = vpack.c.bf16 %v2934_v11, %v2934_v11  ;;  %v4776_v61 = vld [vmem:[%s6796_s14 + $0x10] sm:$0xf]  ;;  %v5615_v63 = vld [vmem:[%s6832_s29 + $0x60] sm:$0xff]  }
0x1af0   :  { %v3002_v47 = vpop.f32.mrb[98].mxu1  ;;  %v3293_v3 = vsel %vm653_vm4, %v4808_v24, 0 }
0x1af1   :  { %v3074_v54 = vpack.c.bf16 %v3000_v1, %v3000_v1  ;;  %v3003_v7 = vadd.f32 %v4791_v59, %v3002_v47  ;;  %v5379_v8 = vpop.f32.mrb[99].mxu1  ;;  %v3073_v25 = vpack.c.bf16 %v2937_v16, %v2937_v16  ;;  %v3340_v47 = vsel %vm653_vm4, %v4776_v61, 0 }
0x1af3   :  { %v3082_v51 = vsel %vm533_vm3, %v3074_v54, 0  ;;  %v3075_v10 = vpack.c.bf16 %v3003_v7, %v3003_v7  ;;  %v5613_v54 = vld [vmem:[%s6833_s10 + $0x60] sm:$0xff]   ;;  %v5614_v7 = vld [vmem:[%s6833_s10 + $0x68] sm:$0xff]  }
0x1af4   :  { %v3065_v2 = vpop.f32.mrb[76].mxu0  ;;  %5389 = vmatpush3.bf16.xpose.msra.mxu1 %v3082_v51 }
0x1af5   :  { %v3128_v12 = vsel %vm533_vm3, %v3075_v10, 0  ;;  %v3066_v13 = vadd.f32 %v4800_v9, %v3065_v2  ;;  %v5386_v14 = vpop.f32.mrb[77].mxu0  ;;  %5400 = vmatprep.subr.bf16.mxu1 %v5732_v0 }
0x1af6   :  { %v3068_v15 = vpop.f32.mrb[78].mxu0  ;;  %5395 = vmatpush3.bf16.xpose.msra.mxu0 %v3128_v12  ;;  %v5616_v12 = vld [vmem:[%s6832_s29 + $0x68] sm:$0xff]   ;;  %v5617_v14 = vld [vmem:[%s6836_s9 + $0x60] sm:$0xff]  }
0x1af7   :  { %v3076_v17 = vpack.c.bf16 %v3066_v13, %v3066_v13  ;;  %v3069_v18 = vadd.f32 %v4800_v9, %v3068_v15  ;;  %v5387_v19 = vpop.f32.mrb[79].mxu0  ;;  %5406 = vmatprep.subr.bf16.mxu0 %v5732_v0 }
0x1af8   :  { %v4825_v19 = vld [vmem:[%s6793_s12 + $0x6] ss:$0 sm:$0xff] }
0x1af9   :  { %v3077_v23 = vpack.c.bf16 %v3069_v18, %v3069_v18  ;;  %v3198_v26 = vsel %vm653_vm4, %v3076_v17, 0  ;;  %v5618_v18 = vld [vmem:[%s6836_s9 + $0x68] sm:$0xff]  }
0x1afb   :  { %5391 = vmatmul.mubr.msk.bf16.vlgmr.msra.gmra.mrb[100].mxu1 %vm533_vm3, %v3072_v22  ;;  %v3244_v27 = vsel %vm653_vm4, %v3077_v23, 0 }
0x1afc   :  { %5401 = vmatpush3.bf16.msra.mxu1 %v3198_v26  ;;  %5402 = vmatprep.mubr.msk.bf16.mxu1 %vm5733_vm2, %v5732_v0 }
0x1afd   :  { %5397 = vmatmul.mubr.msk.bf16.vlgmr.msra.gmra.mrb[80].mxu0 %vm533_vm3, %v3073_v25  ;;  %5412 = vmatprep.subr.bf16.mxu1 %v5732_v0 }
0x1afe   :  { %5407 = vmatpush3.bf16.msra.mxu0 %v3244_v27  ;;  %5408 = vmatprep.mubr.msk.bf16.mxu0 %vm5733_vm2, %v5732_v0 }
0x1aff   :  { %5418 = vmatprep.subr.bf16.mxu0 %v5732_v0 }
0x1bce   :  { %v3118_v28 = vpop.f32.mrb[100].mxu1 }
0x1bcf   :  { %v3119_v29 = vadd.f32 %v3118_v28, %v6026_v5  ;;  %v5392_v30 = vpop.f32.mrb[101].mxu1 }
0x1bd0   :  { %v3121_v31 = vpop.f32.mrb[102].mxu1  ;;  %v3164_v32 = vpop.f32.mrb[80].mxu0 }
0x1bd1   :  { %v3165_v33 = vadd.f32 %v3164_v32, %v6026_v5  ;;  %v5393_v35 = vpop.f32.mrb[103].mxu1  ;;  %v5398_v36 = vpop.f32.mrb[81].mxu0  ;;  %v3170_v37 = vsel %vm533_vm3, %v3119_v29, -inf }
0x1bd2   :  { %v3167_v38 = vpop.f32.mrb[82].mxu0  ;;  %3171 = vmax.xlane.f32.xlu0 %v3170_v37 }
0x1bd3   :  { %v5399_v40 = vpop.f32.mrb[83].mxu0  ;;  %v3173_v41 = vsel %vm533_vm3, %v3165_v33, -inf }
0x1bd4   :  { %3174 = vmax.xlane.f32.xlu1 %v3173_v41  ;;  %v4816_v41 = vld [vmem:[%s6794_s11 + $0x6] ss:$0 sm:$0xff] }
0x1c5f   :  { %v3172_v42 = vpop.xlane.xlu0 %3171 }
0x1c60   :  { %v3176_v43 = vsub.f32 %v3119_v29, %v3172_v42 }
0x1c61   :  { %v3175_v44 = vpop.xlane.xlu1 %3174 }
0x1c62   :  { %v3178_v45 = vmul.f32 1.442695, %v3176_v43  ;;  %v3177_v49 = vsub.f32 %v3165_v33, %v3175_v44 }
0x1c64   :  { %5695 = vpow2.f32 %v3178_v45  ;;  %v3180_v50 = vmul.f32 1.442695, %v3177_v49 }
0x1c66   :  { %5697 = vpow2.f32 %v3180_v50 }
0x1c6e   :  { %v5696_v34 = vpop.eup %5695 }
0x1c6f   :  { %v3182_v55 = vsel %vm533_vm3, %v5696_v34, 0.0 }
0x1c70   :  { %v5698_v46 = vpop.eup %5697  ;;  %3183 = vadd.xlane.f32.xlu0 %v3182_v55 }
0x1c71   :  { %v3185_v56 = vsel %vm533_vm3, %v5698_v46, 0.0 }
0x1c72   :  { %3186 = vadd.xlane.f32.xlu1 %v3185_v56 }
0x1cfd   :  { %v3184_v20 = vpop.xlane.xlu0 %3183 }
0x1cfe   :  { %5699 = vrcp.f32 %v3184_v20 }
0x1cff   :  { %v3187_v57 = vpop.xlane.xlu1 %3186 }
0x1d00   :  { %5701 = vrcp.f32 %v3187_v57 }
0x1d08   :  { %v5700_v58 = vpop.eup %5699 }
0x1d09   :  { %v3190_v59 = vmul.f32 %v5700_v58, %v5696_v34 }
0x1d0a   :  { %v5702_v60 = vpop.eup %5701 }
0x1d0b   :  { %v3191_v62 = vmul.f32 %v5702_v60, %v5698_v46  ;;  %v3192_v1 = vpack.c.bf16 %v3190_v59, %v3190_v59  ;;  %v4834_v46 = vld [vmem:[%s6795_s13 + $0x6] ss:$0 sm:$0xff] }
0x1d0d   :  { %5403 = vmatmul.mubr.msk.bf16.vlgmr.msra.gmra.mrb[104].mxu1 %vm533_vm3, %v3192_v1  ;;  %v3193_v4 = vpack.c.bf16 %v3191_v62, %v3191_v62 }
0x1d0e   :  { %5413 = vmatpush3.bf16.msra.mxu1 %v3293_v3  ;;  %5414 = vmatprep.mubr.msk.bf16.mxu1 %vm5733_vm2, %v5732_v0 }
0x1d0f   :  { %5409 = vmatmul.mubr.msk.bf16.vlgmr.msra.gmra.mrb[84].mxu0 %vm533_vm3, %v3193_v4  ;;  %5424 = vmatprep.subr.bf16.mxu1 %v5732_v0 }
0x1d10   :  { %5419 = vmatpush3.bf16.msra.mxu0 %v3340_v47  ;;  %5420 = vmatprep.mubr.msk.bf16.mxu0 %vm5733_vm2, %v5732_v0 }
0x1d11   :  { %5432 = vmatprep.subr.bf16.mxu0 %v5732_v0 }
0x1d17   :  { %5421 = vmatmul.mubr.msk.bf16.vlgmr.msra.gmra.mrb[88].mxu0 %vm533_vm3, %v2871_v53 }
0x1d18   :  { %5433 = vmatpush3.bf16.msra.mxu0 %v5613_v54  ;;  %5436 = vmatprep.mubr.msk.bf16.mxu0 %vm5733_vm2, %v5732_v0 }
0x1d19   :  { %5434 = vmatprep.subr.bf16.mxu0 %v5732_v0 }
0x1d1c   :  { %5435 = vmatpush3.bf16.msra.mxu0 %v5614_v7 }
0x1d1d   :  { %5448 = vmatprep.subr.bf16.mxu0 %v5732_v0 }
0x1d1f   :  { %5437 = vmatmul.mubr.msk.bf16.vlgmr.msra.gmra.mrb[92].mxu0 %vm239_vm1, %v6391_v39 }
0x1d20   :  { %5450 = vmatprep.mubr.msk.bf16.mxu0 %vm5733_vm2, %v5732_v0 }
0x1de0   :  { %v3234_v21 = vpop.f32.mrb[104].mxu1 }
0x1de1   :  { %v5404_v52 = vpop.f32.mrb[105].mxu1 }
0x1de2   :  { %v3237_v53 = vpop.f32.mrb[106].mxu1  ;;  %v3280_v8 = vpop.f32.mrb[84].mxu0 }
0x1de3   :  { %v3286_v9 = vpack.c.bf16 %v3280_v8, %v3234_v21  ;;  %v5405_v51 = vpop.f32.mrb[107].mxu1  ;;  %v5410_v10 = vpop.f32.mrb[85].mxu0 }
0x1de4   :  { %v3283_v2 = vpop.f32.mrb[86].mxu0 }
0x1de5   :  { %v5411_v11 = vpop.f32.mrb[87].mxu0  ;;  %5415 = vmatmul.mubr.msk.bf16.vlgmr.msra.gmra.mrb[108].mxu1 %vm533_vm3, %v3286_v9 }
0x1de6   :  { %5425 = vmatpush3.bf16.msra.mxu1 %v5615_v63  ;;  %5428 = vmatprep.mubr.msk.bf16.mxu1 %vm5733_vm2, %v5732_v0 }
0x1de7   :  { %5426 = vmatprep.subr.bf16.mxu1 %v5732_v0 }
0x1dea   :  { %5427 = vmatpush3.bf16.msra.mxu1 %v5616_v12  ;;  %v3376_v13 = vpop.f32.mrb[88].mxu0 }
0x1deb   :  { %v5422_v15 = vpop.f32.mrb[89].mxu0  ;;  %5440 = vmatprep.subr.bf16.mxu1 %v5732_v0 }
0x1dec   :  { %v3379_v16 = vpop.f32.mrb[90].mxu0 }
0x1ded   :  { %v5423_v17 = vpop.f32.mrb[91].mxu0  ;;  %5429 = vmatmul.mubr.msk.bf16.vlgmr.msra.gmra.mrb[112].mxu1 %vm239_vm1, %v6391_v39 }
0x1dee   :  { %5441 = vmatpush3.bf16.msra.mxu1 %v5617_v14  ;;  %5444 = vmatprep.mubr.msk.bf16.mxu1 %vm5733_vm2, %v5732_v0 }
0x1def   :  { %5442 = vmatprep.subr.bf16.mxu1 %v5732_v0 }
0x1df2   :  { %5443 = vmatpush3.bf16.msra.mxu1 %v5618_v18  ;;  %v3508_v22 = vpop.f32.mrb[92].mxu0 }
0x1df3   :  { %v3509_v23 = vadd.f32 %v4825_v19, %v3508_v22  ;;  %v5438_v25 = vpop.f32.mrb[93].mxu0  ;;  %5454 = vmatprep.subr.bf16.mxu1 %v5732_v0 }
0x1df4   :  { %v3511_v26 = vpop.f32.mrb[94].mxu0  ;;  %v4842_v25 = vld [vmem:[%s6796_s14 + $0x18] sm:$0xf] }
0x1df5   :  { %v3583_v27 = vpack.c.bf16 %v3509_v23, %v3509_v23  ;;  %v3512_v28 = vadd.f32 %v4825_v19, %v3511_v26  ;;  %v5439_v29 = vpop.f32.mrb[95].mxu0  ;;  %5445 = vmatmul.mubr.msk.bf16.vlgmr.msra.gmra.mrb[116].mxu1 %vm239_vm1, %v6391_v39 }
0x1df6   :  { %5456 = vmatprep.mubr.msk.bf16.mxu1 %vm5733_vm2, %v5732_v0 }
0x1df7   :  { %v3591_v30 = vsel %vm533_vm3, %v3583_v27, 0  ;;  %v3584_v31 = vpack.c.bf16 %v3512_v28, %v3512_v28 }
0x1df8   :  { %5449 = vmatpush3.bf16.xpose.msra.mxu0 %v3591_v30  ;;  %v3802_v30 = vsel %vm653_vm4, %v4842_v25, 0 }
0x1df9   :  { %v3637_v32 = vsel %vm533_vm3, %v3584_v31, 0  ;;  %5460 = vmatprep.subr.bf16.mxu0 %v5732_v0  ;;  %v5619_v31 = vld [vmem:[%s6832_s29 + $0x70] sm:$0xff]  }
0x1dfb   :  { %5455 = vmatpush3.bf16.xpose.msra.mxu1 %v3637_v32 }
0x1dfc   :  { %5466 = vmatprep.subr.bf16.mxu1 %v5732_v0 }
0x1eb8   :  { %v3329_v33 = vpop.f32.mrb[108].mxu1 }
0x1eb9   :  { %v6584_v35 = vadd.f32 %v3376_v13, %v3329_v33  ;;  %v5416_v36 = vpop.f32.mrb[109].mxu1  ;;  %v5620_v33 = vld [vmem:[%s6832_s29 + $0x78] sm:$0xff]  }
0x1eba   :  { %v3332_v37 = vpop.f32.mrb[110].mxu1  ;;  %v5621_v36 = vld [vmem:[%s6836_s9 + $0x70] sm:$0xff]  }
0x1ebb   :  { %v6586_v38 = vadd.f32 %v3379_v16, %v3332_v37  ;;  %v5417_v40 = vpop.f32.mrb[111].mxu1  ;;  %v5622_v37 = vld [vmem:[%s6836_s9 + $0x78] sm:$0xff]  }
0x1ec0   :  { %v3442_v42 = vpop.f32.mrb[112].mxu1 }
0x1ec1   :  { %v3443_v43 = vadd.f32 %v4816_v41, %v3442_v42  ;;  %v5430_v44 = vpop.f32.mrb[113].mxu1 }
0x1ec2   :  { %v3445_v45 = vpop.f32.mrb[114].mxu1  ;;  %v5623_v44 = vld [vmem:[%s6833_s10 + $0x70] sm:$0xff]  }
0x1ec3   :  { %v3581_v49 = vpack.c.bf16 %v3443_v43, %v3443_v43  ;;  %v3446_v50 = vadd.f32 %v4816_v41, %v3445_v45  ;;  %v5431_v34 = vpop.f32.mrb[115].mxu1 }
0x1ec5   :  { %v3582_v55 = vpack.c.bf16 %v3446_v50, %v3446_v50  ;;  %5451 = vmatmul.mubr.msk.bf16.vlgmr.msra.gmra.mrb[96].mxu0 %vm533_vm3, %v3581_v49 }
0x1ec6   :  { %5462 = vmatprep.mubr.msk.bf16.mxu0 %vm5733_vm2, %v5732_v0 }
0x1ec7   :  { %5457 = vmatmul.mubr.msk.bf16.vlgmr.msra.gmra.mrb[120].mxu1 %vm533_vm3, %v3582_v55 }
0x1ec8   :  { %v3574_v56 = vpop.f32.mrb[116].mxu1  ;;  %5468 = vmatprep.mubr.msk.bf16.mxu1 %vm5733_vm2, %v5732_v0 }
0x1ec9   :  { %v3575_v20 = vadd.f32 %v4834_v46, %v3574_v56  ;;  %v5446_v57 = vpop.f32.mrb[117].mxu1 }
0x1eca   :  { %v3577_v58 = vpop.f32.mrb[118].mxu1 }
0x1ecb   :  { %v3585_v24 = vpack.c.bf16 %v3575_v20, %v3575_v20  ;;  %v3578_v59 = vadd.f32 %v4834_v46, %v3577_v58  ;;  %v5447_v60 = vpop.f32.mrb[119].mxu1  ;;  %v5624_v46 = vld [vmem:[%s6833_s10 + $0x78] sm:$0xff]  }
0x1ecd   :  { %v3707_v61 = vsel %vm653_vm4, %v3585_v24, 0  ;;  %v3586_v62 = vpack.c.bf16 %v3578_v59, %v3578_v59 }
0x1ece   :  { %5461 = vmatpush3.bf16.msra.mxu0 %v3707_v61 }
0x1ecf   :  { %v3753_v1 = vsel %vm653_vm4, %v3586_v62, 0  ;;  %5472 = vmatprep.subr.bf16.mxu0 %v5732_v0 }
0x1ed0   :  { %5467 = vmatpush3.bf16.msra.mxu1 %v3753_v1 }
0x1ed1   :  { %5478 = vmatprep.subr.bf16.mxu1 %v5732_v0 }
0x1f98   :  { %v3627_v3 = vpop.f32.mrb[96].mxu0 }
0x1f99   :  { %v3628_v4 = vadd.f32 %v3627_v3, %v6026_v5  ;;  %v5452_v47 = vpop.f32.mrb[97].mxu0 }
0x1f9a   :  { %v3630_v54 = vpop.f32.mrb[98].mxu0  ;;  %v3673_v7 = vpop.f32.mrb[120].mxu1 }
0x1f9b   :  { %v3674_v21 = vadd.f32 %v3673_v7, %v6026_v5  ;;  %v5453_v52 = vpop.f32.mrb[99].mxu0  ;;  %v5458_v53 = vpop.f32.mrb[121].mxu1  ;;  %v3679_v8 = vsel %vm533_vm3, %v3628_v4, -inf }
0x1f9c   :  { %3680 = vmax.xlane.f32.xlu0 %v3679_v8  ;;  %v3676_v63 = vpop.f32.mrb[122].mxu1  ;;  %v4867_v53 = vld [vmem:[%s6795_s13 + $0x7] ss:$0 sm:$0xff] }
0x1f9d   :  { %v5459_v9 = vpop.f32.mrb[123].mxu1  ;;  %v3682_v51 = vsel %vm533_vm3, %v3674_v21, -inf }
0x1f9e   :  { %3683 = vmax.xlane.f32.xlu1 %v3682_v51 }
0x2029   :  { %v3681_v10 = vpop.xlane.xlu0 %3680 }
0x202a   :  { %v3685_v2 = vsub.f32 %v3628_v4, %v3681_v10 }
0x202b   :  { %v3684_v11 = vpop.xlane.xlu1 %3683 }
0x202c   :  { %v3687_v12 = vmul.f32 1.442695, %v3685_v2  ;;  %v3686_v13 = vsub.f32 %v3674_v21, %v3684_v11 }
0x202e   :  { %5703 = vpow2.f32 %v3687_v12  ;;  %v3689_v14 = vmul.f32 1.442695, %v3686_v13 }
0x2030   :  { %5705 = vpow2.f32 %v3689_v14 }
0x2038   :  { %v5704_v15 = vpop.eup %5703 }
0x2039   :  { %v3691_v16 = vsel %vm533_vm3, %v5704_v15, 0.0 }
0x203a   :  { %v5706_v17 = vpop.eup %5705  ;;  %3692 = vadd.xlane.f32.xlu0 %v3691_v16 }
0x203b   :  { %v3694_v18 = vsel %vm533_vm3, %v5706_v17, 0.0 }
0x203c   :  { %3695 = vadd.xlane.f32.xlu1 %v3694_v18 }
0x20c7   :  { %v3693_v19 = vpop.xlane.xlu0 %3692 }
0x20c8   :  { %5707 = vrcp.f32 %v3693_v19 }
0x20c9   :  { %v3696_v22 = vpop.xlane.xlu1 %3695 }
0x20ca   :  { %5709 = vrcp.f32 %v3696_v22 }
0x20d2   :  { %v5708_v23 = vpop.eup %5707 }
0x20d3   :  { %v3699_v26 = vmul.f32 %v5708_v23, %v5704_v15 }
0x20d4   :  { %v5710_v27 = vpop.eup %5709 }
0x20d5   :  { %v3700_v28 = vmul.f32 %v5710_v27, %v5706_v17  ;;  %v3701_v29 = vpack.c.bf16 %v3699_v26, %v3699_v26 }
0x20d7   :  { %5463 = vmatmul.mubr.msk.bf16.vlgmr.msra.gmra.mrb[100].mxu0 %vm533_vm3, %v3701_v29  ;;  %v3702_v32 = vpack.c.bf16 %v3700_v28, %v3700_v28 }
0x20d8   :  { %5473 = vmatpush3.bf16.msra.mxu0 %v3802_v30  ;;  %5474 = vmatprep.mubr.msk.bf16.mxu0 %vm5733_vm2, %v5732_v0 }
0x20d9   :  { %5469 = vmatmul.mubr.msk.bf16.vlgmr.msra.gmra.mrb[124].mxu1 %vm533_vm3, %v3702_v32  ;;  %5486 = vmatprep.subr.bf16.mxu0 %v5732_v0 }
0x20da   :  { %5479 = vmatpush3.bf16.msra.mxu1 %v5619_v31  ;;  %5482 = vmatprep.mubr.msk.bf16.mxu1 %vm5733_vm2, %v5732_v0 }
0x20db   :  { %5480 = vmatprep.subr.bf16.mxu1 %v5732_v0 }
0x20de   :  { %5481 = vmatpush3.bf16.msra.mxu1 %v5620_v33 }
0x20df   :  { %5494 = vmatprep.subr.bf16.mxu1 %v5732_v0 }
0x20e1   :  { %5483 = vmatmul.mubr.msk.bf16.vlgmr.msra.gmra.mrb[128].mxu1 %vm239_vm1, %v6391_v39 }
0x20e2   :  { %5495 = vmatpush3.bf16.msra.mxu1 %v5621_v36  ;;  %5498 = vmatprep.mubr.msk.bf16.mxu1 %vm5733_vm2, %v5732_v0 }
0x20e3   :  { %5496 = vmatprep.subr.bf16.mxu1 %v5732_v0 }
0x20e6   :  { %5497 = vmatpush3.bf16.msra.mxu1 %v5622_v37 }
0x20e7   :  { %5508 = vmatprep.subr.bf16.mxu1 %v5732_v0 }
0x20e9   :  { %5499 = vmatmul.mubr.msk.bf16.vlgmr.msra.gmra.mrb[132].mxu1 %vm239_vm1, %v6391_v39 }
0x20ea   :  { %5510 = vmatprep.mubr.msk.bf16.mxu1 %vm5733_vm2, %v5732_v0 }
0x21aa   :  { %v3743_v40 = vpop.f32.mrb[100].mxu0 }
0x21ab   :  { %v5464_v41 = vpop.f32.mrb[101].mxu0 }
0x21ac   :  { %v3746_v42 = vpop.f32.mrb[102].mxu0  ;;  %v3789_v43 = vpop.f32.mrb[124].mxu1 }
0x21ad   :  { %v3795_v45 = vpack.c.bf16 %v3789_v43, %v3743_v40  ;;  %v5465_v49 = vpop.f32.mrb[103].mxu0  ;;  %v5470_v50 = vpop.f32.mrb[125].mxu1 }
0x21ae   :  { %v3792_v34 = vpop.f32.mrb[126].mxu1 }
0x21af   :  { %v5471_v55 = vpop.f32.mrb[127].mxu1  ;;  %5475 = vmatmul.mubr.msk.bf16.vlgmr.msra.gmra.mrb[104].mxu0 %vm533_vm3, %v3795_v45 }
0x21b0   :  { %5487 = vmatpush3.bf16.msra.mxu0 %v5623_v44  ;;  %5490 = vmatprep.mubr.msk.bf16.mxu0 %vm5733_vm2, %v5732_v0 }
0x21b1   :  { %5488 = vmatprep.subr.bf16.mxu0 %v5732_v0 }
0x21b4   :  { %v3906_v56 = vpop.f32.mrb[128].mxu1  ;;  %5489 = vmatpush3.bf16.msra.mxu0 %v5624_v46 }
0x21b5   :  { %v5484_v20 = vpop.f32.mrb[129].mxu1  ;;  %5502 = vmatprep.subr.bf16.mxu0 %v5732_v0 }
0x21b6   :  { %v3909_v57 = vpop.f32.mrb[130].mxu1  ;;  %v4875_v20 = vld [vmem:[%s6796_s14 + $0x1c] sm:$0xf] }
0x21b7   :  { %v5485_v58 = vpop.f32.mrb[131].mxu1  ;;  %5491 = vmatmul.mubr.msk.bf16.vlgmr.msra.gmra.mrb[108].mxu0 %vm239_vm1, %v6391_v39  ;;  %v4858_v39 = vld [vmem:[%s6793_s12 + $0x7] ss:$0 sm:$0xff] }
0x21b8   :  { %5504 = vmatprep.mubr.msk.bf16.mxu0 %vm5733_vm2, %v5732_v0 }
0x21bc   :  { %v4038_v24 = vpop.f32.mrb[132].mxu1 }
0x21bd   :  { %v5500_v59 = vpop.f32.mrb[133].mxu1  ;;  %v4039_v51 = vadd.f32 %v4867_v53, %v4038_v24 }
0x21be   :  { %v4041_v60 = vpop.f32.mrb[134].mxu1 }
0x21bf   :  { %v5501_v61 = vpop.f32.mrb[135].mxu1  ;;  %v4042_v12 = vadd.f32 %v4867_v53, %v4041_v60  ;;  %v4049_v15 = vpack.c.bf16 %v4039_v51, %v4039_v51  ;;  %v4266_v60 = vsel %vm653_vm4, %v4875_v20, 0 }
0x21c1   :  { %v4050_v17 = vpack.c.bf16 %v4042_v12, %v4042_v12  ;;  %v4171_v19 = vsel %vm653_vm4, %v4049_v15, 0 }
0x21c3   :  { %v4217_v22 = vsel %vm653_vm4, %v4050_v17, 0 }
0x2282   :  { %v3838_v62 = vpop.f32.mrb[104].mxu0 }
0x2283   :  { %v6661_v1 = vadd.f32 %v3838_v62, %v6584_v35  ;;  %v5476_v3 = vpop.f32.mrb[105].mxu0 }
0x2284   :  { %v3841_v4 = vpop.f32.mrb[106].mxu0 }
0x2285   :  { %v6664_v47 = vadd.f32 %v3841_v4, %v6586_v38  ;;  %v5477_v54 = vpop.f32.mrb[107].mxu0  ;;  %v4849_v38 = vld [vmem:[%s6794_s11 + $0x7] ss:$0 sm:$0xff] }
0x2286   :  { %v3907_v11 = vadd.f32 %v4849_v38, %v3906_v56  ;;  %v3910_v14 = vadd.f32 %v4849_v38, %v3909_v57 }
0x2288   :  { %v4045_v16 = vpack.c.bf16 %v3907_v11, %v3907_v11  ;;  %v4046_v18 = vpack.c.bf16 %v3910_v14, %v3910_v14 }
0x228a   :  { %v3972_v7 = vpop.f32.mrb[108].mxu0 }
0x228b   :  { %v3973_v21 = vadd.f32 %v4858_v39, %v3972_v7  ;;  %v5492_v52 = vpop.f32.mrb[109].mxu0 }
0x228c   :  { %v3975_v8 = vpop.f32.mrb[110].mxu0 }
0x228d   :  { %v4047_v35 = vpack.c.bf16 %v3973_v21, %v3973_v21  ;;  %v3976_v63 = vadd.f32 %v4858_v39, %v3975_v8  ;;  %v5493_v9 = vpop.f32.mrb[111].mxu0 }
0x228e   :  { %v4878_v9 = vld [vmem:[%s6797_s15 + $0x1] ss:$0 sm:$0xff] }
0x228f   :  { %v4055_v10 = vsel %vm533_vm3, %v4047_v35, 0  ;;  %v4048_v2 = vpack.c.bf16 %v3976_v63, %v3976_v63 }
0x2290   :  { %5503 = vmatpush3.bf16.xpose.msra.mxu0 %v4055_v10 }
0x2291   :  { %v4101_v13 = vsel %vm533_vm3, %v4048_v2, 0  ;;  %5514 = vmatprep.subr.bf16.mxu0 %v5732_v0 }
0x2292   :  { %5509 = vmatpush3.bf16.xpose.msra.mxu1 %v4101_v13 }
0x2293   :  { %5520 = vmatprep.subr.bf16.mxu1 %v5732_v0 }
0x2297   :  { %5505 = vmatmul.mubr.msk.bf16.vlgmr.msra.gmra.mrb[112].mxu0 %vm533_vm3, %v4045_v16 }
0x2298   :  { %5515 = vmatpush3.bf16.msra.mxu0 %v4171_v19  ;;  %5516 = vmatprep.mubr.msk.bf16.mxu0 %vm5733_vm2, %v5732_v0 }
0x2299   :  { %5511 = vmatmul.mubr.msk.bf16.vlgmr.msra.gmra.mrb[136].mxu1 %vm533_vm3, %v4046_v18  ;;  %5526 = vmatprep.subr.bf16.mxu0 %v5732_v0 }
0x229a   :  { %5521 = vmatpush3.bf16.msra.mxu1 %v4217_v22  ;;  %5522 = vmatprep.mubr.msk.bf16.mxu1 %vm5733_vm2, %v5732_v0 }
0x229b   :  { %5532 = vmatprep.subr.bf16.mxu1 %v5732_v0 }
0x236a   :  { %v4091_v23 = vpop.f32.mrb[112].mxu0 }
0x236b   :  { %v4092_v25 = vadd.f32 %v4091_v23, %v6026_v5  ;;  %v5506_v26 = vpop.f32.mrb[113].mxu0 }
0x236c   :  { %v4094_v27 = vpop.f32.mrb[114].mxu0  ;;  %v4137_v28 = vpop.f32.mrb[136].mxu1  ;;  %v5626_v26 = vld [vmem:[%s6798_s18 + $0x18] sm:$0xff]  }
0x236d   :  { %v4138_v29 = vadd.f32 %v4137_v28, %v6026_v5  ;;  %v5507_v30 = vpop.f32.mrb[115].mxu0  ;;  %v5512_v31 = vpop.f32.mrb[137].mxu1  ;;  %v4143_v32 = vsel %vm533_vm3, %v4092_v25, -inf }
0x236e   :  { %4144 = vmax.xlane.f32.xlu0 %v4143_v32  ;;  %v4140_v33 = vpop.f32.mrb[138].mxu1 }
0x236f   :  { %v5513_v36 = vpop.f32.mrb[139].mxu1  ;;  %v4146_v37 = vsel %vm533_vm3, %v4138_v29, -inf }
0x2370   :  { %4147 = vmax.xlane.f32.xlu1 %v4146_v37  ;;  %v4881_v36 = vld [vmem:[%s6799_s16 + $0x1] ss:$0 sm:$0xff] }
0x23fb   :  { %v4145_v40 = vpop.xlane.xlu0 %4144 }
0x23fc   :  { %v4149_v41 = vsub.f32 %v4092_v25, %v4145_v40  ;;  %v5625_v25 = vld [vmem:[%s6798_s18 + $0x10] sm:$0xff]  }
0x23fd   :  { %v4148_v42 = vpop.xlane.xlu1 %4147 }
0x23fe   :  { %v4151_v43 = vmul.f32 1.442695, %v4149_v41  ;;  %v4150_v44 = vsub.f32 %v4138_v29, %v4148_v42 }
0x2400   :  { %5711 = vpow2.f32 %v4151_v43  ;;  %v4153_v45 = vmul.f32 1.442695, %v4150_v44  ;;  %v4882_v43 = vld [vmem:[%s6800_s17 + $0x1] ss:$0 sm:$0xff] }
0x2402   :  { %5713 = vpow2.f32 %v4153_v45 }
0x240a   :  { %v5712_v49 = vpop.eup %5711 }
0x240b   :  { %v4155_v5 = vsel %vm533_vm3, %v5712_v49, 0.0 }
0x240c   :  { %v5714_v50 = vpop.eup %5713  ;;  %4156 = vadd.xlane.f32.xlu0 %v4155_v5 }
0x240d   :  { %v4158_v34 = vsel %vm533_vm3, %v5714_v50, 0.0 }
0x240e   :  { %4159 = vadd.xlane.f32.xlu1 %v4158_v34  ;;  %v5628_v34 = vld [vmem:[%s6801_s20 + $0x28] sm:$0xff]  }
0x2499   :  { %v4157_v55 = vpop.xlane.xlu0 %4156 }
0x249a   :  { %5715 = vrcp.f32 %v4157_v55  ;;  %v5629_v55 = vld [vmem:[%s6801_s20 + $0x30] sm:$0xff]  }
0x249b   :  { %v4160_v46 = vpop.xlane.xlu1 %4159 }
0x249c   :  { %5717 = vrcp.f32 %v4160_v46  ;;  %v5630_v46 = vld [vmem:[%s6801_s20 + $0x38] sm:$0xff]  }
0x24a4   :  { %v5716_v56 = vpop.eup %5715 }
0x24a5   :  { %v4163_v57 = vmul.f32 %v5716_v56, %v5712_v49  ;;  %v4888_v56 = vld [vmem:[%s6802_s19 + $0x1] ss:$0 sm:$0xff] }
0x24a6   :  { %v5718_v58 = vpop.eup %5717 }
0x24a7   :  { %v4164_v24 = vmul.f32 %v5718_v58, %v5714_v50  ;;  %v4165_v59 = vpack.c.bf16 %v4163_v57, %v4163_v57  ;;  %v5627_v50 = vld [vmem:[%s6801_s20 + $0x20] sm:$0xff]  }
0x24a9   :  { %5517 = vmatmul.mubr.msk.bf16.vlgmr.msra.gmra.mrb[116].mxu0 %vm533_vm3, %v4165_v59  ;;  %v4166_v61 = vpack.c.bf16 %v4164_v24, %v4164_v24 }
0x24aa   :  { %5527 = vmatpush3.bf16.msra.mxu0 %v4266_v60  ;;  %5528 = vmatprep.mubr.msk.bf16.mxu0 %vm5733_vm2, %v5732_v0 }
0x24ab   :  { %5523 = vmatmul.mubr.msk.bf16.vlgmr.msra.gmra.mrb[140].mxu1 %vm533_vm3, %v4166_v61  ;;  %5540 = vmatprep.subr.bf16.mxu0 %v5732_v0 }
0x24ac   :  { %5536 = vmatprep.mubr.msk.bf16.mxu1 %vm5733_vm2, %v5732_v0  ;;  %5533 = vmatpush3.bf16.msra.mxu1 %v5625_v25 }
0x24ad   :  { %5534 = vmatprep.subr.bf16.mxu1 %v5732_v0 }
0x24b0   :  { %5535 = vmatpush3.bf16.msra.mxu1 %v5626_v26 }
0x257c   :  { %v4207_v62 = vpop.f32.mrb[116].mxu0 }
0x257d   :  { %v5518_v3 = vpop.f32.mrb[117].mxu0 }
0x257e   :  { %v4210_v4 = vpop.f32.mrb[118].mxu0  ;;  %v4253_v54 = vpop.f32.mrb[140].mxu1 }
0x257f   :  { %v4259_v39 = vpack.c.bf16 %v4253_v54, %v4207_v62  ;;  %v5519_v7 = vpop.f32.mrb[119].mxu0  ;;  %v5524_v21 = vpop.f32.mrb[141].mxu1 }
0x2580   :  { %v4256_v52 = vpop.f32.mrb[142].mxu1 }
0x2581   :  { %v5525_v53 = vpop.f32.mrb[143].mxu1  ;;  %5529 = vmatmul.mubr.msk.bf16.vlgmr.msra.gmra.mrb[120].mxu0 %vm533_vm3, %v4259_v39 }
0x2582   :  { %5548 = vmatprep.mubr.msk.bf16.mxu0 %vm5733_vm2, %v5732_v0  ;;  %5541 = vmatpush3.bf16.msra.mxu0 %v5627_v50 }
0x2583   :  { %5542 = vmatprep.subr.bf16.mxu0 %v5732_v0 }
0x2586   :  { %5543 = vmatpush3.bf16.msra.mxu0 %v5628_v34 }
0x2587   :  { %5544 = vmatprep.subr.bf16.mxu0 %v5732_v0 }
0x258a   :  { %5545 = vmatpush3.bf16.msra.mxu0 %v5629_v55 }
0x258b   :  { %5546 = vmatprep.subr.bf16.mxu0 %v5732_v0 }
0x258e   :  { %5547 = vmatpush3.bf16.msra.mxu0 %v5630_v46 }
0x2654   :  { %v4302_v8 = vpop.f32.mrb[120].mxu0 }
0x2655   :  { %v4309_v35 = vadd.f32 %v4302_v8, %v6661_v1  ;;  %v5530_v63 = vpop.f32.mrb[121].mxu0 }
0x2656   :  { %v4305_v38 = vpop.f32.mrb[122].mxu0  ;;  %v4564_v63 = vld [vmem:[%s6804_s1] sm:$0x3] }
0x2657   :  { %v4311_v51 = vadd.f32 %v4309_v35, %v6353_v48  ;;  %v4310_v10 = vadd.f32 %v4305_v38, %v6664_v47  ;;  %v5531_v2 = vpop.f32.mrb[123].mxu0 }
0x2659   :  { %v6715_v11 = vadd.f32 %v4878_v9, %v4311_v51  ;;  %v4312_v12 = vadd.f32 %v4310_v10, %v6356_v6  ;;  %v30_v10 = vstv %s6806_s24 }
0x265a   :  { %31 = vst [vmem:[#allocation2] sm:$0x1] %v30_v10 }
0x265b   :  { %v6718_v13 = vadd.f32 %v4878_v9, %v4312_v12  ;;  %v4327_v1 = vsel %vm239_vm1, %v6715_v11, 0.0  ;;  %v4910_v9 = vld [vmem:[%s6805_s23] ss:$0 sm:$0xff] }
0x265c   :  { %4328 = vadd.xlane.f32.xlu0 %v4327_v1  ;;  %v4572_v38 = vmul.f32 %v4910_v9, %v4564_v63 }
0x265d   :  { %v4330_v14 = vsel %vm239_vm1, %v6718_v13, 0.0 }
0x265e   :  { %4331 = vadd.xlane.f32.xlu1 %v4330_v14  ;;  %v4573_v51 = vsel %vm4560_vm6, %v4572_v38, 0.0  ;;  %v4908_v14 = vld [vmem:[%s6803_s21 + $0x1] ss:$0 sm:$0xff] }
0x2661   :  { %v4911_v26 = vld [vmem:[#allocation2] ss:$0 sm:$0xff] }
0x26e9   :  { %v4329_v15 = vpop.xlane.xlu0 %4328 }
0x26ea   :  { %v4333_v16 = vmul.f32 0.03125, %v4329_v15 }
0x26eb   :  { %v4332_v48 = vpop.xlane.xlu1 %4331 }
0x26ec   :  { %v4335_v47 = vsub.f32 %v6715_v11, %v4333_v16  ;;  %v4334_v17 = vmul.f32 0.03125, %v4332_v48 }
0x26ee   :  { %v4336_v18 = vsub.f32 %v6718_v13, %v4334_v17  ;;  %v4337_v19 = vmul.f32 %v4335_v47, %v4335_v47 }
0x26f0   :  { %v4339_v6 = vsel %vm239_vm1, %v4337_v19, 0.0  ;;  %v4338_v22 = vmul.f32 %v4336_v18, %v4336_v18 }
0x26f1   :  { %4340 = vadd.xlane.f32.xlu0 %v4339_v6 }
0x26f2   :  { %v4342_v23 = vsel %vm239_vm1, %v4338_v22, 0.0 }
0x26f3   :  { %4343 = vadd.xlane.f32.xlu1 %v4342_v23 }
0x26f7   :  { %4574 = vadd.xlane.f32.xlu1 %v4573_v51 }
0x277e   :  { %v4341_v27 = vpop.xlane.xlu0 %4340 }
0x277f   :  { %v4345_v28 = vmul.f32 0.03125, %v4341_v27 }
0x2780   :  { %v4344_v29 = vpop.xlane.xlu1 %4343 }
0x2781   :  { %v4347_v30 = vadd.f32 1e-05, %v4345_v28  ;;  %v4346_v31 = vmul.f32 0.03125, %v4344_v29 }
0x2783   :  { %5719 = vrsqrt.f32 %v4347_v30  ;;  %v4348_v32 = vadd.f32 1e-05, %v4346_v31 }
0x2784   :  { %v4575_v25 = vpop.xlane.xlu1 %4574 }
0x2785   :  { %5721 = vrsqrt.f32 %v4348_v32 }
0x278d   :  { %v5720_v33 = vpop.eup %5719 }
0x278e   :  { %v4351_v37 = vmul.f32 %v5720_v33, %v4335_v47 }
0x278f   :  { %v5722_v40 = vpop.eup %5721 }
0x2790   :  { %v4359_v41 = vmul.f32 %v4881_v36, %v4351_v37  ;;  %v4352_v42 = vmul.f32 %v5722_v40, %v4336_v18  ;;  %v4909_v18 = vld [vmem:[%s6807_s22] ss:$0 sm:$0xff] }
0x2792   :  { %v4360_v44 = vmul.f32 %v4881_v36, %v4352_v42  ;;  %v4367_v45 = vadd.f32 %v4882_v43, %v4359_v41 }
0x2794   :  { %v4368_v49 = vadd.f32 %v4882_v43, %v4360_v44 }
0x2796   :  { %v4369_v5 = vpack.c.bf16 %v4368_v49, %v4367_v45 }
0x2798   :  { %5537 = vmatmul.mubr.msk.bf16.vlgmr.msra.gmra.mrb[144].mxu1 %vm239_vm1, %v4369_v5 }
0x286b   :  { %v4432_v20 = vpop.f32.mrb[144].mxu1 }
0x286c   :  { %v4433_v57 = vadd.f32 %v4888_v56, %v4432_v20  ;;  %v5538_v58 = vpop.f32.mrb[145].mxu1 }
0x286d   :  { %v4435_v24 = vpop.f32.mrb[146].mxu1 }
0x286e   :  { %v4892_v59 = vmul.f32 -1.702, %v4433_v57  ;;  %v4436_v60 = vadd.f32 %v4888_v56, %v4435_v24  ;;  %v5539_v61 = vpop.f32.mrb[147].mxu1 }
0x2870   :  { %v4443_v62 = vmul.f32 1.442695, %v4892_v59  ;;  %v4893_v3 = vmul.f32 -1.702, %v4436_v60 }
0x2872   :  { %5723 = vpow2.f32 %v4443_v62  ;;  %v4445_v0 = vmul.f32 1.442695, %v4893_v3 }
0x2874   :  { %5725 = vpow2.f32 %v4445_v0 }
0x287c   :  { %v5724_v4 = vpop.eup %5723 }
0x287d   :  { %v4447_v54 = vadd.f32 1.0, %v5724_v4 }
0x287e   :  { %v5726_v39 = vpop.eup %5725 }
0x287f   :  { %5727 = vrcp.f32 %v4447_v54  ;;  %v4448_v7 = vadd.f32 1.0, %v5726_v39 }
0x2881   :  { %5729 = vrcp.f32 %v4448_v7 }
0x2889   :  { %v5728_v21 = vpop.eup %5727 }
0x288a   :  { %v4453_v53 = vmul.f32 %v5728_v21, %v4433_v57 }
0x288b   :  { %v5730_v52 = vpop.eup %5729 }
0x288c   :  { %v4454_v8 = vmul.f32 %v5730_v52, %v4436_v60 }
0x288e   :  { %v4455_v35 = vpack.c.bf16 %v4454_v8, %v4453_v53 }
0x2890   :  { %5549 = vmatmul.mubr.msk.bf16.vlgmr.msra.gmra.mrb[124].mxu0 %vm192_vm0, %v4455_v35 }
0x2963   :  { %v4526_v2 = vpop.f32.mrb[124].mxu0 }
0x2964   :  { %v4533_v12 = vadd.f32 %v4526_v2, %v6715_v11  ;;  %v5550_v1 = vpop.f32.mrb[125].mxu0 }
0x2965   :  { %v4529_v15 = vpop.f32.mrb[126].mxu0 }
0x2966   :  { %v4534_v16 = vadd.f32 %v4529_v15, %v6718_v13  ;;  %v5551_v48 = vpop.f32.mrb[127].mxu0  ;;  %v4543_v47 = vadd.f32 %v4908_v14, %v4533_v12 }
0x2968   :  { %v4544_v17 = vadd.f32 %v4908_v14, %v4534_v16  ;;  %v4552_v6 = vmul.f32 %v4909_v18, %v4543_v47 }
0x296a   :  { %v4553_v19 = vmul.f32 %v4909_v18, %v4544_v17 }
0x296c   :  { %v4556_v22 = vrot.slane %v4553_v19, 7 }
0x296e   :  { %v4558_v11 = vsel %vm4557_vm7, %v4556_v22, %v4552_v6 }
0x296f   :  { %v4561_v23 = vsel %vm4560_vm6, %v4558_v11, 0.0 }
0x2970   :  { %4562 = vadd.xlane.f32.xlu0 %v4561_v23 }
0x29fd   :  { %v4563_v27 = vpop.xlane.xlu0 %4562 }
0x29fe   :  { %v4576_v28 = vadd.f32 %v4575_v25, %v4563_v27 }
0x2a00   :  { %v4584_v13 = vadd.f32 %v4911_v26, %v4576_v28 }
0x2a02   :  { %4586 = vst.msk [vmem:[%s6808_s25] sm:$0x3] %vm4585_vm8, %v4584_v13 }

</bundles_post_ra>
